<compile_context>
chip_gen: v5e
topology: v5e:2x2
jax: 0.10.0
libtpu: 0.0.40
codegen_flags: <defaults>
</compile_context>

<pallas_src>
import jax
import jax.numpy as jnp
from jax.experimental import pallas as pl
from jax.experimental.pallas import tpu as pltpu

B = 2            # batch
L_IN = 186       # input length (forces 744 flattened features, matching fc1)
C = 24           # channels after conv1 / inside resblocks
K1 = 5           # conv1 kernel size
L1 = (L_IN + 2 * 1 - K1) // 3 + 1   # 62, length after conv1 (stride 3, pad 1)
LP = L1 // 2                        # 31, length after MaxPool1d(2);  C*LP = 744
BL = B * L1                         # 124, fused batch*length lane width
H1 = 128                            # fc1 hidden size
CP = 128                            # lane-aligned per-channel stride in the fc1 flat slab
EPS = 1e-5


def rescnn_kernel(xcol_ref, w0_ref, b0_ref, g_ref, be_ref, wr_ref, br_ref,
                  wf1_ref, bf1_ref, wf2_ref, bf2_ref, out_ref, flat_scr):
    inv_n = 1.0 / float(BL)

    # Static lane-position masks (hoisted; built once from a 2-D iota).
    lane = jax.lax.broadcasted_iota(jnp.int32, (C, BL), 1)
    mprev = (lane != 0) & (lane != L1)            # conv left padding per batch segment
    mnext = (lane != (L1 - 1)) & (lane != (BL - 1))  # conv right padding per batch segment
    zcol = jnp.zeros((C, 1), jnp.float32)

    def elu(v):
        return jnp.where(v > 0, v, jnp.exp(jnp.minimum(v, 0.0)) - 1.0)

    def batchnorm(v, idx):
        # Training-mode BatchNorm1d: stats over (batch, length) = lane axis, biased var.
        mean = jnp.sum(v, axis=1, keepdims=True) * inv_n
        vc = v - mean
        var = jnp.sum(vc * vc, axis=1, keepdims=True) * inv_n
        return vc * (g_ref[idx] * jax.lax.rsqrt(var + EPS)) + be_ref[idx]

    def shift_prev(v):
        # lane j gets v[:, j-1]; zero at each batch-segment start (conv padding=1).
        s = jnp.concatenate([zcol, v[:, :BL - 1]], axis=1)
        return jnp.where(mprev, s, 0.0)

    def shift_next(v):
        # lane j gets v[:, j+1]; zero at each batch-segment end (conv padding=1).
        s = jnp.concatenate([v[:, 1:], zcol], axis=1)
        return jnp.where(mnext, s, 0.0)

    def conv3(v, idx):
        # Conv1d(C, C, k=3, s=1, p=1): all 3 taps and both batches fused into one
        # (C, 3C) @ (3C, B*L1) MXU matmul; tap stack built as a value (sublane concat).
        stacked = jnp.concatenate([shift_prev(v), v, shift_next(v)], axis=0)
        return jnp.dot(wr_ref[idx], stacked.astype(jnp.bfloat16),
                       preferred_element_type=jnp.float32) + br_ref[idx]

    # --- conv1: Conv1d(1, 24, k=5, s=3, p=1); im2col hoisted to wrapper -> one dot ---
    x = jnp.dot(w0_ref[...], xcol_ref[...],
                preferred_element_type=jnp.float32) + b0_ref[...]   # (C, B*L1) f32
    x = batchnorm(x, 0)                                             # bn1

    # --- 3 residual blocks ---
    for i in range(3):
        h = elu(batchnorm(conv3(x, 2 * i), 1 + 2 * i))
        h = batchnorm(conv3(h, 2 * i + 1), 2 + 2 * i)
        x = elu(h + x)

    # --- MaxPool1d(2): pairwise max with the right neighbour.  Only even positions are
    # picked up by fc1 (odd rows of the expanded weight are zero), so no stride-2 reads.
    m = jnp.maximum(x, shift_next(x))                                # (C, B*L1)

    # --- relayout (C, B*L1) -> (B, C*CP) flat slab for the single fc1 matmul.
    # Per-channel destination blocks are 128-aligned, so every store is an unrotated,
    # width-62 masked store; batch-1 lanes are realigned once via a single value slice.
    flat_scr[...] = jnp.zeros((B, C * CP), jnp.float32)              # keep unused lanes finite
    m_lo = m[:, 0:L1]                                                # (C, L1) batch 0
    m_hi = m[:, L1:BL]                                               # (C, L1) batch 1
    for c in range(C):
        flat_scr[0:1, c * CP:c * CP + L1] = m_lo[c:c + 1, :]
        flat_scr[1:2, c * CP:c * CP + L1] = m_hi[c:c + 1, :]

    # --- fc1 + ELU + fc2 + sigmoid ---
    h1 = jnp.dot(flat_scr[...].astype(jnp.bfloat16), wf1_ref[...],
                 preferred_element_type=jnp.float32) + bf1_ref[...]  # (B, H1)
    h1 = elu(h1)
    z = jnp.dot(h1.astype(jnp.bfloat16), wf2_ref[...],
                preferred_element_type=jnp.float32) + bf2_ref[...]   # (B, 1)
    out_ref[...] = 1.0 / (1.0 + jnp.exp(-z))


def init_params(key):
    ks = jax.random.split(key, 10)

    def u(k, shape, fan_in):
        bound = 1.0 / jnp.sqrt(float(fan_in))
        return jax.random.uniform(k, shape, jnp.float32, -bound, bound)

    p = {}
    p["conv1_w"] = u(ks[0], (C, 1, K1), 1 * K1)
    p["conv1_b"] = u(ks[1], (C,), 1 * K1)
    # 7 BatchNorms: bn1 + 2 per ResBlock (x3)
    p["bn_gamma"] = 1.0 + 0.1 * jax.random.normal(ks[2], (7, C), jnp.float32)
    p["bn_beta"] = 0.1 * jax.random.normal(ks[3], (7, C), jnp.float32)
    # 6 ResBlock convs: Conv1d(24, 24, 3, 1, 1)
    p["res_w"] = u(ks[4], (6, C, C, 3), C * 3)
    p["res_b"] = u(ks[5], (6, C), C * 3)
    p["fc1_w"] = u(ks[6], (H1, C * LP), C * LP)
    p["fc1_b"] = u(ks[7], (H1,), C * LP)
    p["fc2_w"] = u(ks[8], (1, H1), H1)
    p["fc2_b"] = u(ks[9], (1,), H1)
    return p


def rescnn_forward(x, p):
    # x: (B, 1, L_IN) float32 in NCL layout.
    xb = x[:, 0, :]
    xpad = jnp.pad(xb, ((0, 0), (1, 1)))                             # conv1 padding=1
    # stride-3 im2col for conv1, hoisted out of the kernel (strided slicing stays in XLA).
    cols = jnp.stack([xpad[:, k:k + 3 * L1:3] for k in range(K1)], axis=0)  # (K1, B, L1)
    xcol = cols.reshape(K1, BL).astype(jnp.bfloat16)                 # batch folded into lanes

    w0 = p["conv1_w"].reshape(C, K1).astype(jnp.bfloat16)
    b0 = p["conv1_b"].reshape(C, 1)
    gam = p["bn_gamma"].reshape(7, C, 1)
    bet = p["bn_beta"].reshape(7, C, 1)
    # (6, Cout, Cin, K) -> (6, Cout, K*Cin): columns [k*C + ci] match the tap stack order
    # [prev, center, next] built in the kernel.
    wrf = jnp.transpose(p["res_w"], (0, 1, 3, 2)).reshape(6, C, 3 * C).astype(jnp.bfloat16)
    br = p["res_b"].reshape(6, C, 1)

    # fc1 weight expanded to (C*CP, H1): row c*CP + 2p carries fc1_w[:, c*LP + p]; odd and
    # tail (>= 2*LP) rows are zero -> MaxPool even-position selection + the 128-aligned
    # flat-slab layout are both folded into the matmul weight.
    wf1_r = jnp.transpose(p["fc1_w"].reshape(H1, C, LP), (1, 2, 0))  # (C, LP, H1)
    wbig = jnp.zeros((C, CP, H1), jnp.float32).at[:, 0:2 * LP:2, :].set(wf1_r)
    wf1 = wbig.reshape(C * CP, H1).astype(jnp.bfloat16)              # (3072, 128)
    bf1 = p["fc1_b"].reshape(1, H1)
    wf2 = jnp.transpose(p["fc2_w"]).astype(jnp.bfloat16)             # (H1, 1)
    bf2 = p["fc2_b"].reshape(1, 1)

    vmem = pl.BlockSpec(memory_space=pltpu.MemorySpace.VMEM)
    out = pl.pallas_call(
        rescnn_kernel,
        out_shape=jax.ShapeDtypeStruct((x.shape[0], 1), jnp.float32),
        in_specs=[vmem] * 11,
        out_specs=vmem,
        scratch_shapes=[pltpu.VMEM((B, C * CP), jnp.float32)],       # fc1 flatten slab
    )(xcol, w0, b0, gam, bet, wrf, br, wf1, bf1, wf2, bf2)
    return out


if __name__ == "__main__":
    key = jax.random.PRNGKey(0)
    kx, kp = jax.random.split(key)
    x = jax.random.normal(kx, (B, 1, L_IN), jnp.float32)
    params = init_params(kp)

    out = jax.jit(rescnn_forward)(x, params)
    out = jax.block_until_ready(out)

    assert out.shape == (B, 1), out.shape
    assert bool(jnp.all(jnp.isfinite(out)))
    assert bool(jnp.all((out >= 0.0) & (out <= 1.0)))
    print("KERNEL_OK")
</pallas_src>

<mosaic_0001>
module attributes {stable_mosaic.version = 11 : i64} {
  func.func @rescnn_kernel(%arg0: memref<5x124xbf16, #tpu.memory_space<vmem>>, %arg1: memref<24x5xbf16, #tpu.memory_space<vmem>>, %arg2: memref<24x1xf32, #tpu.memory_space<vmem>>, %arg3: memref<7x24x1xf32, #tpu.memory_space<vmem>>, %arg4: memref<7x24x1xf32, #tpu.memory_space<vmem>>, %arg5: memref<6x24x72xbf16, #tpu.memory_space<vmem>>, %arg6: memref<6x24x1xf32, #tpu.memory_space<vmem>>, %arg7: memref<3072x128xbf16, #tpu.memory_space<vmem>>, %arg8: memref<1x128xf32, #tpu.memory_space<vmem>>, %arg9: memref<128x1xbf16, #tpu.memory_space<vmem>>, %arg10: memref<1x1xf32, #tpu.memory_space<vmem>>, %arg11: memref<2x1xf32, #tpu.memory_space<vmem>>, %arg12: memref<2x3072xf32, #tpu.memory_space<vmem>>) attributes {dimension_semantics = [], scalar_prefetch = 0 : i64, scratch_operands = 1 : i64, tpu.core_type = #tpu.core_type<tc>} {
    %0 = tpu.iota {dimensions = array<i32: 1>} : vector<24x124xi32>
    %c0_i32 = arith.constant 0 : i32
    %1 = vector.broadcast %c0_i32 : i32 to vector<24x124xi32>
    %2 = arith.cmpi ne, %0, %1 : vector<24x124xi32>
    %c62_i32 = arith.constant 62 : i32
    %3 = vector.broadcast %c62_i32 : i32 to vector<24x124xi32>
    %4 = arith.cmpi ne, %0, %3 : vector<24x124xi32>
    %5 = arith.andi %2, %4 : vector<24x124xi1>
    %c61_i32 = arith.constant 61 : i32
    %6 = vector.broadcast %c61_i32 : i32 to vector<24x124xi32>
    %7 = arith.cmpi ne, %0, %6 : vector<24x124xi32>
    %c123_i32 = arith.constant 123 : i32
    %8 = vector.broadcast %c123_i32 : i32 to vector<24x124xi32>
    %9 = arith.cmpi ne, %0, %8 : vector<24x124xi32>
    %10 = arith.andi %7, %9 : vector<24x124xi1>
    %cst = arith.constant 0.000000e+00 : f32
    %11 = vector.broadcast %cst : f32 to vector<24x1xf32>
    %c0 = arith.constant 0 : index
    %c0_0 = arith.constant 0 : index
    %12 = vector.load %arg1[%c0, %c0_0] : memref<24x5xbf16, #tpu.memory_space<vmem>>, vector<24x5xbf16>
    %c0_1 = arith.constant 0 : index
    %c0_2 = arith.constant 0 : index
    %13 = vector.load %arg0[%c0_1, %c0_2] : memref<5x124xbf16, #tpu.memory_space<vmem>>, vector<5x124xbf16>
    %cst_3 = arith.constant dense<0.000000e+00> : vector<24x124xf32>
    %14 = tpu.matmul %12, %13, %cst_3 {dimension_numbers = #tpu.dot_dimension_numbers<[1], [0], [0], [1], [0, 0, 1, 1], [], []>} : vector<24x5xbf16>, vector<5x124xbf16>, vector<24x124xf32> -> vector<24x124xf32>
    %c0_4 = arith.constant 0 : index
    %c0_5 = arith.constant 0 : index
    %15 = vector.load %arg2[%c0_4, %c0_5] : memref<24x1xf32, #tpu.memory_space<vmem>>, vector<24x1xf32>
    %16 = vector.broadcast %15 : vector<24x1xf32> to vector<24x124xf32>
    %17 = arith.addf %14, %16 : vector<24x124xf32>
    %cst_6 = arith.constant dense<0.000000e+00> : vector<24xf32>
    %18 = vector.multi_reduction <add>, %17, %cst_6 [1] : vector<24x124xf32> to vector<24xf32>
    %19 = vector.shape_cast %18 : vector<24xf32> to vector<24x1xf32>
    %cst_7 = arith.constant 0.00806451589 : f32
    %20 = vector.broadcast %cst_7 : f32 to vector<24x1xf32>
    %21 = arith.mulf %19, %20 : vector<24x1xf32>
    %22 = vector.broadcast %21 : vector<24x1xf32> to vector<24x124xf32>
    %23 = arith.subf %17, %22 : vector<24x124xf32>
    %24 = arith.mulf %23, %23 : vector<24x124xf32>
    %cst_8 = arith.constant dense<0.000000e+00> : vector<24xf32>
    %25 = vector.multi_reduction <add>, %24, %cst_8 [1] : vector<24x124xf32> to vector<24xf32>
    %26 = vector.shape_cast %25 : vector<24xf32> to vector<24x1xf32>
    %cst_9 = arith.constant 0.00806451589 : f32
    %27 = vector.broadcast %cst_9 : f32 to vector<24x1xf32>
    %28 = arith.mulf %26, %27 : vector<24x1xf32>
    %c0_10 = arith.constant 0 : index
    %c0_11 = arith.constant 0 : index
    %c0_12 = arith.constant 0 : index
    %29 = vector.load %arg3[%c0_10, %c0_11, %c0_12] : memref<7x24x1xf32, #tpu.memory_space<vmem>>, vector<1x24x1xf32>
    %30 = vector.shape_cast %29 : vector<1x24x1xf32> to vector<24x1xf32>
    %cst_13 = arith.constant 9.99999974E-6 : f32
    %31 = vector.broadcast %cst_13 : f32 to vector<24x1xf32>
    %32 = arith.addf %28, %31 : vector<24x1xf32>
    %33 = math.rsqrt %32 : vector<24x1xf32>
    %34 = arith.mulf %30, %33 : vector<24x1xf32>
    %35 = vector.broadcast %34 : vector<24x1xf32> to vector<24x124xf32>
    %36 = arith.mulf %23, %35 : vector<24x124xf32>
    %c0_14 = arith.constant 0 : index
    %c0_15 = arith.constant 0 : index
    %c0_16 = arith.constant 0 : index
    %37 = vector.load %arg4[%c0_14, %c0_15, %c0_16] : memref<7x24x1xf32, #tpu.memory_space<vmem>>, vector<1x24x1xf32>
    %38 = vector.shape_cast %37 : vector<1x24x1xf32> to vector<24x1xf32>
    %39 = vector.broadcast %38 : vector<24x1xf32> to vector<24x124xf32>
    %40 = arith.addf %36, %39 : vector<24x124xf32>
    %41 = vector.extract_strided_slice %40 {offsets = [0, 0], sizes = [24, 123], strides = [1, 1]} : vector<24x124xf32> to vector<24x123xf32>
    %42 = tpu.concatenate %11, %41 in 1 : vector<24x1xf32>, vector<24x123xf32> -> vector<24x124xf32>
    %cst_17 = arith.constant 0.000000e+00 : f32
    %43 = vector.broadcast %cst_17 : f32 to vector<24x124xf32>
    %44 = arith.select %5, %42, %43 : vector<24x124xi1>, vector<24x124xf32>
    %45 = vector.extract_strided_slice %40 {offsets = [0, 1], sizes = [24, 123], strides = [1, 1]} : vector<24x124xf32> to vector<24x123xf32>
    %46 = tpu.concatenate %45, %11 in 1 : vector<24x123xf32>, vector<24x1xf32> -> vector<24x124xf32>
    %cst_18 = arith.constant 0.000000e+00 : f32
    %47 = vector.broadcast %cst_18 : f32 to vector<24x124xf32>
    %48 = arith.select %10, %46, %47 : vector<24x124xi1>, vector<24x124xf32>
    %49 = tpu.concatenate %44, %40, %48 in 0 : vector<24x124xf32>, vector<24x124xf32>, vector<24x124xf32> -> vector<72x124xf32>
    %c0_19 = arith.constant 0 : index
    %c0_20 = arith.constant 0 : index
    %c0_21 = arith.constant 0 : index
    %50 = vector.load %arg5[%c0_19, %c0_20, %c0_21] : memref<6x24x72xbf16, #tpu.memory_space<vmem>>, vector<1x24x72xbf16>
    %51 = vector.shape_cast %50 : vector<1x24x72xbf16> to vector<24x72xbf16>
    %52 = arith.truncf %49 : vector<72x124xf32> to vector<72x124xbf16>
    %cst_22 = arith.constant dense<0.000000e+00> : vector<24x124xf32>
    %53 = tpu.matmul %51, %52, %cst_22 {dimension_numbers = #tpu.dot_dimension_numbers<[1], [0], [0], [1], [0, 0, 1, 1], [], []>} : vector<24x72xbf16>, vector<72x124xbf16>, vector<24x124xf32> -> vector<24x124xf32>
    %c0_23 = arith.constant 0 : index
    %c0_24 = arith.constant 0 : index
    %c0_25 = arith.constant 0 : index
    %54 = vector.load %arg6[%c0_23, %c0_24, %c0_25] : memref<6x24x1xf32, #tpu.memory_space<vmem>>, vector<1x24x1xf32>
    %55 = vector.shape_cast %54 : vector<1x24x1xf32> to vector<24x1xf32>
    %56 = vector.broadcast %55 : vector<24x1xf32> to vector<24x124xf32>
    %57 = arith.addf %53, %56 : vector<24x124xf32>
    %cst_26 = arith.constant dense<0.000000e+00> : vector<24xf32>
    %58 = vector.multi_reduction <add>, %57, %cst_26 [1] : vector<24x124xf32> to vector<24xf32>
    %59 = vector.shape_cast %58 : vector<24xf32> to vector<24x1xf32>
    %cst_27 = arith.constant 0.00806451589 : f32
    %60 = vector.broadcast %cst_27 : f32 to vector<24x1xf32>
    %61 = arith.mulf %59, %60 : vector<24x1xf32>
    %62 = vector.broadcast %61 : vector<24x1xf32> to vector<24x124xf32>
    %63 = arith.subf %57, %62 : vector<24x124xf32>
    %64 = arith.mulf %63, %63 : vector<24x124xf32>
    %cst_28 = arith.constant dense<0.000000e+00> : vector<24xf32>
    %65 = vector.multi_reduction <add>, %64, %cst_28 [1] : vector<24x124xf32> to vector<24xf32>
    %66 = vector.shape_cast %65 : vector<24xf32> to vector<24x1xf32>
    %cst_29 = arith.constant 0.00806451589 : f32
    %67 = vector.broadcast %cst_29 : f32 to vector<24x1xf32>
    %68 = arith.mulf %66, %67 : vector<24x1xf32>
    %c1 = arith.constant 1 : index
    %c0_30 = arith.constant 0 : index
    %c0_31 = arith.constant 0 : index
    %69 = vector.load %arg3[%c1, %c0_30, %c0_31] : memref<7x24x1xf32, #tpu.memory_space<vmem>>, vector<1x24x1xf32>
    %70 = vector.shape_cast %69 : vector<1x24x1xf32> to vector<24x1xf32>
    %cst_32 = arith.constant 9.99999974E-6 : f32
    %71 = vector.broadcast %cst_32 : f32 to vector<24x1xf32>
    %72 = arith.addf %68, %71 : vector<24x1xf32>
    %73 = math.rsqrt %72 : vector<24x1xf32>
    %74 = arith.mulf %70, %73 : vector<24x1xf32>
    %75 = vector.broadcast %74 : vector<24x1xf32> to vector<24x124xf32>
    %76 = arith.mulf %63, %75 : vector<24x124xf32>
    %c1_33 = arith.constant 1 : index
    %c0_34 = arith.constant 0 : index
    %c0_35 = arith.constant 0 : index
    %77 = vector.load %arg4[%c1_33, %c0_34, %c0_35] : memref<7x24x1xf32, #tpu.memory_space<vmem>>, vector<1x24x1xf32>
    %78 = vector.shape_cast %77 : vector<1x24x1xf32> to vector<24x1xf32>
    %79 = vector.broadcast %78 : vector<24x1xf32> to vector<24x124xf32>
    %80 = arith.addf %76, %79 : vector<24x124xf32>
    %cst_36 = arith.constant 0.000000e+00 : f32
    %81 = vector.broadcast %cst_36 : f32 to vector<24x124xf32>
    %82 = arith.cmpf ogt, %80, %81 : vector<24x124xf32>
    %cst_37 = arith.constant 0.000000e+00 : f32
    %83 = vector.broadcast %cst_37 : f32 to vector<24x124xf32>
    %84 = arith.minimumf %80, %83 : vector<24x124xf32>
    %85 = math.exp %84 : vector<24x124xf32>
    %cst_38 = arith.constant 1.000000e+00 : f32
    %86 = vector.broadcast %cst_38 : f32 to vector<24x124xf32>
    %87 = arith.subf %85, %86 : vector<24x124xf32>
    %88 = arith.select %82, %80, %87 : vector<24x124xi1>, vector<24x124xf32>
    %89 = vector.extract_strided_slice %88 {offsets = [0, 0], sizes = [24, 123], strides = [1, 1]} : vector<24x124xf32> to vector<24x123xf32>
    %90 = tpu.concatenate %11, %89 in 1 : vector<24x1xf32>, vector<24x123xf32> -> vector<24x124xf32>
    %cst_39 = arith.constant 0.000000e+00 : f32
    %91 = vector.broadcast %cst_39 : f32 to vector<24x124xf32>
    %92 = arith.select %5, %90, %91 : vector<24x124xi1>, vector<24x124xf32>
    %93 = vector.extract_strided_slice %88 {offsets = [0, 1], sizes = [24, 123], strides = [1, 1]} : vector<24x124xf32> to vector<24x123xf32>
    %94 = tpu.concatenate %93, %11 in 1 : vector<24x123xf32>, vector<24x1xf32> -> vector<24x124xf32>
    %cst_40 = arith.constant 0.000000e+00 : f32
    %95 = vector.broadcast %cst_40 : f32 to vector<24x124xf32>
    %96 = arith.select %10, %94, %95 : vector<24x124xi1>, vector<24x124xf32>
    %97 = tpu.concatenate %92, %88, %96 in 0 : vector<24x124xf32>, vector<24x124xf32>, vector<24x124xf32> -> vector<72x124xf32>
    %c1_41 = arith.constant 1 : index
    %c0_42 = arith.constant 0 : index
    %c0_43 = arith.constant 0 : index
    %98 = vector.load %arg5[%c1_41, %c0_42, %c0_43] : memref<6x24x72xbf16, #tpu.memory_space<vmem>>, vector<1x24x72xbf16>
    %99 = vector.shape_cast %98 : vector<1x24x72xbf16> to vector<24x72xbf16>
    %100 = arith.truncf %97 : vector<72x124xf32> to vector<72x124xbf16>
    %cst_44 = arith.constant dense<0.000000e+00> : vector<24x124xf32>
    %101 = tpu.matmul %99, %100, %cst_44 {dimension_numbers = #tpu.dot_dimension_numbers<[1], [0], [0], [1], [0, 0, 1, 1], [], []>} : vector<24x72xbf16>, vector<72x124xbf16>, vector<24x124xf32> -> vector<24x124xf32>
    %c1_45 = arith.constant 1 : index
    %c0_46 = arith.constant 0 : index
    %c0_47 = arith.constant 0 : index
    %102 = vector.load %arg6[%c1_45, %c0_46, %c0_47] : memref<6x24x1xf32, #tpu.memory_space<vmem>>, vector<1x24x1xf32>
    %103 = vector.shape_cast %102 : vector<1x24x1xf32> to vector<24x1xf32>
    %104 = vector.broadcast %103 : vector<24x1xf32> to vector<24x124xf32>
    %105 = arith.addf %101, %104 : vector<24x124xf32>
    %cst_48 = arith.constant dense<0.000000e+00> : vector<24xf32>
    %106 = vector.multi_reduction <add>, %105, %cst_48 [1] : vector<24x124xf32> to vector<24xf32>
    %107 = vector.shape_cast %106 : vector<24xf32> to vector<24x1xf32>
    %cst_49 = arith.constant 0.00806451589 : f32
    %108 = vector.broadcast %cst_49 : f32 to vector<24x1xf32>
    %109 = arith.mulf %107, %108 : vector<24x1xf32>
    %110 = vector.broadcast %109 : vector<24x1xf32> to vector<24x124xf32>
    %111 = arith.subf %105, %110 : vector<24x124xf32>
    %112 = arith.mulf %111, %111 : vector<24x124xf32>
    %cst_50 = arith.constant dense<0.000000e+00> : vector<24xf32>
    %113 = vector.multi_reduction <add>, %112, %cst_50 [1] : vector<24x124xf32> to vector<24xf32>
    %114 = vector.shape_cast %113 : vector<24xf32> to vector<24x1xf32>
    %cst_51 = arith.constant 0.00806451589 : f32
    %115 = vector.broadcast %cst_51 : f32 to vector<24x1xf32>
    %116 = arith.mulf %114, %115 : vector<24x1xf32>
    %c2 = arith.constant 2 : index
    %c0_52 = arith.constant 0 : index
    %c0_53 = arith.constant 0 : index
    %117 = vector.load %arg3[%c2, %c0_52, %c0_53] : memref<7x24x1xf32, #tpu.memory_space<vmem>>, vector<1x24x1xf32>
    %118 = vector.shape_cast %117 : vector<1x24x1xf32> to vector<24x1xf32>
    %cst_54 = arith.constant 9.99999974E-6 : f32
    %119 = vector.broadcast %cst_54 : f32 to vector<24x1xf32>
    %120 = arith.addf %116, %119 : vector<24x1xf32>
    %121 = math.rsqrt %120 : vector<24x1xf32>
    %122 = arith.mulf %118, %121 : vector<24x1xf32>
    %123 = vector.broadcast %122 : vector<24x1xf32> to vector<24x124xf32>
    %124 = arith.mulf %111, %123 : vector<24x124xf32>
    %c2_55 = arith.constant 2 : index
    %c0_56 = arith.constant 0 : index
    %c0_57 = arith.constant 0 : index
    %125 = vector.load %arg4[%c2_55, %c0_56, %c0_57] : memref<7x24x1xf32, #tpu.memory_space<vmem>>, vector<1x24x1xf32>
    %126 = vector.shape_cast %125 : vector<1x24x1xf32> to vector<24x1xf32>
    %127 = vector.broadcast %126 : vector<24x1xf32> to vector<24x124xf32>
    %128 = arith.addf %124, %127 : vector<24x124xf32>
    %129 = arith.addf %128, %40 : vector<24x124xf32>
    %cst_58 = arith.constant 0.000000e+00 : f32
    %130 = vector.broadcast %cst_58 : f32 to vector<24x124xf32>
    %131 = arith.cmpf ogt, %129, %130 : vector<24x124xf32>
    %cst_59 = arith.constant 0.000000e+00 : f32
    %132 = vector.broadcast %cst_59 : f32 to vector<24x124xf32>
    %133 = arith.minimumf %129, %132 : vector<24x124xf32>
    %134 = math.exp %133 : vector<24x124xf32>
    %cst_60 = arith.constant 1.000000e+00 : f32
    %135 = vector.broadcast %cst_60 : f32 to vector<24x124xf32>
    %136 = arith.subf %134, %135 : vector<24x124xf32>
    %137 = arith.select %131, %129, %136 : vector<24x124xi1>, vector<24x124xf32>
    %138 = vector.extract_strided_slice %137 {offsets = [0, 0], sizes = [24, 123], strides = [1, 1]} : vector<24x124xf32> to vector<24x123xf32>
    %139 = tpu.concatenate %11, %138 in 1 : vector<24x1xf32>, vector<24x123xf32> -> vector<24x124xf32>
    %cst_61 = arith.constant 0.000000e+00 : f32
    %140 = vector.broadcast %cst_61 : f32 to vector<24x124xf32>
    %141 = arith.select %5, %139, %140 : vector<24x124xi1>, vector<24x124xf32>
    %142 = vector.extract_strided_slice %137 {offsets = [0, 1], sizes = [24, 123], strides = [1, 1]} : vector<24x124xf32> to vector<24x123xf32>
    %143 = tpu.concatenate %142, %11 in 1 : vector<24x123xf32>, vector<24x1xf32> -> vector<24x124xf32>
    %cst_62 = arith.constant 0.000000e+00 : f32
    %144 = vector.broadcast %cst_62 : f32 to vector<24x124xf32>
    %145 = arith.select %10, %143, %144 : vector<24x124xi1>, vector<24x124xf32>
    %146 = tpu.concatenate %141, %137, %145 in 0 : vector<24x124xf32>, vector<24x124xf32>, vector<24x124xf32> -> vector<72x124xf32>
    %c2_63 = arith.constant 2 : index
    %c0_64 = arith.constant 0 : index
    %c0_65 = arith.constant 0 : index
    %147 = vector.load %arg5[%c2_63, %c0_64, %c0_65] : memref<6x24x72xbf16, #tpu.memory_space<vmem>>, vector<1x24x72xbf16>
    %148 = vector.shape_cast %147 : vector<1x24x72xbf16> to vector<24x72xbf16>
    %149 = arith.truncf %146 : vector<72x124xf32> to vector<72x124xbf16>
    %cst_66 = arith.constant dense<0.000000e+00> : vector<24x124xf32>
    %150 = tpu.matmul %148, %149, %cst_66 {dimension_numbers = #tpu.dot_dimension_numbers<[1], [0], [0], [1], [0, 0, 1, 1], [], []>} : vector<24x72xbf16>, vector<72x124xbf16>, vector<24x124xf32> -> vector<24x124xf32>
    %c2_67 = arith.constant 2 : index
    %c0_68 = arith.constant 0 : index
    %c0_69 = arith.constant 0 : index
    %151 = vector.load %arg6[%c2_67, %c0_68, %c0_69] : memref<6x24x1xf32, #tpu.memory_space<vmem>>, vector<1x24x1xf32>
    %152 = vector.shape_cast %151 : vector<1x24x1xf32> to vector<24x1xf32>
    %153 = vector.broadcast %152 : vector<24x1xf32> to vector<24x124xf32>
    %154 = arith.addf %150, %153 : vector<24x124xf32>
    %cst_70 = arith.constant dense<0.000000e+00> : vector<24xf32>
    %155 = vector.multi_reduction <add>, %154, %cst_70 [1] : vector<24x124xf32> to vector<24xf32>
    %156 = vector.shape_cast %155 : vector<24xf32> to vector<24x1xf32>
    %cst_71 = arith.constant 0.00806451589 : f32
    %157 = vector.broadcast %cst_71 : f32 to vector<24x1xf32>
    %158 = arith.mulf %156, %157 : vector<24x1xf32>
    %159 = vector.broadcast %158 : vector<24x1xf32> to vector<24x124xf32>
    %160 = arith.subf %154, %159 : vector<24x124xf32>
    %161 = arith.mulf %160, %160 : vector<24x124xf32>
    %cst_72 = arith.constant dense<0.000000e+00> : vector<24xf32>
    %162 = vector.multi_reduction <add>, %161, %cst_72 [1] : vector<24x124xf32> to vector<24xf32>
    %163 = vector.shape_cast %162 : vector<24xf32> to vector<24x1xf32>
    %cst_73 = arith.constant 0.00806451589 : f32
    %164 = vector.broadcast %cst_73 : f32 to vector<24x1xf32>
    %165 = arith.mulf %163, %164 : vector<24x1xf32>
    %c3 = arith.constant 3 : index
    %c0_74 = arith.constant 0 : index
    %c0_75 = arith.constant 0 : index
    %166 = vector.load %arg3[%c3, %c0_74, %c0_75] : memref<7x24x1xf32, #tpu.memory_space<vmem>>, vector<1x24x1xf32>
    %167 = vector.shape_cast %166 : vector<1x24x1xf32> to vector<24x1xf32>
    %cst_76 = arith.constant 9.99999974E-6 : f32
    %168 = vector.broadcast %cst_76 : f32 to vector<24x1xf32>
    %169 = arith.addf %165, %168 : vector<24x1xf32>
    %170 = math.rsqrt %169 : vector<24x1xf32>
    %171 = arith.mulf %167, %170 : vector<24x1xf32>
    %172 = vector.broadcast %171 : vector<24x1xf32> to vector<24x124xf32>
    %173 = arith.mulf %160, %172 : vector<24x124xf32>
    %c3_77 = arith.constant 3 : index
    %c0_78 = arith.constant 0 : index
    %c0_79 = arith.constant 0 : index
    %174 = vector.load %arg4[%c3_77, %c0_78, %c0_79] : memref<7x24x1xf32, #tpu.memory_space<vmem>>, vector<1x24x1xf32>
    %175 = vector.shape_cast %174 : vector<1x24x1xf32> to vector<24x1xf32>
    %176 = vector.broadcast %175 : vector<24x1xf32> to vector<24x124xf32>
    %177 = arith.addf %173, %176 : vector<24x124xf32>
    %cst_80 = arith.constant 0.000000e+00 : f32
    %178 = vector.broadcast %cst_80 : f32 to vector<24x124xf32>
    %179 = arith.cmpf ogt, %177, %178 : vector<24x124xf32>
    %cst_81 = arith.constant 0.000000e+00 : f32
    %180 = vector.broadcast %cst_81 : f32 to vector<24x124xf32>
    %181 = arith.minimumf %177, %180 : vector<24x124xf32>
    %182 = math.exp %181 : vector<24x124xf32>
    %cst_82 = arith.constant 1.000000e+00 : f32
    %183 = vector.broadcast %cst_82 : f32 to vector<24x124xf32>
    %184 = arith.subf %182, %183 : vector<24x124xf32>
    %185 = arith.select %179, %177, %184 : vector<24x124xi1>, vector<24x124xf32>
    %186 = vector.extract_strided_slice %185 {offsets = [0, 0], sizes = [24, 123], strides = [1, 1]} : vector<24x124xf32> to vector<24x123xf32>
    %187 = tpu.concatenate %11, %186 in 1 : vector<24x1xf32>, vector<24x123xf32> -> vector<24x124xf32>
    %cst_83 = arith.constant 0.000000e+00 : f32
    %188 = vector.broadcast %cst_83 : f32 to vector<24x124xf32>
    %189 = arith.select %5, %187, %188 : vector<24x124xi1>, vector<24x124xf32>
    %190 = vector.extract_strided_slice %185 {offsets = [0, 1], sizes = [24, 123], strides = [1, 1]} : vector<24x124xf32> to vector<24x123xf32>
    %191 = tpu.concatenate %190, %11 in 1 : vector<24x123xf32>, vector<24x1xf32> -> vector<24x124xf32>
    %cst_84 = arith.constant 0.000000e+00 : f32
    %192 = vector.broadcast %cst_84 : f32 to vector<24x124xf32>
    %193 = arith.select %10, %191, %192 : vector<24x124xi1>, vector<24x124xf32>
    %194 = tpu.concatenate %189, %185, %193 in 0 : vector<24x124xf32>, vector<24x124xf32>, vector<24x124xf32> -> vector<72x124xf32>
    %c3_85 = arith.constant 3 : index
    %c0_86 = arith.constant 0 : index
    %c0_87 = arith.constant 0 : index
    %195 = vector.load %arg5[%c3_85, %c0_86, %c0_87] : memref<6x24x72xbf16, #tpu.memory_space<vmem>>, vector<1x24x72xbf16>
    %196 = vector.shape_cast %195 : vector<1x24x72xbf16> to vector<24x72xbf16>
    %197 = arith.truncf %194 : vector<72x124xf32> to vector<72x124xbf16>
    %cst_88 = arith.constant dense<0.000000e+00> : vector<24x124xf32>
    %198 = tpu.matmul %196, %197, %cst_88 {dimension_numbers = #tpu.dot_dimension_numbers<[1], [0], [0], [1], [0, 0, 1, 1], [], []>} : vector<24x72xbf16>, vector<72x124xbf16>, vector<24x124xf32> -> vector<24x124xf32>
    %c3_89 = arith.constant 3 : index
    %c0_90 = arith.constant 0 : index
    %c0_91 = arith.constant 0 : index
    %199 = vector.load %arg6[%c3_89, %c0_90, %c0_91] : memref<6x24x1xf32, #tpu.memory_space<vmem>>, vector<1x24x1xf32>
    %200 = vector.shape_cast %199 : vector<1x24x1xf32> to vector<24x1xf32>
    %201 = vector.broadcast %200 : vector<24x1xf32> to vector<24x124xf32>
    %202 = arith.addf %198, %201 : vector<24x124xf32>
    %cst_92 = arith.constant dense<0.000000e+00> : vector<24xf32>
    %203 = vector.multi_reduction <add>, %202, %cst_92 [1] : vector<24x124xf32> to vector<24xf32>
    %204 = vector.shape_cast %203 : vector<24xf32> to vector<24x1xf32>
    %cst_93 = arith.constant 0.00806451589 : f32
    %205 = vector.broadcast %cst_93 : f32 to vector<24x1xf32>
    %206 = arith.mulf %204, %205 : vector<24x1xf32>
    %207 = vector.broadcast %206 : vector<24x1xf32> to vector<24x124xf32>
    %208 = arith.subf %202, %207 : vector<24x124xf32>
    %209 = arith.mulf %208, %208 : vector<24x124xf32>
    %cst_94 = arith.constant dense<0.000000e+00> : vector<24xf32>
    %210 = vector.multi_reduction <add>, %209, %cst_94 [1] : vector<24x124xf32> to vector<24xf32>
    %211 = vector.shape_cast %210 : vector<24xf32> to vector<24x1xf32>
    %cst_95 = arith.constant 0.00806451589 : f32
    %212 = vector.broadcast %cst_95 : f32 to vector<24x1xf32>
    %213 = arith.mulf %211, %212 : vector<24x1xf32>
    %c4 = arith.constant 4 : index
    %c0_96 = arith.constant 0 : index
    %c0_97 = arith.constant 0 : index
    %214 = vector.load %arg3[%c4, %c0_96, %c0_97] : memref<7x24x1xf32, #tpu.memory_space<vmem>>, vector<1x24x1xf32>
    %215 = vector.shape_cast %214 : vector<1x24x1xf32> to vector<24x1xf32>
    %cst_98 = arith.constant 9.99999974E-6 : f32
    %216 = vector.broadcast %cst_98 : f32 to vector<24x1xf32>
    %217 = arith.addf %213, %216 : vector<24x1xf32>
    %218 = math.rsqrt %217 : vector<24x1xf32>
    %219 = arith.mulf %215, %218 : vector<24x1xf32>
    %220 = vector.broadcast %219 : vector<24x1xf32> to vector<24x124xf32>
    %221 = arith.mulf %208, %220 : vector<24x124xf32>
    %c4_99 = arith.constant 4 : index
    %c0_100 = arith.constant 0 : index
    %c0_101 = arith.constant 0 : index
    %222 = vector.load %arg4[%c4_99, %c0_100, %c0_101] : memref<7x24x1xf32, #tpu.memory_space<vmem>>, vector<1x24x1xf32>
    %223 = vector.shape_cast %222 : vector<1x24x1xf32> to vector<24x1xf32>
    %224 = vector.broadcast %223 : vector<24x1xf32> to vector<24x124xf32>
    %225 = arith.addf %221, %224 : vector<24x124xf32>
    %226 = arith.addf %225, %137 : vector<24x124xf32>
    %cst_102 = arith.constant 0.000000e+00 : f32
    %227 = vector.broadcast %cst_102 : f32 to vector<24x124xf32>
    %228 = arith.cmpf ogt, %226, %227 : vector<24x124xf32>
    %cst_103 = arith.constant 0.000000e+00 : f32
    %229 = vector.broadcast %cst_103 : f32 to vector<24x124xf32>
    %230 = arith.minimumf %226, %229 : vector<24x124xf32>
    %231 = math.exp %230 : vector<24x124xf32>
    %cst_104 = arith.constant 1.000000e+00 : f32
    %232 = vector.broadcast %cst_104 : f32 to vector<24x124xf32>
    %233 = arith.subf %231, %232 : vector<24x124xf32>
    %234 = arith.select %228, %226, %233 : vector<24x124xi1>, vector<24x124xf32>
    %235 = vector.extract_strided_slice %234 {offsets = [0, 0], sizes = [24, 123], strides = [1, 1]} : vector<24x124xf32> to vector<24x123xf32>
    %236 = tpu.concatenate %11, %235 in 1 : vector<24x1xf32>, vector<24x123xf32> -> vector<24x124xf32>
    %cst_105 = arith.constant 0.000000e+00 : f32
    %237 = vector.broadcast %cst_105 : f32 to vector<24x124xf32>
    %238 = arith.select %5, %236, %237 : vector<24x124xi1>, vector<24x124xf32>
    %239 = vector.extract_strided_slice %234 {offsets = [0, 1], sizes = [24, 123], strides = [1, 1]} : vector<24x124xf32> to vector<24x123xf32>
    %240 = tpu.concatenate %239, %11 in 1 : vector<24x123xf32>, vector<24x1xf32> -> vector<24x124xf32>
    %cst_106 = arith.constant 0.000000e+00 : f32
    %241 = vector.broadcast %cst_106 : f32 to vector<24x124xf32>
    %242 = arith.select %10, %240, %241 : vector<24x124xi1>, vector<24x124xf32>
    %243 = tpu.concatenate %238, %234, %242 in 0 : vector<24x124xf32>, vector<24x124xf32>, vector<24x124xf32> -> vector<72x124xf32>
    %c4_107 = arith.constant 4 : index
    %c0_108 = arith.constant 0 : index
    %c0_109 = arith.constant 0 : index
    %244 = vector.load %arg5[%c4_107, %c0_108, %c0_109] : memref<6x24x72xbf16, #tpu.memory_space<vmem>>, vector<1x24x72xbf16>
    %245 = vector.shape_cast %244 : vector<1x24x72xbf16> to vector<24x72xbf16>
    %246 = arith.truncf %243 : vector<72x124xf32> to vector<72x124xbf16>
    %cst_110 = arith.constant dense<0.000000e+00> : vector<24x124xf32>
    %247 = tpu.matmul %245, %246, %cst_110 {dimension_numbers = #tpu.dot_dimension_numbers<[1], [0], [0], [1], [0, 0, 1, 1], [], []>} : vector<24x72xbf16>, vector<72x124xbf16>, vector<24x124xf32> -> vector<24x124xf32>
    %c4_111 = arith.constant 4 : index
    %c0_112 = arith.constant 0 : index
    %c0_113 = arith.constant 0 : index
    %248 = vector.load %arg6[%c4_111, %c0_112, %c0_113] : memref<6x24x1xf32, #tpu.memory_space<vmem>>, vector<1x24x1xf32>
    %249 = vector.shape_cast %248 : vector<1x24x1xf32> to vector<24x1xf32>
    %250 = vector.broadcast %249 : vector<24x1xf32> to vector<24x124xf32>
    %251 = arith.addf %247, %250 : vector<24x124xf32>
    %cst_114 = arith.constant dense<0.000000e+00> : vector<24xf32>
    %252 = vector.multi_reduction <add>, %251, %cst_114 [1] : vector<24x124xf32> to vector<24xf32>
    %253 = vector.shape_cast %252 : vector<24xf32> to vector<24x1xf32>
    %cst_115 = arith.constant 0.00806451589 : f32
    %254 = vector.broadcast %cst_115 : f32 to vector<24x1xf32>
    %255 = arith.mulf %253, %254 : vector<24x1xf32>
    %256 = vector.broadcast %255 : vector<24x1xf32> to vector<24x124xf32>
    %257 = arith.subf %251, %256 : vector<24x124xf32>
    %258 = arith.mulf %257, %257 : vector<24x124xf32>
    %cst_116 = arith.constant dense<0.000000e+00> : vector<24xf32>
    %259 = vector.multi_reduction <add>, %258, %cst_116 [1] : vector<24x124xf32> to vector<24xf32>
    %260 = vector.shape_cast %259 : vector<24xf32> to vector<24x1xf32>
    %cst_117 = arith.constant 0.00806451589 : f32
    %261 = vector.broadcast %cst_117 : f32 to vector<24x1xf32>
    %262 = arith.mulf %260, %261 : vector<24x1xf32>
    %c5 = arith.constant 5 : index
    %c0_118 = arith.constant 0 : index
    %c0_119 = arith.constant 0 : index
    %263 = vector.load %arg3[%c5, %c0_118, %c0_119] : memref<7x24x1xf32, #tpu.memory_space<vmem>>, vector<1x24x1xf32>
    %264 = vector.shape_cast %263 : vector<1x24x1xf32> to vector<24x1xf32>
    %cst_120 = arith.constant 9.99999974E-6 : f32
    %265 = vector.broadcast %cst_120 : f32 to vector<24x1xf32>
    %266 = arith.addf %262, %265 : vector<24x1xf32>
    %267 = math.rsqrt %266 : vector<24x1xf32>
    %268 = arith.mulf %264, %267 : vector<24x1xf32>
    %269 = vector.broadcast %268 : vector<24x1xf32> to vector<24x124xf32>
    %270 = arith.mulf %257, %269 : vector<24x124xf32>
    %c5_121 = arith.constant 5 : index
    %c0_122 = arith.constant 0 : index
    %c0_123 = arith.constant 0 : index
    %271 = vector.load %arg4[%c5_121, %c0_122, %c0_123] : memref<7x24x1xf32, #tpu.memory_space<vmem>>, vector<1x24x1xf32>
    %272 = vector.shape_cast %271 : vector<1x24x1xf32> to vector<24x1xf32>
    %273 = vector.broadcast %272 : vector<24x1xf32> to vector<24x124xf32>
    %274 = arith.addf %270, %273 : vector<24x124xf32>
    %cst_124 = arith.constant 0.000000e+00 : f32
    %275 = vector.broadcast %cst_124 : f32 to vector<24x124xf32>
    %276 = arith.cmpf ogt, %274, %275 : vector<24x124xf32>
    %cst_125 = arith.constant 0.000000e+00 : f32
    %277 = vector.broadcast %cst_125 : f32 to vector<24x124xf32>
    %278 = arith.minimumf %274, %277 : vector<24x124xf32>
    %279 = math.exp %278 : vector<24x124xf32>
    %cst_126 = arith.constant 1.000000e+00 : f32
    %280 = vector.broadcast %cst_126 : f32 to vector<24x124xf32>
    %281 = arith.subf %279, %280 : vector<24x124xf32>
    %282 = arith.select %276, %274, %281 : vector<24x124xi1>, vector<24x124xf32>
    %283 = vector.extract_strided_slice %282 {offsets = [0, 0], sizes = [24, 123], strides = [1, 1]} : vector<24x124xf32> to vector<24x123xf32>
    %284 = tpu.concatenate %11, %283 in 1 : vector<24x1xf32>, vector<24x123xf32> -> vector<24x124xf32>
    %cst_127 = arith.constant 0.000000e+00 : f32
    %285 = vector.broadcast %cst_127 : f32 to vector<24x124xf32>
    %286 = arith.select %5, %284, %285 : vector<24x124xi1>, vector<24x124xf32>
    %287 = vector.extract_strided_slice %282 {offsets = [0, 1], sizes = [24, 123], strides = [1, 1]} : vector<24x124xf32> to vector<24x123xf32>
    %288 = tpu.concatenate %287, %11 in 1 : vector<24x123xf32>, vector<24x1xf32> -> vector<24x124xf32>
    %cst_128 = arith.constant 0.000000e+00 : f32
    %289 = vector.broadcast %cst_128 : f32 to vector<24x124xf32>
    %290 = arith.select %10, %288, %289 : vector<24x124xi1>, vector<24x124xf32>
    %291 = tpu.concatenate %286, %282, %290 in 0 : vector<24x124xf32>, vector<24x124xf32>, vector<24x124xf32> -> vector<72x124xf32>
    %c5_129 = arith.constant 5 : index
    %c0_130 = arith.constant 0 : index
    %c0_131 = arith.constant 0 : index
    %292 = vector.load %arg5[%c5_129, %c0_130, %c0_131] : memref<6x24x72xbf16, #tpu.memory_space<vmem>>, vector<1x24x72xbf16>
    %293 = vector.shape_cast %292 : vector<1x24x72xbf16> to vector<24x72xbf16>
    %294 = arith.truncf %291 : vector<72x124xf32> to vector<72x124xbf16>
    %cst_132 = arith.constant dense<0.000000e+00> : vector<24x124xf32>
    %295 = tpu.matmul %293, %294, %cst_132 {dimension_numbers = #tpu.dot_dimension_numbers<[1], [0], [0], [1], [0, 0, 1, 1], [], []>} : vector<24x72xbf16>, vector<72x124xbf16>, vector<24x124xf32> -> vector<24x124xf32>
    %c5_133 = arith.constant 5 : index
    %c0_134 = arith.constant 0 : index
    %c0_135 = arith.constant 0 : index
    %296 = vector.load %arg6[%c5_133, %c0_134, %c0_135] : memref<6x24x1xf32, #tpu.memory_space<vmem>>, vector<1x24x1xf32>
    %297 = vector.shape_cast %296 : vector<1x24x1xf32> to vector<24x1xf32>
    %298 = vector.broadcast %297 : vector<24x1xf32> to vector<24x124xf32>
    %299 = arith.addf %295, %298 : vector<24x124xf32>
    %cst_136 = arith.constant dense<0.000000e+00> : vector<24xf32>
    %300 = vector.multi_reduction <add>, %299, %cst_136 [1] : vector<24x124xf32> to vector<24xf32>
    %301 = vector.shape_cast %300 : vector<24xf32> to vector<24x1xf32>
    %cst_137 = arith.constant 0.00806451589 : f32
    %302 = vector.broadcast %cst_137 : f32 to vector<24x1xf32>
    %303 = arith.mulf %301, %302 : vector<24x1xf32>
    %304 = vector.broadcast %303 : vector<24x1xf32> to vector<24x124xf32>
    %305 = arith.subf %299, %304 : vector<24x124xf32>
    %306 = arith.mulf %305, %305 : vector<24x124xf32>
    %cst_138 = arith.constant dense<0.000000e+00> : vector<24xf32>
    %307 = vector.multi_reduction <add>, %306, %cst_138 [1] : vector<24x124xf32> to vector<24xf32>
    %308 = vector.shape_cast %307 : vector<24xf32> to vector<24x1xf32>
    %cst_139 = arith.constant 0.00806451589 : f32
    %309 = vector.broadcast %cst_139 : f32 to vector<24x1xf32>
    %310 = arith.mulf %308, %309 : vector<24x1xf32>
    %c6 = arith.constant 6 : index
    %c0_140 = arith.constant 0 : index
    %c0_141 = arith.constant 0 : index
    %311 = vector.load %arg3[%c6, %c0_140, %c0_141] : memref<7x24x1xf32, #tpu.memory_space<vmem>>, vector<1x24x1xf32>
    %312 = vector.shape_cast %311 : vector<1x24x1xf32> to vector<24x1xf32>
    %cst_142 = arith.constant 9.99999974E-6 : f32
    %313 = vector.broadcast %cst_142 : f32 to vector<24x1xf32>
    %314 = arith.addf %310, %313 : vector<24x1xf32>
    %315 = math.rsqrt %314 : vector<24x1xf32>
    %316 = arith.mulf %312, %315 : vector<24x1xf32>
    %317 = vector.broadcast %316 : vector<24x1xf32> to vector<24x124xf32>
    %318 = arith.mulf %305, %317 : vector<24x124xf32>
    %c6_143 = arith.constant 6 : index
    %c0_144 = arith.constant 0 : index
    %c0_145 = arith.constant 0 : index
    %319 = vector.load %arg4[%c6_143, %c0_144, %c0_145] : memref<7x24x1xf32, #tpu.memory_space<vmem>>, vector<1x24x1xf32>
    %320 = vector.shape_cast %319 : vector<1x24x1xf32> to vector<24x1xf32>
    %321 = vector.broadcast %320 : vector<24x1xf32> to vector<24x124xf32>
    %322 = arith.addf %318, %321 : vector<24x124xf32>
    %323 = arith.addf %322, %234 : vector<24x124xf32>
    %cst_146 = arith.constant 0.000000e+00 : f32
    %324 = vector.broadcast %cst_146 : f32 to vector<24x124xf32>
    %325 = arith.cmpf ogt, %323, %324 : vector<24x124xf32>
    %cst_147 = arith.constant 0.000000e+00 : f32
    %326 = vector.broadcast %cst_147 : f32 to vector<24x124xf32>
    %327 = arith.minimumf %323, %326 : vector<24x124xf32>
    %328 = math.exp %327 : vector<24x124xf32>
    %cst_148 = arith.constant 1.000000e+00 : f32
    %329 = vector.broadcast %cst_148 : f32 to vector<24x124xf32>
    %330 = arith.subf %328, %329 : vector<24x124xf32>
    %331 = arith.select %325, %323, %330 : vector<24x124xi1>, vector<24x124xf32>
    %332 = vector.extract_strided_slice %331 {offsets = [0, 1], sizes = [24, 123], strides = [1, 1]} : vector<24x124xf32> to vector<24x123xf32>
    %333 = tpu.concatenate %332, %11 in 1 : vector<24x123xf32>, vector<24x1xf32> -> vector<24x124xf32>
    %cst_149 = arith.constant 0.000000e+00 : f32
    %334 = vector.broadcast %cst_149 : f32 to vector<24x124xf32>
    %335 = arith.select %10, %333, %334 : vector<24x124xi1>, vector<24x124xf32>
    %336 = arith.maximumf %331, %335 : vector<24x124xf32>
    %cst_150 = arith.constant 0.000000e+00 : f32
    %337 = vector.broadcast %cst_150 : f32 to vector<2x3072xf32>
    %c0_151 = arith.constant 0 : index
    %c0_152 = arith.constant 0 : index
    %338 = vector.load %arg12[%c0_151, %c0_152] : memref<2x3072xf32, #tpu.memory_space<vmem>>, vector<2x3072xf32>
    tpu.vector_store %arg12[%c0_151, %c0_152], %337 {strides = array<i32>} : memref<2x3072xf32, #tpu.memory_space<vmem>>, vector<2x3072xf32>,
    %339 = vector.extract_strided_slice %336 {offsets = [0, 0], sizes = [24, 62], strides = [1, 1]} : vector<24x124xf32> to vector<24x62xf32>
    %340 = vector.extract_strided_slice %336 {offsets = [0, 62], sizes = [24, 62], strides = [1, 1]} : vector<24x124xf32> to vector<24x62xf32>
    %341 = vector.extract_strided_slice %339 {offsets = [0, 0], sizes = [1, 62], strides = [1, 1]} : vector<24x62xf32> to vector<1x62xf32>
    %c0_153 = arith.constant 0 : index
    %c0_154 = arith.constant 0 : index
    %342 = vector.load %arg12[%c0_153, %c0_154] : memref<2x3072xf32, #tpu.memory_space<vmem>>, vector<1x62xf32>
    tpu.vector_store %arg12[%c0_153, %c0_154], %341 {strides = array<i32>} : memref<2x3072xf32, #tpu.memory_space<vmem>>, vector<1x62xf32>,
    %343 = vector.extract_strided_slice %340 {offsets = [0, 0], sizes = [1, 62], strides = [1, 1]} : vector<24x62xf32> to vector<1x62xf32>
    %c1_155 = arith.constant 1 : index
    %c0_156 = arith.constant 0 : index
    %344 = vector.load %arg12[%c1_155, %c0_156] : memref<2x3072xf32, #tpu.memory_space<vmem>>, vector<1x62xf32>
    tpu.vector_store %arg12[%c1_155, %c0_156], %343 {strides = array<i32>} : memref<2x3072xf32, #tpu.memory_space<vmem>>, vector<1x62xf32>,
    %345 = vector.extract_strided_slice %339 {offsets = [1, 0], sizes = [1, 62], strides = [1, 1]} : vector<24x62xf32> to vector<1x62xf32>
    %c0_157 = arith.constant 0 : index
    %c128 = arith.constant 128 : index
    %346 = vector.load %arg12[%c0_157, %c128] : memref<2x3072xf32, #tpu.memory_space<vmem>>, vector<1x62xf32>
    tpu.vector_store %arg12[%c0_157, %c128], %345 {strides = array<i32>} : memref<2x3072xf32, #tpu.memory_space<vmem>>, vector<1x62xf32>,
    %347 = vector.extract_strided_slice %340 {offsets = [1, 0], sizes = [1, 62], strides = [1, 1]} : vector<24x62xf32> to vector<1x62xf32>
    %c1_158 = arith.constant 1 : index
    %c128_159 = arith.constant 128 : index
    %348 = vector.load %arg12[%c1_158, %c128_159] : memref<2x3072xf32, #tpu.memory_space<vmem>>, vector<1x62xf32>
    tpu.vector_store %arg12[%c1_158, %c128_159], %347 {strides = array<i32>} : memref<2x3072xf32, #tpu.memory_space<vmem>>, vector<1x62xf32>,
    %349 = vector.extract_strided_slice %339 {offsets = [2, 0], sizes = [1, 62], strides = [1, 1]} : vector<24x62xf32> to vector<1x62xf32>
    %c0_160 = arith.constant 0 : index
    %c256 = arith.constant 256 : index
    %350 = vector.load %arg12[%c0_160, %c256] : memref<2x3072xf32, #tpu.memory_space<vmem>>, vector<1x62xf32>
    tpu.vector_store %arg12[%c0_160, %c256], %349 {strides = array<i32>} : memref<2x3072xf32, #tpu.memory_space<vmem>>, vector<1x62xf32>,
    %351 = vector.extract_strided_slice %340 {offsets = [2, 0], sizes = [1, 62], strides = [1, 1]} : vector<24x62xf32> to vector<1x62xf32>
    %c1_161 = arith.constant 1 : index
    %c256_162 = arith.constant 256 : index
    %352 = vector.load %arg12[%c1_161, %c256_162] : memref<2x3072xf32, #tpu.memory_space<vmem>>, vector<1x62xf32>
    tpu.vector_store %arg12[%c1_161, %c256_162], %351 {strides = array<i32>} : memref<2x3072xf32, #tpu.memory_space<vmem>>, vector<1x62xf32>,
    %353 = vector.extract_strided_slice %339 {offsets = [3, 0], sizes = [1, 62], strides = [1, 1]} : vector<24x62xf32> to vector<1x62xf32>
    %c0_163 = arith.constant 0 : index
    %c384 = arith.constant 384 : index
    %354 = vector.load %arg12[%c0_163, %c384] : memref<2x3072xf32, #tpu.memory_space<vmem>>, vector<1x62xf32>
    tpu.vector_store %arg12[%c0_163, %c384], %353 {strides = array<i32>} : memref<2x3072xf32, #tpu.memory_space<vmem>>, vector<1x62xf32>,
    %355 = vector.extract_strided_slice %340 {offsets = [3, 0], sizes = [1, 62], strides = [1, 1]} : vector<24x62xf32> to vector<1x62xf32>
    %c1_164 = arith.constant 1 : index
    %c384_165 = arith.constant 384 : index
    %356 = vector.load %arg12[%c1_164, %c384_165] : memref<2x3072xf32, #tpu.memory_space<vmem>>, vector<1x62xf32>
    tpu.vector_store %arg12[%c1_164, %c384_165], %355 {strides = array<i32>} : memref<2x3072xf32, #tpu.memory_space<vmem>>, vector<1x62xf32>,
    %357 = vector.extract_strided_slice %339 {offsets = [4, 0], sizes = [1, 62], strides = [1, 1]} : vector<24x62xf32> to vector<1x62xf32>
    %c0_166 = arith.constant 0 : index
    %c512 = arith.constant 512 : index
    %358 = vector.load %arg12[%c0_166, %c512] : memref<2x3072xf32, #tpu.memory_space<vmem>>, vector<1x62xf32>
    tpu.vector_store %arg12[%c0_166, %c512], %357 {strides = array<i32>} : memref<2x3072xf32, #tpu.memory_space<vmem>>, vector<1x62xf32>,
    %359 = vector.extract_strided_slice %340 {offsets = [4, 0], sizes = [1, 62], strides = [1, 1]} : vector<24x62xf32> to vector<1x62xf32>
    %c1_167 = arith.constant 1 : index
    %c512_168 = arith.constant 512 : index
    %360 = vector.load %arg12[%c1_167, %c512_168] : memref<2x3072xf32, #tpu.memory_space<vmem>>, vector<1x62xf32>
    tpu.vector_store %arg12[%c1_167, %c512_168], %359 {strides = array<i32>} : memref<2x3072xf32, #tpu.memory_space<vmem>>, vector<1x62xf32>,
    %361 = vector.extract_strided_slice %339 {offsets = [5, 0], sizes = [1, 62], strides = [1, 1]} : vector<24x62xf32> to vector<1x62xf32>
    %c0_169 = arith.constant 0 : index
    %c640 = arith.constant 640 : index
    %362 = vector.load %arg12[%c0_169, %c640] : memref<2x3072xf32, #tpu.memory_space<vmem>>, vector<1x62xf32>
    tpu.vector_store %arg12[%c0_169, %c640], %361 {strides = array<i32>} : memref<2x3072xf32, #tpu.memory_space<vmem>>, vector<1x62xf32>,
    %363 = vector.extract_strided_slice %340 {offsets = [5, 0], sizes = [1, 62], strides = [1, 1]} : vector<24x62xf32> to vector<1x62xf32>
    %c1_170 = arith.constant 1 : index
    %c640_171 = arith.constant 640 : index
    %364 = vector.load %arg12[%c1_170, %c640_171] : memref<2x3072xf32, #tpu.memory_space<vmem>>, vector<1x62xf32>
    tpu.vector_store %arg12[%c1_170, %c640_171], %363 {strides = array<i32>} : memref<2x3072xf32, #tpu.memory_space<vmem>>, vector<1x62xf32>,
    %365 = vector.extract_strided_slice %339 {offsets = [6, 0], sizes = [1, 62], strides = [1, 1]} : vector<24x62xf32> to vector<1x62xf32>
    %c0_172 = arith.constant 0 : index
    %c768 = arith.constant 768 : index
    %366 = vector.load %arg12[%c0_172, %c768] : memref<2x3072xf32, #tpu.memory_space<vmem>>, vector<1x62xf32>
    tpu.vector_store %arg12[%c0_172, %c768], %365 {strides = array<i32>} : memref<2x3072xf32, #tpu.memory_space<vmem>>, vector<1x62xf32>,
    %367 = vector.extract_strided_slice %340 {offsets = [6, 0], sizes = [1, 62], strides = [1, 1]} : vector<24x62xf32> to vector<1x62xf32>
    %c1_173 = arith.constant 1 : index
    %c768_174 = arith.constant 768 : index
    %368 = vector.load %arg12[%c1_173, %c768_174] : memref<2x3072xf32, #tpu.memory_space<vmem>>, vector<1x62xf32>
    tpu.vector_store %arg12[%c1_173, %c768_174], %367 {strides = array<i32>} : memref<2x3072xf32, #tpu.memory_space<vmem>>, vector<1x62xf32>,
    %369 = vector.extract_strided_slice %339 {offsets = [7, 0], sizes = [1, 62], strides = [1, 1]} : vector<24x62xf32> to vector<1x62xf32>
    %c0_175 = arith.constant 0 : index
    %c896 = arith.constant 896 : index
    %370 = vector.load %arg12[%c0_175, %c896] : memref<2x3072xf32, #tpu.memory_space<vmem>>, vector<1x62xf32>
    tpu.vector_store %arg12[%c0_175, %c896], %369 {strides = array<i32>} : memref<2x3072xf32, #tpu.memory_space<vmem>>, vector<1x62xf32>,
    %371 = vector.extract_strided_slice %340 {offsets = [7, 0], sizes = [1, 62], strides = [1, 1]} : vector<24x62xf32> to vector<1x62xf32>
    %c1_176 = arith.constant 1 : index
    %c896_177 = arith.constant 896 : index
    %372 = vector.load %arg12[%c1_176, %c896_177] : memref<2x3072xf32, #tpu.memory_space<vmem>>, vector<1x62xf32>
    tpu.vector_store %arg12[%c1_176, %c896_177], %371 {strides = array<i32>} : memref<2x3072xf32, #tpu.memory_space<vmem>>, vector<1x62xf32>,
    %373 = vector.extract_strided_slice %339 {offsets = [8, 0], sizes = [1, 62], strides = [1, 1]} : vector<24x62xf32> to vector<1x62xf32>
    %c0_178 = arith.constant 0 : index
    %c1024 = arith.constant 1024 : index
    %374 = vector.load %arg12[%c0_178, %c1024] : memref<2x3072xf32, #tpu.memory_space<vmem>>, vector<1x62xf32>
    tpu.vector_store %arg12[%c0_178, %c1024], %373 {strides = array<i32>} : memref<2x3072xf32, #tpu.memory_space<vmem>>, vector<1x62xf32>,
    %375 = vector.extract_strided_slice %340 {offsets = [8, 0], sizes = [1, 62], strides = [1, 1]} : vector<24x62xf32> to vector<1x62xf32>
    %c1_179 = arith.constant 1 : index
    %c1024_180 = arith.constant 1024 : index
    %376 = vector.load %arg12[%c1_179, %c1024_180] : memref<2x3072xf32, #tpu.memory_space<vmem>>, vector<1x62xf32>
    tpu.vector_store %arg12[%c1_179, %c1024_180], %375 {strides = array<i32>} : memref<2x3072xf32, #tpu.memory_space<vmem>>, vector<1x62xf32>,
    %377 = vector.extract_strided_slice %339 {offsets = [9, 0], sizes = [1, 62], strides = [1, 1]} : vector<24x62xf32> to vector<1x62xf32>
    %c0_181 = arith.constant 0 : index
    %c1152 = arith.constant 1152 : index
    %378 = vector.load %arg12[%c0_181, %c1152] : memref<2x3072xf32, #tpu.memory_space<vmem>>, vector<1x62xf32>
    tpu.vector_store %arg12[%c0_181, %c1152], %377 {strides = array<i32>} : memref<2x3072xf32, #tpu.memory_space<vmem>>, vector<1x62xf32>,
    %379 = vector.extract_strided_slice %340 {offsets = [9, 0], sizes = [1, 62], strides = [1, 1]} : vector<24x62xf32> to vector<1x62xf32>
    %c1_182 = arith.constant 1 : index
    %c1152_183 = arith.constant 1152 : index
    %380 = vector.load %arg12[%c1_182, %c1152_183] : memref<2x3072xf32, #tpu.memory_space<vmem>>, vector<1x62xf32>
    tpu.vector_store %arg12[%c1_182, %c1152_183], %379 {strides = array<i32>} : memref<2x3072xf32, #tpu.memory_space<vmem>>, vector<1x62xf32>,
    %381 = vector.extract_strided_slice %339 {offsets = [10, 0], sizes = [1, 62], strides = [1, 1]} : vector<24x62xf32> to vector<1x62xf32>
    %c0_184 = arith.constant 0 : index
    %c1280 = arith.constant 1280 : index
    %382 = vector.load %arg12[%c0_184, %c1280] : memref<2x3072xf32, #tpu.memory_space<vmem>>, vector<1x62xf32>
    tpu.vector_store %arg12[%c0_184, %c1280], %381 {strides = array<i32>} : memref<2x3072xf32, #tpu.memory_space<vmem>>, vector<1x62xf32>,
    %383 = vector.extract_strided_slice %340 {offsets = [10, 0], sizes = [1, 62], strides = [1, 1]} : vector<24x62xf32> to vector<1x62xf32>
    %c1_185 = arith.constant 1 : index
    %c1280_186 = arith.constant 1280 : index
    %384 = vector.load %arg12[%c1_185, %c1280_186] : memref<2x3072xf32, #tpu.memory_space<vmem>>, vector<1x62xf32>
    tpu.vector_store %arg12[%c1_185, %c1280_186], %383 {strides = array<i32>} : memref<2x3072xf32, #tpu.memory_space<vmem>>, vector<1x62xf32>,
    %385 = vector.extract_strided_slice %339 {offsets = [11, 0], sizes = [1, 62], strides = [1, 1]} : vector<24x62xf32> to vector<1x62xf32>
    %c0_187 = arith.constant 0 : index
    %c1408 = arith.constant 1408 : index
    %386 = vector.load %arg12[%c0_187, %c1408] : memref<2x3072xf32, #tpu.memory_space<vmem>>, vector<1x62xf32>
    tpu.vector_store %arg12[%c0_187, %c1408], %385 {strides = array<i32>} : memref<2x3072xf32, #tpu.memory_space<vmem>>, vector<1x62xf32>,
    %387 = vector.extract_strided_slice %340 {offsets = [11, 0], sizes = [1, 62], strides = [1, 1]} : vector<24x62xf32> to vector<1x62xf32>
    %c1_188 = arith.constant 1 : index
    %c1408_189 = arith.constant 1408 : index
    %388 = vector.load %arg12[%c1_188, %c1408_189] : memref<2x3072xf32, #tpu.memory_space<vmem>>, vector<1x62xf32>
    tpu.vector_store %arg12[%c1_188, %c1408_189], %387 {strides = array<i32>} : memref<2x3072xf32, #tpu.memory_space<vmem>>, vector<1x62xf32>,
    %389 = vector.extract_strided_slice %339 {offsets = [12, 0], sizes = [1, 62], strides = [1, 1]} : vector<24x62xf32> to vector<1x62xf32>
    %c0_190 = arith.constant 0 : index
    %c1536 = arith.constant 1536 : index
    %390 = vector.load %arg12[%c0_190, %c1536] : memref<2x3072xf32, #tpu.memory_space<vmem>>, vector<1x62xf32>
    tpu.vector_store %arg12[%c0_190, %c1536], %389 {strides = array<i32>} : memref<2x3072xf32, #tpu.memory_space<vmem>>, vector<1x62xf32>,
    %391 = vector.extract_strided_slice %340 {offsets = [12, 0], sizes = [1, 62], strides = [1, 1]} : vector<24x62xf32> to vector<1x62xf32>
    %c1_191 = arith.constant 1 : index
    %c1536_192 = arith.constant 1536 : index
    %392 = vector.load %arg12[%c1_191, %c1536_192] : memref<2x3072xf32, #tpu.memory_space<vmem>>, vector<1x62xf32>
    tpu.vector_store %arg12[%c1_191, %c1536_192], %391 {strides = array<i32>} : memref<2x3072xf32, #tpu.memory_space<vmem>>, vector<1x62xf32>,
    %393 = vector.extract_strided_slice %339 {offsets = [13, 0], sizes = [1, 62], strides = [1, 1]} : vector<24x62xf32> to vector<1x62xf32>
    %c0_193 = arith.constant 0 : index
    %c1664 = arith.constant 1664 : index
    %394 = vector.load %arg12[%c0_193, %c1664] : memref<2x3072xf32, #tpu.memory_space<vmem>>, vector<1x62xf32>
    tpu.vector_store %arg12[%c0_193, %c1664], %393 {strides = array<i32>} : memref<2x3072xf32, #tpu.memory_space<vmem>>, vector<1x62xf32>,
    %395 = vector.extract_strided_slice %340 {offsets = [13, 0], sizes = [1, 62], strides = [1, 1]} : vector<24x62xf32> to vector<1x62xf32>
    %c1_194 = arith.constant 1 : index
    %c1664_195 = arith.constant 1664 : index
    %396 = vector.load %arg12[%c1_194, %c1664_195] : memref<2x3072xf32, #tpu.memory_space<vmem>>, vector<1x62xf32>
    tpu.vector_store %arg12[%c1_194, %c1664_195], %395 {strides = array<i32>} : memref<2x3072xf32, #tpu.memory_space<vmem>>, vector<1x62xf32>,
    %397 = vector.extract_strided_slice %339 {offsets = [14, 0], sizes = [1, 62], strides = [1, 1]} : vector<24x62xf32> to vector<1x62xf32>
    %c0_196 = arith.constant 0 : index
    %c1792 = arith.constant 1792 : index
    %398 = vector.load %arg12[%c0_196, %c1792] : memref<2x3072xf32, #tpu.memory_space<vmem>>, vector<1x62xf32>
    tpu.vector_store %arg12[%c0_196, %c1792], %397 {strides = array<i32>} : memref<2x3072xf32, #tpu.memory_space<vmem>>, vector<1x62xf32>,
    %399 = vector.extract_strided_slice %340 {offsets = [14, 0], sizes = [1, 62], strides = [1, 1]} : vector<24x62xf32> to vector<1x62xf32>
    %c1_197 = arith.constant 1 : index
    %c1792_198 = arith.constant 1792 : index
    %400 = vector.load %arg12[%c1_197, %c1792_198] : memref<2x3072xf32, #tpu.memory_space<vmem>>, vector<1x62xf32>
    tpu.vector_store %arg12[%c1_197, %c1792_198], %399 {strides = array<i32>} : memref<2x3072xf32, #tpu.memory_space<vmem>>, vector<1x62xf32>,
    %401 = vector.extract_strided_slice %339 {offsets = [15, 0], sizes = [1, 62], strides = [1, 1]} : vector<24x62xf32> to vector<1x62xf32>
    %c0_199 = arith.constant 0 : index
    %c1920 = arith.constant 1920 : index
    %402 = vector.load %arg12[%c0_199, %c1920] : memref<2x3072xf32, #tpu.memory_space<vmem>>, vector<1x62xf32>
    tpu.vector_store %arg12[%c0_199, %c1920], %401 {strides = array<i32>} : memref<2x3072xf32, #tpu.memory_space<vmem>>, vector<1x62xf32>,
    %403 = vector.extract_strided_slice %340 {offsets = [15, 0], sizes = [1, 62], strides = [1, 1]} : vector<24x62xf32> to vector<1x62xf32>
    %c1_200 = arith.constant 1 : index
    %c1920_201 = arith.constant 1920 : index
    %404 = vector.load %arg12[%c1_200, %c1920_201] : memref<2x3072xf32, #tpu.memory_space<vmem>>, vector<1x62xf32>
    tpu.vector_store %arg12[%c1_200, %c1920_201], %403 {strides = array<i32>} : memref<2x3072xf32, #tpu.memory_space<vmem>>, vector<1x62xf32>,
    %405 = vector.extract_strided_slice %339 {offsets = [16, 0], sizes = [1, 62], strides = [1, 1]} : vector<24x62xf32> to vector<1x62xf32>
    %c0_202 = arith.constant 0 : index
    %c2048 = arith.constant 2048 : index
    %406 = vector.load %arg12[%c0_202, %c2048] : memref<2x3072xf32, #tpu.memory_space<vmem>>, vector<1x62xf32>
    tpu.vector_store %arg12[%c0_202, %c2048], %405 {strides = array<i32>} : memref<2x3072xf32, #tpu.memory_space<vmem>>, vector<1x62xf32>,
    %407 = vector.extract_strided_slice %340 {offsets = [16, 0], sizes = [1, 62], strides = [1, 1]} : vector<24x62xf32> to vector<1x62xf32>
    %c1_203 = arith.constant 1 : index
    %c2048_204 = arith.constant 2048 : index
    %408 = vector.load %arg12[%c1_203, %c2048_204] : memref<2x3072xf32, #tpu.memory_space<vmem>>, vector<1x62xf32>
    tpu.vector_store %arg12[%c1_203, %c2048_204], %407 {strides = array<i32>} : memref<2x3072xf32, #tpu.memory_space<vmem>>, vector<1x62xf32>,
    %409 = vector.extract_strided_slice %339 {offsets = [17, 0], sizes = [1, 62], strides = [1, 1]} : vector<24x62xf32> to vector<1x62xf32>
    %c0_205 = arith.constant 0 : index
    %c2176 = arith.constant 2176 : index
    %410 = vector.load %arg12[%c0_205, %c2176] : memref<2x3072xf32, #tpu.memory_space<vmem>>, vector<1x62xf32>
    tpu.vector_store %arg12[%c0_205, %c2176], %409 {strides = array<i32>} : memref<2x3072xf32, #tpu.memory_space<vmem>>, vector<1x62xf32>,
    %411 = vector.extract_strided_slice %340 {offsets = [17, 0], sizes = [1, 62], strides = [1, 1]} : vector<24x62xf32> to vector<1x62xf32>
    %c1_206 = arith.constant 1 : index
    %c2176_207 = arith.constant 2176 : index
    %412 = vector.load %arg12[%c1_206, %c2176_207] : memref<2x3072xf32, #tpu.memory_space<vmem>>, vector<1x62xf32>
    tpu.vector_store %arg12[%c1_206, %c2176_207], %411 {strides = array<i32>} : memref<2x3072xf32, #tpu.memory_space<vmem>>, vector<1x62xf32>,
    %413 = vector.extract_strided_slice %339 {offsets = [18, 0], sizes = [1, 62], strides = [1, 1]} : vector<24x62xf32> to vector<1x62xf32>
    %c0_208 = arith.constant 0 : index
    %c2304 = arith.constant 2304 : index
    %414 = vector.load %arg12[%c0_208, %c2304] : memref<2x3072xf32, #tpu.memory_space<vmem>>, vector<1x62xf32>
    tpu.vector_store %arg12[%c0_208, %c2304], %413 {strides = array<i32>} : memref<2x3072xf32, #tpu.memory_space<vmem>>, vector<1x62xf32>,
    %415 = vector.extract_strided_slice %340 {offsets = [18, 0], sizes = [1, 62], strides = [1, 1]} : vector<24x62xf32> to vector<1x62xf32>
    %c1_209 = arith.constant 1 : index
    %c2304_210 = arith.constant 2304 : index
    %416 = vector.load %arg12[%c1_209, %c2304_210] : memref<2x3072xf32, #tpu.memory_space<vmem>>, vector<1x62xf32>
    tpu.vector_store %arg12[%c1_209, %c2304_210], %415 {strides = array<i32>} : memref<2x3072xf32, #tpu.memory_space<vmem>>, vector<1x62xf32>,
    %417 = vector.extract_strided_slice %339 {offsets = [19, 0], sizes = [1, 62], strides = [1, 1]} : vector<24x62xf32> to vector<1x62xf32>
    %c0_211 = arith.constant 0 : index
    %c2432 = arith.constant 2432 : index
    %418 = vector.load %arg12[%c0_211, %c2432] : memref<2x3072xf32, #tpu.memory_space<vmem>>, vector<1x62xf32>
    tpu.vector_store %arg12[%c0_211, %c2432], %417 {strides = array<i32>} : memref<2x3072xf32, #tpu.memory_space<vmem>>, vector<1x62xf32>,
    %419 = vector.extract_strided_slice %340 {offsets = [19, 0], sizes = [1, 62], strides = [1, 1]} : vector<24x62xf32> to vector<1x62xf32>
    %c1_212 = arith.constant 1 : index
    %c2432_213 = arith.constant 2432 : index
    %420 = vector.load %arg12[%c1_212, %c2432_213] : memref<2x3072xf32, #tpu.memory_space<vmem>>, vector<1x62xf32>
    tpu.vector_store %arg12[%c1_212, %c2432_213], %419 {strides = array<i32>} : memref<2x3072xf32, #tpu.memory_space<vmem>>, vector<1x62xf32>,
    %421 = vector.extract_strided_slice %339 {offsets = [20, 0], sizes = [1, 62], strides = [1, 1]} : vector<24x62xf32> to vector<1x62xf32>
    %c0_214 = arith.constant 0 : index
    %c2560 = arith.constant 2560 : index
    %422 = vector.load %arg12[%c0_214, %c2560] : memref<2x3072xf32, #tpu.memory_space<vmem>>, vector<1x62xf32>
    tpu.vector_store %arg12[%c0_214, %c2560], %421 {strides = array<i32>} : memref<2x3072xf32, #tpu.memory_space<vmem>>, vector<1x62xf32>,
    %423 = vector.extract_strided_slice %340 {offsets = [20, 0], sizes = [1, 62], strides = [1, 1]} : vector<24x62xf32> to vector<1x62xf32>
    %c1_215 = arith.constant 1 : index
    %c2560_216 = arith.constant 2560 : index
    %424 = vector.load %arg12[%c1_215, %c2560_216] : memref<2x3072xf32, #tpu.memory_space<vmem>>, vector<1x62xf32>
    tpu.vector_store %arg12[%c1_215, %c2560_216], %423 {strides = array<i32>} : memref<2x3072xf32, #tpu.memory_space<vmem>>, vector<1x62xf32>,
    %425 = vector.extract_strided_slice %339 {offsets = [21, 0], sizes = [1, 62], strides = [1, 1]} : vector<24x62xf32> to vector<1x62xf32>
    %c0_217 = arith.constant 0 : index
    %c2688 = arith.constant 2688 : index
    %426 = vector.load %arg12[%c0_217, %c2688] : memref<2x3072xf32, #tpu.memory_space<vmem>>, vector<1x62xf32>
    tpu.vector_store %arg12[%c0_217, %c2688], %425 {strides = array<i32>} : memref<2x3072xf32, #tpu.memory_space<vmem>>, vector<1x62xf32>,
    %427 = vector.extract_strided_slice %340 {offsets = [21, 0], sizes = [1, 62], strides = [1, 1]} : vector<24x62xf32> to vector<1x62xf32>
    %c1_218 = arith.constant 1 : index
    %c2688_219 = arith.constant 2688 : index
    %428 = vector.load %arg12[%c1_218, %c2688_219] : memref<2x3072xf32, #tpu.memory_space<vmem>>, vector<1x62xf32>
    tpu.vector_store %arg12[%c1_218, %c2688_219], %427 {strides = array<i32>} : memref<2x3072xf32, #tpu.memory_space<vmem>>, vector<1x62xf32>,
    %429 = vector.extract_strided_slice %339 {offsets = [22, 0], sizes = [1, 62], strides = [1, 1]} : vector<24x62xf32> to vector<1x62xf32>
    %c0_220 = arith.constant 0 : index
    %c2816 = arith.constant 2816 : index
    %430 = vector.load %arg12[%c0_220, %c2816] : memref<2x3072xf32, #tpu.memory_space<vmem>>, vector<1x62xf32>
    tpu.vector_store %arg12[%c0_220, %c2816], %429 {strides = array<i32>} : memref<2x3072xf32, #tpu.memory_space<vmem>>, vector<1x62xf32>,
    %431 = vector.extract_strided_slice %340 {offsets = [22, 0], sizes = [1, 62], strides = [1, 1]} : vector<24x62xf32> to vector<1x62xf32>
    %c1_221 = arith.constant 1 : index
    %c2816_222 = arith.constant 2816 : index
    %432 = vector.load %arg12[%c1_221, %c2816_222] : memref<2x3072xf32, #tpu.memory_space<vmem>>, vector<1x62xf32>
    tpu.vector_store %arg12[%c1_221, %c2816_222], %431 {strides = array<i32>} : memref<2x3072xf32, #tpu.memory_space<vmem>>, vector<1x62xf32>,
    %433 = vector.extract_strided_slice %339 {offsets = [23, 0], sizes = [1, 62], strides = [1, 1]} : vector<24x62xf32> to vector<1x62xf32>
    %c0_223 = arith.constant 0 : index
    %c2944 = arith.constant 2944 : index
    %434 = vector.load %arg12[%c0_223, %c2944] : memref<2x3072xf32, #tpu.memory_space<vmem>>, vector<1x62xf32>
    tpu.vector_store %arg12[%c0_223, %c2944], %433 {strides = array<i32>} : memref<2x3072xf32, #tpu.memory_space<vmem>>, vector<1x62xf32>,
    %435 = vector.extract_strided_slice %340 {offsets = [23, 0], sizes = [1, 62], strides = [1, 1]} : vector<24x62xf32> to vector<1x62xf32>
    %c1_224 = arith.constant 1 : index
    %c2944_225 = arith.constant 2944 : index
    %436 = vector.load %arg12[%c1_224, %c2944_225] : memref<2x3072xf32, #tpu.memory_space<vmem>>, vector<1x62xf32>
    tpu.vector_store %arg12[%c1_224, %c2944_225], %435 {strides = array<i32>} : memref<2x3072xf32, #tpu.memory_space<vmem>>, vector<1x62xf32>,
    %c0_226 = arith.constant 0 : index
    %c0_227 = arith.constant 0 : index
    %437 = vector.load %arg12[%c0_226, %c0_227] : memref<2x3072xf32, #tpu.memory_space<vmem>>, vector<2x3072xf32>
    %438 = arith.truncf %437 : vector<2x3072xf32> to vector<2x3072xbf16>
    %c0_228 = arith.constant 0 : index
    %c0_229 = arith.constant 0 : index
    %439 = vector.load %arg7[%c0_228, %c0_229] : memref<3072x128xbf16, #tpu.memory_space<vmem>>, vector<3072x128xbf16>
    %cst_230 = arith.constant dense<0.000000e+00> : vector<2x128xf32>
    %440 = tpu.matmul %438, %439, %cst_230 {dimension_numbers = #tpu.dot_dimension_numbers<[1], [0], [0], [1], [0, 0, 1, 1], [], []>} : vector<2x3072xbf16>, vector<3072x128xbf16>, vector<2x128xf32> -> vector<2x128xf32>
    %c0_231 = arith.constant 0 : index
    %c0_232 = arith.constant 0 : index
    %441 = vector.load %arg8[%c0_231, %c0_232] : memref<1x128xf32, #tpu.memory_space<vmem>>, vector<1x128xf32>
    %442 = vector.broadcast %441 : vector<1x128xf32> to vector<2x128xf32>
    %443 = arith.addf %440, %442 : vector<2x128xf32>
    %cst_233 = arith.constant 0.000000e+00 : f32
    %444 = vector.broadcast %cst_233 : f32 to vector<2x128xf32>
    %445 = arith.cmpf ogt, %443, %444 : vector<2x128xf32>
    %cst_234 = arith.constant 0.000000e+00 : f32
    %446 = vector.broadcast %cst_234 : f32 to vector<2x128xf32>
    %447 = arith.minimumf %443, %446 : vector<2x128xf32>
    %448 = math.exp %447 : vector<2x128xf32>
    %cst_235 = arith.constant 1.000000e+00 : f32
    %449 = vector.broadcast %cst_235 : f32 to vector<2x128xf32>
    %450 = arith.subf %448, %449 : vector<2x128xf32>
    %451 = arith.select %445, %443, %450 : vector<2x128xi1>, vector<2x128xf32>
    %452 = arith.truncf %451 : vector<2x128xf32> to vector<2x128xbf16>
    %c0_236 = arith.constant 0 : index
    %c0_237 = arith.constant 0 : index
    %453 = vector.load %arg9[%c0_236, %c0_237] : memref<128x1xbf16, #tpu.memory_space<vmem>>, vector<128x1xbf16>
    %cst_238 = arith.constant dense<0.000000e+00> : vector<2x1xf32>
    %454 = tpu.matmul %452, %453, %cst_238 {dimension_numbers = #tpu.dot_dimension_numbers<[1], [0], [0], [1], [0, 0, 1, 1], [], []>} : vector<2x128xbf16>, vector<128x1xbf16>, vector<2x1xf32> -> vector<2x1xf32>
    %c0_239 = arith.constant 0 : index
    %c0_240 = arith.constant 0 : index
    %455 = vector.load %arg10[%c0_239, %c0_240] : memref<1x1xf32, #tpu.memory_space<vmem>>, vector<1x1xf32>
    %456 = vector.broadcast %455 : vector<1x1xf32> to vector<2x1xf32>
    %457 = arith.addf %454, %456 : vector<2x1xf32>
    %cst_241 = arith.constant 0.000000e+00 : f32
    %458 = vector.broadcast %cst_241 : f32 to vector<2x1xf32>
    %459 = arith.subf %458, %457 : vector<2x1xf32>
    %460 = math.exp %459 : vector<2x1xf32>
    %cst_242 = arith.constant 1.000000e+00 : f32
    %461 = vector.broadcast %cst_242 : f32 to vector<2x1xf32>
    %462 = arith.addf %461, %460 : vector<2x1xf32>
    %cst_243 = arith.constant 1.000000e+00 : f32
    %463 = vector.broadcast %cst_243 : f32 to vector<2x1xf32>
    %464 = arith.divf %463, %462 : vector<2x1xf32>
    %c0_244 = arith.constant 0 : index
    %c0_245 = arith.constant 0 : index
    %465 = vector.load %arg11[%c0_244, %c0_245] : memref<2x1xf32, #tpu.memory_space<vmem>>, vector<2x1xf32>
    tpu.vector_store %arg11[%c0_244, %c0_245], %464 {strides = array<i32>} : memref<2x1xf32, #tpu.memory_space<vmem>>, vector<2x1xf32>,
    return
  }
}

</mosaic_0001>

<bundles_post_ra>
// kernel: rescnn_forward.1
= control target key start
LH: loop header
LB: loop body
LE: loop exit
PB: predicated region body
PF: predicated region fallthrough
CT: control target
= control target key end

     0   :  { %vm86_vm0 = vcmask 1041408   ;;  %vm87_vm1 = vcmask 1042432   ;;  %v5315_v0 = vmov 0   ;;  %v5316_v3 = vmov 65535   ;;  %s5317_s19 = smov 127   ;;  %s5318_s20 = smov 1   ;;  %s6713_s2 = inlined_call_operand.vmem [shape: f32[24,1], index: 2, kind: input, shape index: {}]   ;;  %s6714_s0 = inlined_call_operand.vmem [shape: bf16[5,124], index: 0, kind: input, shape index: {}]   ;;  %s6715_s1 = inlined_call_operand.vmem [shape: bf16[24,5], index: 1, kind: input, shape index: {}]   ;;  %s6716_s4 = inlined_call_operand.vmem [shape: f32[7,24,1], index: 4, kind: input, shape index: {}]   ;;  %s6717_s3 = inlined_call_operand.vmem [shape: f32[7,24,1], index: 3, kind: input, shape index: {}]   ;;  %s6718_s6 = inlined_call_operand.vmem [shape: f32[6,24,1], index: 6, kind: input, shape index: {}]   ;;  %s6719_s5 = inlined_call_operand.vmem [shape: bf16[6,24,72], index: 5, kind: input, shape index: {}]   ;;  %s6720_s7 = inlined_call_operand.vmem [shape: bf16[3072,128], index: 7, kind: input, shape index: {}]   ;;  %s6721_s8 = inlined_call_operand.vmem [shape: f32[1,128], index: 8, kind: input, shape index: {}]   ;;  %s6722_s9 = inlined_call_operand.vmem [shape: bf16[128,1], index: 9, kind: input, shape index: {}]   ;;  %s6723_s10 = inlined_call_operand.<no memory space> [shape: f32[1,1], index: 10, kind: input, shape index: {}]   ;;  %s6724_s11 = inlined_call_operand.vmem [shape: f32[2,1], index: 11, kind: output, shape index: {}]  }
   0x1   :  { %5166 = vset.pattern.permute.xlu0 %v5315_v0  ;;  %v55_v1 = vld [vmem:[%s6713_s2 + $0x10] sm:$0xff]  ;;  %v52_v2 = vld [vmem:[%s6714_s0] sm:$0x7]  ;;  %v88_v4 = vsel %vm86_vm0, 4294967295, %v5316_v3  ;;  %5167 = vset.pattern.permute.xlu1 %v5315_v0  ;;  %v54_v6 = vld [vmem:[%s6713_s2 + $0x8] sm:$0xff]  ;;  %vm79_vm2 = vcmask 39936  }
   0x2   :  { %68 = vperm.xlu0 %5166, %v55_v1   ;;  %v89_v5 = vsel %vm87_vm1, %v88_v4, 0  ;;  %5168 = vset.pattern.permute.xlu2 %v5315_v0  ;;  %v4952_v8 = vld [vmem:[%s6715_s1] sm:$0xff]  ;;  %v51_v10 = vld [vmem:[%s6715_s1 + $0x8] sm:$0xf]  ;;  %vm111_vm3 = vcmask 1014784   ;;  %v201_v26 = vld [vmem:[%s6716_s4 + $0x10] sm:$0xff] }
   0x3   :  { %v91_v7 = vand.u32 %v89_v5, %v52_v2  ;;  %63 = vperm.xlu1 %5167, %v54_v6   ;;  %v53_v9 = vld [vmem:[%s6713_s2] sm:$0xff]  ;;  %v76_v11 = vunpack.c.l.b16 %v51_v10  ;;  %v143_v3 = vld [vmem:[%s6717_s3 + $0x8] sm:$0xff]  ;;  %vm248_vm15 = vcmask 1006592   ;;  %vm296_vm1 = vcmask 1043456   ;;  %s5321_s0 = smov 66  }
   0x4   :  { %v142_v58 = vld [vmem:[%s6717_s3] sm:$0xff] }
   0x5   :  { %100 = vmatpush.bf16.msra.mxu0 %v91_v7  ;;  %v78_v12 = vpack.c.b16 %v76_v11, %v76_v11  ;;  %v199_v6 = vld [vmem:[%s6716_s4] sm:$0xff]  ;;  %v144_v11 = vld [vmem:[%s6717_s3 + $0x10] sm:$0xff] }
   0x8   :  { %3957 = vmatmul.msk.bf16.vlgmr.msra.gmra.mxu0 %vm79_vm2, %v4952_v8 }
   0xa   :  { %58 = vperm.xlu0 %5166, %v53_v9  }
  0x18   :  { %3958 = vmatmul.msk.bf16.gmra.mxu0 %vm79_vm2, %v78_v12 }
  0x74   :  { %v69_v13 = vpop.permute.xlu0 %68 }
  0x75   :  { %v64_v18 = vpop.permute.xlu1 %63 }
  0x7c   :  { %v59_v14 = vpop.permute.xlu0 %58 }
  0x85   :  { %v102_v15 = vpop.f32.mrf.mxu0 }
  0x86   :  { %v103_v16 = vadd.f32 %v102_v15, %v59_v14  ;;  %v200_v15 = vld [vmem:[%s6716_s4 + $0x8] sm:$0xff] }
  0x88   :  { %v112_v17 = vsel %vm111_vm3, %v103_v16, 0.0 }
  0x89   :  { %113 = vadd.xlane.f32.xlu2 %v112_v17 }
  0x8d   :  { %v104_v19 = vpop.f32.mrf.mxu0 }
  0x8e   :  { %v105_v20 = vadd.f32 %v104_v19, %v64_v18 }
  0x90   :  { %v115_v21 = vsel %vm111_vm3, %v105_v20, 0.0 }
  0x91   :  { %116 = vadd.xlane.f32.xlu2 %v115_v21 }
  0x95   :  { %v107_v22 = vpop.f32.mrf.mxu0 }
  0x96   :  { %v108_v23 = vadd.f32 %v107_v22, %v69_v13 }
  0x98   :  { %v118_v24 = vsel %vm111_vm3, %v108_v23, 0.0 }
  0x99   :  { %119 = vadd.xlane.f32.xlu1 %v118_v24 }
  0x9d   :  { %v109_v25 = vpop.f32.mrf.mxu0 }
  0x9e   :  { %v263_v25 = vld [vmem:[%s6718_s6] sm:$0xff] }
  0xb2   :  { %214 = vperm.xlu1 %5167, %v201_v26  }
  0xfc   :  { %v114_v27 = vpop.xlane.xlu2 %113 }
  0xfd   :  { %v121_v28 = vmul.f32 0.008064516, %v114_v27 }
  0xff   :  { %v5406_v29 = vsub.f32 %v103_v16, %v121_v28 }
 0x101   :  { %v127_v30 = vmul.f32 %v5406_v29, %v5406_v29 }
 0x103   :  { %v130_v31 = vsel %vm111_vm3, %v127_v30, 0.0 }
 0x104   :  { %131 = vadd.xlane.f32.xlu2 %v130_v31  ;;  %v117_v32 = vpop.xlane.xlu2 %116  ;;  %v264_v31 = vld [vmem:[%s6718_s6 + $0x8] sm:$0xff] }
 0x105   :  { %v122_v33 = vmul.f32 0.008064516, %v117_v32  ;;  %v265_v32 = vld [vmem:[%s6718_s6 + $0x10] sm:$0xff] }
 0x107   :  { %v5411_v34 = vsub.f32 %v105_v20, %v122_v33  ;;  %v41_v33 = vlaneseq }
 0x109   :  { %v128_v35 = vmul.f32 %v5411_v34, %v5411_v34 }
 0x10b   :  { %v133_v36 = vsel %vm111_vm3, %v128_v35, 0.0  ;;  %v4966_v35 = vld [vmem:[%s6720_s7 + $0x38] sm:$0xff] }
 0x10c   :  { %v120_v37 = vpop.xlane.xlu1 %119  ;;  %134 = vadd.xlane.f32.xlu2 %v133_v36 }
 0x10d   :  { %v123_v38 = vmul.f32 0.008064516, %v120_v37 }
 0x10f   :  { %v5416_v39 = vsub.f32 %v108_v23, %v123_v38 }
 0x111   :  { %v129_v40 = vmul.f32 %v5416_v39, %v5416_v39 }
 0x113   :  { %v136_v41 = vsel %vm111_vm3, %v129_v40, 0.0 }
 0x114   :  { %137 = vadd.xlane.f32.xlu0 %v136_v41 }
 0x124   :  { %v215_v21 = vpop.permute.xlu1 %214 }
 0x177   :  { %v132_v42 = vpop.xlane.xlu2 %131 }
 0x178   :  { %v139_v43 = vmul.f32 0.008064516, %v132_v42 }
 0x17a   :  { %v145_v44 = vadd.f32 1e-05, %v139_v43 }
 0x17c   :  { %5231 = vrsqrt.f32 %v145_v44  ;;  %vm154_vm5 = vweird.f32 %v145_v44 }
 0x17f   :  { %v135_v45 = vpop.xlane.xlu2 %134 }
 0x180   :  { %v140_v46 = vmul.f32 0.008064516, %v135_v45 }
 0x182   :  { %v5232_v47 = vpop.eup %5231  ;;  %v146_v48 = vadd.f32 1e-05, %v140_v46 }
 0x183   :  { %v149_v49 = vmul.f32 %v5232_v47, %v145_v44  ;;  %vm155_vm4 = vweird.f32 %v5232_v47 }
 0x184   :  { %5233 = vrsqrt.f32 %v146_v48  ;;  %vm156_vm6 = vmor %vm154_vm5, %vm155_vm4  ;;  %vm164_vm8 = vweird.f32 %v146_v48 }
 0x185   :  { %v150_v50 = vmul.f32 %v5232_v47, %v149_v49 }
 0x187   :  { %v151_v51 = vmul.f32 0.5, %v150_v50  ;;  %v138_v52 = vpop.xlane.xlu0 %137 }
 0x188   :  { %v141_v53 = vmul.f32 0.008064516, %v138_v52 }
 0x189   :  { %v152_v54 = vsub.f32 1.5, %v151_v51 }
 0x18a   :  { %v5234_v55 = vpop.eup %5233  ;;  %v147_v56 = vadd.f32 1e-05, %v141_v53 }
 0x18b   :  { %v159_v57 = vmul.f32 %v5234_v55, %v146_v48  ;;  %v153_v59 = vmul.f32 %v5232_v47, %v152_v54  ;;  %vm165_vm7 = vweird.f32 %v5234_v55 }
 0x18c   :  { %5235 = vrsqrt.f32 %v147_v56  ;;  %vm166_vm9 = vmor %vm164_vm8, %vm165_vm7  ;;  %vm174_vm11 = vweird.f32 %v147_v56  ;;  %vm5319_vm8 = vmmov 1  }
 0x18d   :  { %v160_v60 = vmul.f32 %v5234_v55, %v159_v57  ;;  %v157_v61 = vsel %vm156_vm6, %v5232_v47, %v153_v59  ;;  %vm232_vm6 = vcmask 7168   ;;  %v4958_v47 = vld [vmem:[%s6719_s5 + $0x3c] sm:$0xff] }
 0x18e   :  { %v178_v62 = vmul.f32 %v157_v61, %v142_v58  ;;  %v257_v61 = vld [vmem:[%s6719_s5 + $0x8] sm:$0xf] }
 0x18f   :  { %v161_v63 = vmul.f32 0.5, %v160_v60  ;;  %v4953_v60 = vld [vmem:[%s6719_s5] sm:$0xff] }
 0x190   :  { %183 = vperm.xlu2 %5168, %v178_v62   ;;  %v286_v62 = vunpack.c.l.b16 %v257_v61 }
 0x191   :  { %v162_v0 = vsub.f32 1.5, %v161_v63 }
 0x192   :  { %v5236_v1 = vpop.eup %5235  ;;  %v288_v63 = vpack.c.b16 %v286_v62, %v286_v62  ;;  %v3975_v62 = vld [vmem:[%s6717_s3 + $0x20] sm:$0xff] }
 0x193   :  { %v169_v2 = vmul.f32 %v5236_v1, %v147_v56  ;;  %v163_v4 = vmul.f32 %v5234_v55, %v162_v0  ;;  %vm175_vm10 = vweird.f32 %v5236_v1 }
 0x194   :  { %vm176_vm12 = vmor %vm174_vm11, %vm175_vm10  ;;  %vm289_vm11 = vcmask 588800  }
 0x195   :  { %v170_v5 = vmul.f32 %v5236_v1, %v169_v2  ;;  %v167_v7 = vsel %vm166_vm9, %v5234_v55, %v163_v4 }
 0x196   :  { %v179_v8 = vmul.f32 %v167_v7, %v143_v3 }
 0x197   :  { %v171_v9 = vmul.f32 0.5, %v170_v5 }
 0x198   :  { %204 = vperm.xlu2 %5168, %v199_v6   ;;  %188 = vperm.xlu0 %5166, %v179_v8  }
 0x199   :  { %v172_v10 = vsub.f32 1.5, %v171_v9 }
 0x19b   :  { %v173_v12 = vmul.f32 %v5236_v1, %v172_v10 }
 0x19d   :  { %v177_v13 = vsel %vm176_vm12, %v5236_v1, %v173_v12 }
 0x19e   :  { %v180_v14 = vmul.f32 %v177_v13, %v144_v11 }
 0x1a0   :  { %193 = vperm.xlu2 %5168, %v180_v14  }
 0x1a8   :  { %209 = vperm.xlu2 %5168, %v200_v15  }
 0x1ea   :  { %v184_v16 = vpop.permute.xlu2 %183 }
 0x1eb   :  { %v196_v19 = vmul.f32 %v184_v16, %v5406_v29 }
 0x1f2   :  { %v205_v17 = vpop.permute.xlu2 %204 }
 0x1f3   :  { %v5438_v22 = vadd.f32 %v205_v17, %v196_v19 }
 0x1fa   :  { %v194_v18 = vpop.permute.xlu2 %193 }
 0x1fb   :  { %v198_v20 = vmul.f32 %v194_v18, %v5416_v39 }
 0x1fd   :  { %v5440_v23 = vadd.f32 %v215_v21, %v198_v20 }
 0x1ff   :  { %243 = vrot.lane.b32.xlu1 %v5440_v23, %s5317_s19  ;;  %v5174_v24 = vpack.i.bf16 %v5438_v22, %v5440_v23 }
 0x201   :  { %5175 = vrot.lane.b32.xlu2 %v5174_v24, %s5318_s20 }
 0x202   :  { %v210_v28 = vpop.permute.xlu2 %209 }
 0x209   :  { %268 = vperm.xlu2 %5168, %v263_v25  }
 0x20a   :  { %v189_v26 = vpop.permute.xlu0 %188 }
 0x20b   :  { %v197_v27 = vmul.f32 %v189_v26, %v5411_v34  ;;  %v42_v34 = vand.u32 127, %v41_v33 }
 0x20d   :  { %v5451_v29 = vadd.f32 %v210_v28, %v197_v27  ;;  %vm46_vm13 = vcmp.ne.s32.totalorder %v42_v34, 61  ;;  %vm47_vm14 = vcmp.ne.s32.totalorder %v42_v34, 123  ;;  %vm43_vm4 = vcmp.ne.s32.totalorder %v42_v34, 0 }
 0x20e   :  { %vm5464_vm0 = vmand %vm46_vm13, %vm47_vm14  ;;  %vm44_vm5 = vcmp.ne.s32.totalorder %v42_v34, 62 }
 0x20f   :  { %225 = vrot.lane.b32.xlu1 %v5451_v29, %s5318_s20  ;;  %v5169_v30 = vpack.i.bf16 %v5451_v29, %v5438_v22  ;;  %vm5477_vm2 = vmpackc.low %vm5464_vm0, %vm5464_vm0  ;;  %v260_v50 = vpack.c.bf16 %v5440_v23, %v5451_v29 }
 0x210   :  { %vm45_vm7 = vmand %vm43_vm4, %vm44_vm5 }
 0x211   :  { %5170 = vrot.lane.b32.xlu0 %v5169_v30, %s5317_s19  ;;  %vm5486_vm9 = vmpackc.low %vm5319_vm8, %vm45_vm7 }
 0x212   :  { %vm5495_vm10 = vmpackc.low %vm45_vm7, %vm45_vm7 }
 0x217   :  { %273 = vperm.xlu1 %5167, %v264_v31   ;;  %v3979_v31 = vld [vmem:[%s6716_s4 + $0x28] sm:$0xff] }
 0x219   :  { %278 = vperm.xlu0 %5166, %v265_v32   ;;  %v3977_v32 = vld [vmem:[%s6716_s4 + $0x18] sm:$0xff] }
 0x25b   :  { %v5176_v44 = vpop.permute.xlu2 %5175 }
 0x25c   :  { %v5177_v49 = vunpack.i.l.bf16 %v5176_v44  ;;  %v5178_v53 = vunpack.i.h.bf16 %v5176_v44 }
 0x25e   :  { %v235_v51 = vsel %vm232_vm6, 0.0, %v5177_v49  ;;  %v233_v57 = vsel %vm232_vm6, 0.0, %v5178_v53 }
 0x25f   :  { %v3967_v55 = vpack.c.bf16 %v5438_v22, %v235_v51  ;;  %v3974_v51 = vld [vmem:[%s6717_s3 + $0x18] sm:$0xff] }
 0x263   :  { %v269_v0 = vpop.permute.xlu2 %268 }
 0x271   :  { %v244_v36 = vpop.permute.xlu1 %243 }
 0x272   :  { %v251_v37 = vsel %vm248_vm15, %v244_v36, 0.0 }
 0x273   :  { %v254_v38 = vsel %vm5464_vm0, %v251_v37, 0.0 }
 0x274   :  { %v262_v39 = vpack.c.bf16 %v254_v38, %v254_v38 }
 0x276   :  { %v298_v40 = vsel %vm296_vm1, %v262_v39, 0 }
 0x277   :  { %303 = vmatpush.bf16.msra.mxu1 %v298_v40 }
 0x281   :  { %v226_v52 = vpop.permute.xlu1 %225 }
 0x282   :  { %v234_v56 = vsel %vm232_vm6, 0.0, %v226_v52 }
 0x283   :  { %v5171_v41 = vpop.permute.xlu0 %5170  ;;  %v3970_v59 = vpack.c.bf16 %v234_v56, %v233_v57 }
 0x284   :  { %v5173_v42 = vunpack.i.h.bf16 %v5171_v41  ;;  %v5172_v43 = vunpack.i.l.bf16 %v5171_v41 }
 0x286   :  { %v249_v45 = vsel %vm248_vm15, %v5172_v43, 0.0  ;;  %v250_v46 = vsel %vm248_vm15, %v5173_v42, 0.0 }
 0x287   :  { %v3964_v48 = vpack.c.bf16 %v250_v46, %v249_v45 }
 0x289   :  { %3965 = vmatpush.bf16.msk.msra.mxu1 %vm5477_vm2, %v3964_v48  ;;  %v274_v4 = vpop.permute.xlu1 %273 }
 0x28b   :  { %v279_v8 = vpop.permute.xlu0 %278 }
 0x28d   :  { %305 = vmatpush.bf16.msra.mxu1 %v260_v50 }
 0x291   :  { %3968 = vmatpush.bf16.msk.msra.mxu1 %vm5486_vm9, %v3967_v55 }
 0x295   :  { %3971 = vmatpush.bf16.msk.msra.mxu1 %vm5495_vm10, %v3970_v59 }
 0x298   :  { %3972 = vmatmul.msk.bf16.vlgmr.msra.gmra.mxu1 %vm289_vm11, %v4953_v60 }
 0x2a8   :  { %3973 = vmatmul.msk.bf16.gmra.mxu1 %vm289_vm11, %v288_v63 }
 0x315   :  { %v309_v1 = vpop.f32.mrf.mxu1 }
 0x316   :  { %v310_v2 = vadd.f32 %v309_v1, %v269_v0 }
 0x318   :  { %v318_v3 = vsel %vm111_vm3, %v310_v2, 0.0 }
 0x319   :  { %319 = vadd.xlane.f32.xlu2 %v318_v3 }
 0x31d   :  { %v311_v5 = vpop.f32.mrf.mxu1 }
 0x31e   :  { %v312_v6 = vadd.f32 %v311_v5, %v274_v4  ;;  %v3976_v5 = vld [vmem:[%s6717_s3 + $0x28] sm:$0xff] }
 0x320   :  { %v321_v7 = vsel %vm111_vm3, %v312_v6, 0.0 }
 0x321   :  { %322 = vadd.xlane.f32.xlu1 %v321_v7 }
 0x325   :  { %v314_v9 = vpop.f32.mrf.mxu1 }
 0x326   :  { %v315_v10 = vadd.f32 %v314_v9, %v279_v8  ;;  %v3978_v9 = vld [vmem:[%s6716_s4 + $0x20] sm:$0xff] }
 0x328   :  { %v324_v11 = vsel %vm111_vm3, %v315_v10, 0.0 }
 0x329   :  { %325 = vadd.xlane.f32.xlu0 %v324_v11 }
 0x32d   :  { %v316_v12 = vpop.f32.mrf.mxu1 }
 0x38c   :  { %v320_v13 = vpop.xlane.xlu2 %319 }
 0x38d   :  { %v327_v14 = vmul.f32 0.008064516, %v320_v13 }
 0x38f   :  { %v5512_v15 = vsub.f32 %v310_v2, %v327_v14 }
 0x391   :  { %v333_v16 = vmul.f32 %v5512_v15, %v5512_v15 }
 0x393   :  { %v336_v17 = vsel %vm111_vm3, %v333_v16, 0.0 }
 0x394   :  { %v323_v18 = vpop.xlane.xlu1 %322  ;;  %337 = vadd.xlane.f32.xlu2 %v336_v17 }
 0x395   :  { %v328_v19 = vmul.f32 0.008064516, %v323_v18 }
 0x397   :  { %v5517_v20 = vsub.f32 %v312_v6, %v328_v19 }
 0x399   :  { %v334_v21 = vmul.f32 %v5517_v20, %v5517_v20 }
 0x39b   :  { %v339_v24 = vsel %vm111_vm3, %v334_v21, 0.0 }
 0x39c   :  { %v326_v25 = vpop.xlane.xlu0 %325  ;;  %340 = vadd.xlane.f32.xlu1 %v339_v24 }
 0x39d   :  { %v329_v26 = vmul.f32 0.008064516, %v326_v25 }
 0x39f   :  { %v5522_v27 = vsub.f32 %v315_v10, %v329_v26 }
 0x3a1   :  { %v335_v28 = vmul.f32 %v5522_v27, %v5522_v27 }
 0x3a3   :  { %v342_v30 = vsel %vm111_vm3, %v335_v28, 0.0 }
 0x3a4   :  { %343 = vadd.xlane.f32.xlu0 %v342_v30 }
 0x3ac   :  { %422 = vperm.xlu2 %5168, %v3979_v31  }
 0x3b4   :  { %412 = vperm.xlu2 %5168, %v3977_v32  }
 0x407   :  { %v338_v33 = vpop.xlane.xlu2 %337 }
 0x408   :  { %v345_v34 = vmul.f32 0.008064516, %v338_v33 }
 0x40a   :  { %v352_v36 = vadd.f32 1e-05, %v345_v34 }
 0x40c   :  { %5237 = vrsqrt.f32 %v352_v36  ;;  %vm361_vm13 = vweird.f32 %v352_v36 }
 0x40f   :  { %v341_v37 = vpop.xlane.xlu1 %340  ;;  %v423_v10 = vpop.permute.xlu2 %422 }
 0x410   :  { %v346_v38 = vmul.f32 0.008064516, %v341_v37 }
 0x412   :  { %v5238_v39 = vpop.eup %5237  ;;  %v353_v40 = vadd.f32 1e-05, %v346_v38 }
 0x413   :  { %v356_v41 = vmul.f32 %v5238_v39, %v352_v36  ;;  %vm362_vm12 = vweird.f32 %v5238_v39 }
 0x414   :  { %5239 = vrsqrt.f32 %v353_v40  ;;  %vm363_vm14 = vmor %vm361_vm13, %vm362_vm12  ;;  %vm371_vm5 = vweird.f32 %v353_v40 }
 0x415   :  { %v357_v42 = vmul.f32 %v5238_v39, %v356_v41 }
 0x417   :  { %v358_v43 = vmul.f32 0.5, %v357_v42  ;;  %v344_v44 = vpop.xlane.xlu0 %343  ;;  %v413_v13 = vpop.permute.xlu2 %412 }
 0x418   :  { %v347_v45 = vmul.f32 0.008064516, %v344_v44  ;;  %v3986_v44 = vld [vmem:[%s6718_s6 + $0x18] sm:$0xff] }
 0x419   :  { %v359_v46 = vsub.f32 1.5, %v358_v43 }
 0x41a   :  { %v5240_v48 = vpop.eup %5239  ;;  %v354_v49 = vadd.f32 1e-05, %v347_v45  ;;  %v3987_v45 = vld [vmem:[%s6718_s6 + $0x20] sm:$0xff] }
 0x41b   :  { %v366_v50 = vmul.f32 %v5240_v48, %v353_v40  ;;  %v360_v52 = vmul.f32 %v5238_v39, %v359_v46  ;;  %vm372_vm4 = vweird.f32 %v5240_v48  ;;  %v3988_v46 = vld [vmem:[%s6718_s6 + $0x28] sm:$0xff] }
 0x41c   :  { %5241 = vrsqrt.f32 %v354_v49  ;;  %vm373_vm7 = vmor %vm371_vm5, %vm372_vm4  ;;  %vm381_vm12 = vweird.f32 %v354_v49 }
 0x41d   :  { %v367_v53 = vmul.f32 %v5240_v48, %v366_v50  ;;  %v364_v55 = vsel %vm363_vm14, %v5238_v39, %v360_v52 }
 0x41e   :  { %v385_v56 = vmul.f32 %v3974_v51, %v364_v55 }
 0x41f   :  { %v368_v57 = vmul.f32 0.5, %v367_v53 }
 0x420   :  { %390 = vperm.xlu1 %5167, %v385_v56  }
 0x421   :  { %v369_v59 = vsub.f32 1.5, %v368_v57 }
 0x422   :  { %v5242_v60 = vpop.eup %5241 }
 0x423   :  { %v376_v61 = vmul.f32 %v5242_v60, %v354_v49  ;;  %v370_v63 = vmul.f32 %v5240_v48, %v369_v59  ;;  %vm382_vm8 = vweird.f32 %v5242_v60 }
 0x424   :  { %vm383_vm13 = vmor %vm381_vm12, %vm382_vm8 }
 0x425   :  { %v377_v0 = vmul.f32 %v5242_v60, %v376_v61  ;;  %v374_v1 = vsel %vm373_vm7, %v5240_v48, %v370_v63 }
 0x426   :  { %v386_v2 = vmul.f32 %v3975_v62, %v374_v1 }
 0x427   :  { %v378_v3 = vmul.f32 0.5, %v377_v0 }
 0x428   :  { %395 = vperm.xlu0 %5166, %v386_v2  }
 0x429   :  { %v379_v4 = vsub.f32 1.5, %v378_v3 }
 0x42b   :  { %v380_v6 = vmul.f32 %v5242_v60, %v379_v4 }
 0x42d   :  { %v384_v7 = vsel %vm383_vm13, %v5242_v60, %v380_v6  ;;  %v4954_v6 = vld [vmem:[%s6719_s5 + $0xc] sm:$0xff] }
 0x42e   :  { %v387_v8 = vmul.f32 %v3976_v5, %v384_v7  ;;  %v3985_v7 = vld [vmem:[%s6719_s5 + $0x14] sm:$0xf] }
 0x430   :  { %400 = vperm.xlu0 %5166, %v387_v8   ;;  %v512_v8 = vunpack.c.l.b16 %v3985_v7  ;;  %v4005_v7 = vld [vmem:[%s6717_s3 + $0x38] sm:$0xff] }
 0x438   :  { %417 = vperm.xlu0 %5166, %v3978_v9   ;;  %v514_v9 = vpack.c.b16 %v512_v8, %v512_v8 }
 0x492   :  { %v391_v11 = vpop.permute.xlu1 %390 }
 0x493   :  { %v403_v12 = vmul.f32 %v391_v11, %v5512_v15 }
 0x495   :  { %v425_v16 = vadd.f32 %v413_v13, %v403_v12 }
 0x497   :  { %v431_v17 = vmin.f32 %v425_v16, 0.0  ;;  %vm428_vm14 = vcmp.gt.f32.partialorder %v425_v16, 0.0 }
 0x499   :  { %v434_v19 = vmul.f32 1.442695, %v431_v17 }
 0x49a   :  { %v396_v14 = vpop.permute.xlu0 %395 }
 0x49b   :  { %5243 = vpow2.f32 %v434_v19  ;;  %v404_v26 = vmul.f32 %v396_v14, %v5517_v20 }
 0x4a1   :  { %v5244_v32 = vpop.eup %5243 }
 0x4a2   :  { %v401_v18 = vpop.permute.xlu0 %400  ;;  %v3980_v34 = vadd.f32 -1.0, %v5244_v32 }
 0x4a3   :  { %v405_v21 = vmul.f32 %v401_v18, %v5522_v27 }
 0x4a4   :  { %v443_v27 = vsel %vm428_vm14, %v425_v16, %v3980_v34 }
 0x4a5   :  { %v427_v24 = vadd.f32 %v423_v10, %v405_v21 }
 0x4a7   :  { %v433_v25 = vmin.f32 %v427_v24, 0.0  ;;  %vm430_vm4 = vcmp.gt.f32.partialorder %v427_v24, 0.0 }
 0x4a9   :  { %v438_v28 = vmul.f32 1.442695, %v433_v25 }
 0x4aa   :  { %v418_v30 = vpop.permute.xlu0 %417 }
 0x4ab   :  { %v426_v31 = vadd.f32 %v418_v30, %v404_v26  ;;  %5245 = vpow2.f32 %v438_v28 }
 0x4ad   :  { %v432_v33 = vmin.f32 %v426_v31, 0.0  ;;  %vm429_vm5 = vcmp.gt.f32.partialorder %v426_v31, 0.0 }
 0x4af   :  { %v436_v15 = vmul.f32 1.442695, %v432_v33 }
 0x4b1   :  { %v5246_v36 = vpop.eup %5245  ;;  %5247 = vpow2.f32 %v436_v15 }
 0x4b2   :  { %v3982_v37 = vadd.f32 -1.0, %v5246_v36 }
 0x4b4   :  { %v445_v38 = vsel %vm430_vm4, %v427_v24, %v3982_v37 }
 0x4b5   :  { %468 = vrot.lane.b32.xlu1 %v445_v38, %s5317_s19  ;;  %v5184_v39 = vpack.i.bf16 %v443_v27, %v445_v38 }
 0x4b7   :  { %v5248_v40 = vpop.eup %5247  ;;  %5185 = vrot.lane.b32.xlu0 %v5184_v39, %s5318_s20 }
 0x4b8   :  { %v3981_v20 = vadd.f32 -1.0, %v5248_v40 }
 0x4ba   :  { %v444_v41 = vsel %vm429_vm5, %v426_v31, %v3981_v20 }
 0x4bb   :  { %v5179_v42 = vpack.i.bf16 %v444_v41, %v443_v27  ;;  %v485_v43 = vpack.c.bf16 %v445_v38, %v444_v41 }
 0x4bd   :  { %451 = vrot.lane.b32.xlu1 %v444_v41, %s5318_s20  ;;  %5180 = vrot.lane.b32.xlu2 %v5179_v42, %s5317_s19  ;;  %v4009_v42 = vld [vmem:[%s6716_s4 + $0x40] sm:$0xff] }
 0x4bf   :  { %494 = vperm.xlu0 %5166, %v3986_v44  }
 0x4c5   :  { %499 = vperm.xlu1 %5167, %v3987_v45   ;;  %504 = vperm.xlu2 %5168, %v3988_v46  }
 0x517   :  { %v5181_v48 = vpop.permute.xlu2 %5180 }
 0x518   :  { %v5183_v50 = vunpack.i.h.bf16 %v5181_v48  ;;  %v5182_v51 = vunpack.i.l.bf16 %v5181_v48 }
 0x51a   :  { %v474_v56 = vsel %vm248_vm15, %v5183_v50, 0.0  ;;  %v473_v57 = vsel %vm248_vm15, %v5182_v51, 0.0 }
 0x51b   :  { %v3994_v61 = vpack.c.bf16 %v474_v56, %v473_v57 }
 0x51f   :  { %v505_v19 = vpop.permute.xlu2 %504 }
 0x527   :  { %v469_v49 = vpop.permute.xlu1 %468 }
 0x528   :  { %v475_v52 = vsel %vm248_vm15, %v469_v49, 0.0 }
 0x529   :  { %v478_v53 = vsel %vm5464_vm0, %v475_v52, 0.0  ;;  %v5186_v60 = vpop.permute.xlu0 %5185 }
 0x52a   :  { %v487_v55 = vpack.c.bf16 %v478_v53, %v478_v53  ;;  %v5187_v62 = vunpack.i.l.bf16 %v5186_v60  ;;  %v5188_v1 = vunpack.i.h.bf16 %v5186_v60 }
 0x52c   :  { %v522_v59 = vsel %vm296_vm1, %v487_v55, 0  ;;  %v460_v63 = vsel %vm232_vm6, 0.0, %v5187_v62  ;;  %v458_v4 = vsel %vm232_vm6, 0.0, %v5188_v1  ;;  %v4004_v62 = vld [vmem:[%s6717_s3 + $0x30] sm:$0xff] }
 0x52d   :  { %527 = vmatpush.bf16.msra.mxu2 %v522_v59  ;;  %v3997_v2 = vpack.c.bf16 %v443_v27, %v460_v63 }
 0x52f   :  { %v452_v0 = vpop.permute.xlu1 %451 }
 0x530   :  { %v459_v3 = vsel %vm232_vm6, 0.0, %v452_v0 }
 0x531   :  { %3995 = vmatpush.bf16.msk.msra.mxu2 %vm5477_vm2, %v3994_v61  ;;  %v4000_v5 = vpack.c.bf16 %v459_v3, %v458_v4  ;;  %v495_v10 = vpop.permute.xlu0 %494 }
 0x535   :  { %529 = vmatpush.bf16.msra.mxu2 %v485_v43 }
 0x537   :  { %v500_v14 = vpop.permute.xlu1 %499 }
 0x539   :  { %3998 = vmatpush.bf16.msk.msra.mxu2 %vm5486_vm9, %v3997_v2 }
 0x53d   :  { %4001 = vmatpush.bf16.msk.msra.mxu2 %vm5495_vm10, %v4000_v5 }
 0x540   :  { %4002 = vmatmul.msk.bf16.vlgmr.msra.gmra.mxu2 %vm289_vm11, %v4954_v6 }
 0x550   :  { %4003 = vmatmul.msk.bf16.gmra.mxu2 %vm289_vm11, %v514_v9 }
 0x5c3   :  { %v533_v11 = vpop.f32.mrf.mxu2 }
 0x5c4   :  { %v534_v12 = vadd.f32 %v533_v11, %v495_v10  ;;  %v4008_v11 = vld [vmem:[%s6716_s4 + $0x38] sm:$0xff] }
 0x5c6   :  { %v542_v13 = vsel %vm111_vm3, %v534_v12, 0.0 }
 0x5c7   :  { %543 = vadd.xlane.f32.xlu0 %v542_v13 }
 0x5cb   :  { %v535_v16 = vpop.f32.mrf.mxu2 }
 0x5cc   :  { %v536_v17 = vadd.f32 %v535_v16, %v500_v14  ;;  %v4006_v16 = vld [vmem:[%s6717_s3 + $0x40] sm:$0xff] }
 0x5ce   :  { %v545_v18 = vsel %vm111_vm3, %v536_v17, 0.0 }
 0x5cf   :  { %546 = vadd.xlane.f32.xlu1 %v545_v18 }
 0x5d3   :  { %v538_v21 = vpop.f32.mrf.mxu2 }
 0x5d4   :  { %v539_v24 = vadd.f32 %v538_v21, %v505_v19  ;;  %v4007_v21 = vld [vmem:[%s6716_s4 + $0x30] sm:$0xff] }
 0x5d6   :  { %v548_v25 = vsel %vm111_vm3, %v539_v24, 0.0 }
 0x5d7   :  { %549 = vadd.xlane.f32.xlu2 %v548_v25 }
 0x5db   :  { %v540_v26 = vpop.f32.mrf.mxu2 }
 0x63a   :  { %v544_v28 = vpop.xlane.xlu0 %543 }
 0x63b   :  { %v551_v30 = vmul.f32 0.008064516, %v544_v28 }
 0x63d   :  { %v5587_v31 = vsub.f32 %v534_v12, %v551_v30 }
 0x63f   :  { %v557_v32 = vmul.f32 %v5587_v31, %v5587_v31 }
 0x641   :  { %v560_v33 = vsel %vm111_vm3, %v557_v32, 0.0 }
 0x642   :  { %v547_v15 = vpop.xlane.xlu1 %546  ;;  %561 = vadd.xlane.f32.xlu0 %v560_v33 }
 0x643   :  { %v552_v34 = vmul.f32 0.008064516, %v547_v15 }
 0x645   :  { %v5592_v36 = vsub.f32 %v536_v17, %v552_v34 }
 0x647   :  { %v558_v37 = vmul.f32 %v5592_v36, %v5592_v36 }
 0x649   :  { %v563_v38 = vsel %vm111_vm3, %v558_v37, 0.0 }
 0x64a   :  { %v550_v27 = vpop.xlane.xlu2 %549  ;;  %564 = vadd.xlane.f32.xlu1 %v563_v38 }
 0x64b   :  { %v553_v39 = vmul.f32 0.008064516, %v550_v27 }
 0x64d   :  { %v556_v40 = vsub.f32 %v539_v24, %v553_v39 }
 0x64f   :  { %v559_v20 = vmul.f32 %v556_v40, %v556_v40 }
 0x651   :  { %v566_v41 = vsel %vm111_vm3, %v559_v20, 0.0 }
 0x652   :  { %567 = vadd.xlane.f32.xlu2 %v566_v41 }
 0x656   :  { %646 = vperm.xlu0 %5166, %v4009_v42  }
 0x6b5   :  { %v562_v43 = vpop.xlane.xlu0 %561 }
 0x6b6   :  { %v569_v44 = vmul.f32 0.008064516, %v562_v43 }
 0x6b8   :  { %v576_v45 = vadd.f32 1e-05, %v569_v44 }
 0x6ba   :  { %5249 = vrsqrt.f32 %v576_v45  ;;  %vm585_vm8 = vweird.f32 %v576_v45 }
 0x6bd   :  { %v565_v46 = vpop.xlane.xlu1 %564 }
 0x6be   :  { %v570_v48 = vmul.f32 0.008064516, %v565_v46 }
 0x6c0   :  { %v5250_v49 = vpop.eup %5249  ;;  %v577_v50 = vadd.f32 1e-05, %v570_v48 }
 0x6c1   :  { %v580_v51 = vmul.f32 %v5250_v49, %v576_v45  ;;  %vm586_vm7 = vweird.f32 %v5250_v49 }
 0x6c2   :  { %5251 = vrsqrt.f32 %v577_v50  ;;  %vm587_vm12 = vmor %vm585_vm8, %vm586_vm7  ;;  %vm595_vm14 = vweird.f32 %v577_v50 }
 0x6c3   :  { %v581_v52 = vmul.f32 %v5250_v49, %v580_v51 }
 0x6c5   :  { %v582_v53 = vmul.f32 0.5, %v581_v52  ;;  %v568_v55 = vpop.xlane.xlu2 %567 }
 0x6c6   :  { %v571_v56 = vmul.f32 0.008064516, %v568_v55 }
 0x6c7   :  { %v583_v57 = vsub.f32 1.5, %v582_v53  ;;  %v4016_v53 = vld [vmem:[%s6718_s6 + $0x30] sm:$0xff] }
 0x6c8   :  { %v5252_v59 = vpop.eup %5251  ;;  %v578_v60 = vadd.f32 1e-05, %v571_v56  ;;  %v647_v26 = vpop.permute.xlu0 %646  ;;  %v4017_v56 = vld [vmem:[%s6718_s6 + $0x38] sm:$0xff] }
 0x6c9   :  { %v590_v61 = vmul.f32 %v5252_v59, %v577_v50  ;;  %v584_v63 = vmul.f32 %v5250_v49, %v583_v57  ;;  %vm596_vm13 = vweird.f32 %v5252_v59  ;;  %v4018_v57 = vld [vmem:[%s6718_s6 + $0x40] sm:$0xff] }
 0x6ca   :  { %5253 = vrsqrt.f32 %v578_v60  ;;  %vm597_vm4 = vmor %vm595_vm14, %vm596_vm13  ;;  %vm605_vm7 = vweird.f32 %v578_v60 }
 0x6cb   :  { %v591_v0 = vmul.f32 %v5252_v59, %v590_v61  ;;  %v588_v1 = vsel %vm587_vm12, %v5250_v49, %v584_v63 }
 0x6cc   :  { %v609_v2 = vmul.f32 %v4004_v62, %v588_v1 }
 0x6cd   :  { %v592_v3 = vmul.f32 0.5, %v591_v0 }
 0x6ce   :  { %614 = vperm.xlu1 %5167, %v609_v2  }
 0x6cf   :  { %v593_v4 = vsub.f32 1.5, %v592_v3 }
 0x6d0   :  { %v5254_v5 = vpop.eup %5253 }
 0x6d1   :  { %v600_v6 = vmul.f32 %v5254_v5, %v578_v60  ;;  %v594_v8 = vmul.f32 %v5252_v59, %v593_v4  ;;  %vm606_vm5 = vweird.f32 %v5254_v5 }
 0x6d2   :  { %vm607_vm8 = vmor %vm605_vm7, %vm606_vm5 }
 0x6d3   :  { %v601_v9 = vmul.f32 %v5254_v5, %v600_v6  ;;  %v598_v10 = vsel %vm597_vm4, %v5252_v59, %v594_v8 }
 0x6d4   :  { %v610_v12 = vmul.f32 %v4005_v7, %v598_v10 }
 0x6d5   :  { %v602_v13 = vmul.f32 0.5, %v601_v9 }
 0x6d6   :  { %619 = vperm.xlu0 %5166, %v610_v12   ;;  %641 = vperm.xlu1 %5167, %v4008_v11  }
 0x6d7   :  { %v603_v14 = vsub.f32 1.5, %v602_v13 }
 0x6d9   :  { %v604_v17 = vmul.f32 %v5254_v5, %v603_v14 }
 0x6db   :  { %v608_v18 = vsel %vm607_vm8, %v5254_v5, %v604_v17  ;;  %v4955_v17 = vld [vmem:[%s6719_s5 + $0x18] sm:$0xff] }
 0x6dc   :  { %v611_v19 = vmul.f32 %v4006_v16, %v608_v18  ;;  %v4015_v18 = vld [vmem:[%s6719_s5 + $0x20] sm:$0xf] }
 0x6de   :  { %624 = vperm.xlu2 %5168, %v611_v19   ;;  %v739_v19 = vunpack.c.l.b16 %v4015_v18 }
 0x6e6   :  { %636 = vperm.xlu2 %5168, %v4007_v21   ;;  %v741_v21 = vpack.c.b16 %v739_v19, %v739_v19 }
 0x738   :  { %v625_v24 = vpop.permute.xlu2 %624 }
 0x739   :  { %v629_v25 = vmul.f32 %v625_v24, %v556_v40 }
 0x73b   :  { %v651_v28 = vadd.f32 %v647_v26, %v629_v25 }
 0x73d   :  { %v654_v30 = vadd.f32 %v651_v28, %v5440_v23 }
 0x73f   :  { %v660_v32 = vmin.f32 %v654_v30, 0.0  ;;  %vm657_vm12 = vcmp.gt.f32.partialorder %v654_v30, 0.0 }
 0x740   :  { %v615_v33 = vpop.permute.xlu1 %614  ;;  %v637_v37 = vpop.permute.xlu2 %636 }
 0x741   :  { %v665_v15 = vmul.f32 1.442695, %v660_v32  ;;  %v627_v34 = vmul.f32 %v615_v33, %v5587_v31 }
 0x743   :  { %v649_v38 = vadd.f32 %v637_v37, %v627_v34  ;;  %5255 = vpow2.f32 %v665_v15 }
 0x745   :  { %v652_v27 = vadd.f32 %v649_v38, %v5438_v22 }
 0x747   :  { %v658_v39 = vmin.f32 %v652_v27, 0.0  ;;  %vm655_vm13 = vcmp.gt.f32.partialorder %v652_v27, 0.0 }
 0x748   :  { %v620_v20 = vpop.permute.xlu0 %619  ;;  %v642_v43 = vpop.permute.xlu1 %641 }
 0x749   :  { %v5256_v41 = vpop.eup %5255  ;;  %v661_v42 = vmul.f32 1.442695, %v658_v39  ;;  %v628_v40 = vmul.f32 %v620_v20, %v5592_v36 }
 0x74a   :  { %v4012_v44 = vadd.f32 -1.0, %v5256_v41 }
 0x74b   :  { %5257 = vpow2.f32 %v661_v42  ;;  %v650_v23 = vadd.f32 %v642_v43, %v628_v40 }
 0x74c   :  { %v5620_v45 = vsel %vm657_vm12, %v654_v30, %v4012_v44 }
 0x74d   :  { %v653_v31 = vadd.f32 %v650_v23, %v5451_v29  ;;  %695 = vrot.lane.b32.xlu0 %v5620_v45, %s5317_s19 }
 0x74f   :  { %v659_v46 = vmin.f32 %v653_v31, 0.0  ;;  %vm656_vm14 = vcmp.gt.f32.partialorder %v653_v31, 0.0 }
 0x751   :  { %v5258_v22 = vpop.eup %5257  ;;  %v663_v48 = vmul.f32 1.442695, %v659_v46 }
 0x752   :  { %v4010_v49 = vadd.f32 -1.0, %v5258_v22 }
 0x753   :  { %5259 = vpow2.f32 %v663_v48 }
 0x754   :  { %v5625_v50 = vsel %vm655_vm13, %v652_v27, %v4010_v49 }
 0x755   :  { %v5194_v36 = vpack.i.bf16 %v5625_v50, %v5620_v45 }
 0x757   :  { %5195 = vrot.lane.b32.xlu1 %v5194_v36, %s5318_s20 }
 0x759   :  { %v5260_v51 = vpop.eup %5259 }
 0x75a   :  { %v4011_v52 = vadd.f32 -1.0, %v5260_v51 }
 0x75c   :  { %v5630_v29 = vsel %vm656_vm14, %v653_v31, %v4011_v52  ;;  %v4039_v52 = vld [vmem:[%s6716_s4 + $0x58] sm:$0xff] }
 0x75d   :  { %678 = vrot.lane.b32.xlu0 %v5630_v29, %s5318_s20  ;;  %v5189_v55 = vpack.i.bf16 %v5630_v29, %v5625_v50  ;;  %v712_v8 = vpack.c.bf16 %v5620_v45, %v5630_v29 }
 0x75f   :  { %721 = vperm.xlu1 %5167, %v4016_v53   ;;  %5190 = vrot.lane.b32.xlu2 %v5189_v55, %s5317_s19 }
 0x765   :  { %726 = vperm.xlu0 %5166, %v4017_v56  }
 0x767   :  { %731 = vperm.xlu2 %5168, %v4018_v57  }
 0x7b9   :  { %v5191_v59 = vpop.permute.xlu2 %5190 }
 0x7ba   :  { %v5193_v61 = vunpack.i.h.bf16 %v5191_v59  ;;  %v5192_v62 = vunpack.i.l.bf16 %v5191_v59 }
 0x7bc   :  { %v701_v2 = vsel %vm248_vm15, %v5193_v61, 0.0  ;;  %v700_v3 = vsel %vm248_vm15, %v5192_v62, 0.0 }
 0x7bd   :  { %v4024_v5 = vpack.c.bf16 %v701_v2, %v700_v3  ;;  %v4034_v3 = vld [vmem:[%s6717_s3 + $0x48] sm:$0xff] }
 0x7bf   :  { %v696_v60 = vpop.permute.xlu0 %695 }
 0x7c0   :  { %v702_v63 = vsel %vm248_vm15, %v696_v60, 0.0 }
 0x7c1   :  { %v705_v0 = vsel %vm5464_vm0, %v702_v63, 0.0  ;;  %v732_v34 = vpop.permute.xlu2 %731 }
 0x7c2   :  { %v714_v1 = vpack.c.bf16 %v705_v0, %v705_v0 }
 0x7c4   :  { %v749_v4 = vsel %vm296_vm1, %v714_v1, 0 }
 0x7c5   :  { %754 = vmatpush.bf16.msra.mxu3 %v749_v4 }
 0x7c9   :  { %v5196_v6 = vpop.permute.xlu1 %5195  ;;  %4025 = vmatpush.bf16.msk.msra.mxu3 %vm5477_vm2, %v4024_v5 }
 0x7ca   :  { %v5197_v7 = vunpack.i.l.bf16 %v5196_v6  ;;  %v5198_v10 = vunpack.i.h.bf16 %v5196_v6 }
 0x7cc   :  { %v687_v9 = vsel %vm232_vm6, 0.0, %v5197_v7  ;;  %v685_v14 = vsel %vm232_vm6, 0.0, %v5198_v10 }
 0x7cd   :  { %756 = vmatpush.bf16.msra.mxu3 %v712_v8  ;;  %v4027_v12 = vpack.c.bf16 %v5625_v50, %v687_v9 }
 0x7cf   :  { %v679_v11 = vpop.permute.xlu0 %678 }
 0x7d0   :  { %v686_v13 = vsel %vm232_vm6, 0.0, %v679_v11  ;;  %v4038_v11 = vld [vmem:[%s6716_s4 + $0x50] sm:$0xff] }
 0x7d1   :  { %4028 = vmatpush.bf16.msk.msra.mxu3 %vm5486_vm9, %v4027_v12  ;;  %v4030_v16 = vpack.c.bf16 %v686_v13, %v685_v14  ;;  %v722_v24 = vpop.permute.xlu1 %721 }
 0x7d5   :  { %4031 = vmatpush.bf16.msk.msra.mxu3 %vm5495_vm10, %v4030_v16 }
 0x7d7   :  { %v727_v30 = vpop.permute.xlu0 %726 }
 0x7d8   :  { %4032 = vmatmul.msk.bf16.vlgmr.msra.gmra.mxu3 %vm289_vm11, %v4955_v17 }
 0x7d9   :  { %3528 = vmatpush.bf16.msrb.mxu3 %v4966_v35  ;;  %v4994_v35 = vld [vmem:[%s6720_s7 + $0x118] sm:$0xff] }
 0x7e8   :  { %4033 = vmatmul.msk.bf16.gmra.mxu3 %vm289_vm11, %v741_v21 }
 0x85b   :  { %v760_v25 = vpop.f32.mrf.mxu3 }
 0x85c   :  { %v761_v26 = vadd.f32 %v760_v25, %v722_v24  ;;  %v4035_v25 = vld [vmem:[%s6717_s3 + $0x50] sm:$0xff] }
 0x85e   :  { %v769_v28 = vsel %vm111_vm3, %v761_v26, 0.0 }
 0x85f   :  { %770 = vadd.xlane.f32.xlu1 %v769_v28 }
 0x863   :  { %v762_v32 = vpop.f32.mrf.mxu3 }
 0x864   :  { %v763_v33 = vadd.f32 %v762_v32, %v727_v30 }
 0x866   :  { %v772_v15 = vsel %vm111_vm3, %v763_v33, 0.0 }
 0x867   :  { %773 = vadd.xlane.f32.xlu0 %v772_v15 }
 0x86b   :  { %v765_v37 = vpop.f32.mrf.mxu3 }
 0x86c   :  { %v766_v38 = vadd.f32 %v765_v37, %v732_v34  ;;  %v4037_v37 = vld [vmem:[%s6716_s4 + $0x48] sm:$0xff] }
 0x86e   :  { %v775_v27 = vsel %vm111_vm3, %v766_v38, 0.0 }
 0x86f   :  { %776 = vadd.xlane.f32.xlu2 %v775_v27 }
 0x873   :  { %v767_v39 = vpop.f32.mrf.mxu3 }
 0x8d2   :  { %v771_v20 = vpop.xlane.xlu1 %770 }
 0x8d3   :  { %v778_v41 = vmul.f32 0.008064516, %v771_v20 }
 0x8d5   :  { %v5675_v42 = vsub.f32 %v761_v26, %v778_v41 }
 0x8d7   :  { %v784_v40 = vmul.f32 %v5675_v42, %v5675_v42 }
 0x8d9   :  { %v787_v43 = vsel %vm111_vm3, %v784_v40, 0.0 }
 0x8da   :  { %788 = vadd.xlane.f32.xlu1 %v787_v43  ;;  %v774_v44 = vpop.xlane.xlu0 %773 }
 0x8db   :  { %v779_v46 = vmul.f32 0.008064516, %v774_v44 }
 0x8dd   :  { %v5684_v49 = vsub.f32 %v763_v33, %v779_v46  ;;  %v4036_v33 = vld [vmem:[%s6717_s3 + $0x58] sm:$0xff] }
 0x8df   :  { %v785_v51 = vmul.f32 %v5684_v49, %v5684_v49 }
 0x8e1   :  { %v790_v53 = vsel %vm111_vm3, %v785_v51, 0.0 }
 0x8e2   :  { %v777_v23 = vpop.xlane.xlu2 %776 }
 0x8e3   :  { %v780_v31 = vmul.f32 0.008064516, %v777_v23 }
 0x8e5   :  { %v5680_v22 = vsub.f32 %v766_v38, %v780_v31 }
 0x8e7   :  { %v786_v48 = vmul.f32 %v5680_v22, %v5680_v22 }
 0x8e9   :  { %v793_v36 = vsel %vm111_vm3, %v786_v48, 0.0 }
 0x8ea   :  { %794 = vadd.xlane.f32.xlu2 %v793_v36 }
 0x8f2   :  { %791 = vadd.xlane.f32.xlu2 %v790_v53 }
 0x8f3   :  { %873 = vperm.xlu1 %5167, %v4039_v52  }
 0x94d   :  { %v789_v55 = vpop.xlane.xlu1 %788 }
 0x94e   :  { %v796_v56 = vmul.f32 0.008064516, %v789_v55 }
 0x950   :  { %v803_v57 = vadd.f32 1e-05, %v796_v56 }
 0x952   :  { %5261 = vrsqrt.f32 %v803_v57  ;;  %vm812_vm5 = vweird.f32 %v803_v57 }
 0x958   :  { %v5262_v59 = vpop.eup %5261 }
 0x959   :  { %v807_v60 = vmul.f32 %v5262_v59, %v803_v57  ;;  %vm813_vm4 = vweird.f32 %v5262_v59 }
 0x95a   :  { %vm814_vm7 = vmor %vm812_vm5, %vm813_vm4 }
 0x95b   :  { %v808_v61 = vmul.f32 %v5262_v59, %v807_v60 }
 0x95d   :  { %v809_v62 = vmul.f32 0.5, %v808_v61  ;;  %v795_v63 = vpop.xlane.xlu2 %794 }
 0x95e   :  { %v798_v0 = vmul.f32 0.008064516, %v795_v63 }
 0x95f   :  { %v810_v1 = vsub.f32 1.5, %v809_v62 }
 0x960   :  { %v805_v2 = vadd.f32 1e-05, %v798_v0 }
 0x961   :  { %v811_v4 = vmul.f32 %v5262_v59, %v810_v1 }
 0x962   :  { %5263 = vrsqrt.f32 %v805_v2  ;;  %vm832_vm4 = vweird.f32 %v805_v2 }
 0x963   :  { %v815_v5 = vsel %vm814_vm7, %v5262_v59, %v811_v4  ;;  %v4047_v4 = vld [vmem:[%s6718_s6 + $0x50] sm:$0xff] }
 0x964   :  { %v836_v6 = vmul.f32 %v4034_v3, %v815_v5  ;;  %v4046_v3 = vld [vmem:[%s6718_s6 + $0x48] sm:$0xff]  ;;  %v4048_v5 = vld [vmem:[%s6718_s6 + $0x58] sm:$0xff] }
 0x965   :  { %v792_v7 = vpop.xlane.xlu2 %791  ;;  %v874_v31 = vpop.permute.xlu1 %873 }
 0x966   :  { %v797_v8 = vmul.f32 0.008064516, %v792_v7  ;;  %841 = vperm.xlu2 %5168, %v836_v6  }
 0x968   :  { %v804_v9 = vadd.f32 1e-05, %v797_v8  ;;  %v5264_v10 = vpop.eup %5263 }
 0x969   :  { %v827_v12 = vmul.f32 %v5264_v10, %v805_v2  ;;  %vm833_vm14 = vweird.f32 %v5264_v10 }
 0x96a   :  { %5265 = vrsqrt.f32 %v804_v9  ;;  %vm822_vm12 = vweird.f32 %v804_v9  ;;  %vm834_vm5 = vmor %vm832_vm4, %vm833_vm14 }
 0x96b   :  { %v828_v14 = vmul.f32 %v5264_v10, %v827_v12 }
 0x96d   :  { %v829_v18 = vmul.f32 0.5, %v828_v14 }
 0x96e   :  { %868 = vperm.xlu2 %5168, %v4038_v11  }
 0x96f   :  { %v830_v24 = vsub.f32 1.5, %v829_v18 }
 0x970   :  { %v5266_v13 = vpop.eup %5265 }
 0x971   :  { %v817_v16 = vmul.f32 %v5266_v13, %v804_v9  ;;  %vm823_vm8 = vweird.f32 %v5266_v13  ;;  %v831_v32 = vmul.f32 %v5264_v10, %v830_v24 }
 0x972   :  { %vm824_vm13 = vmor %vm822_vm12, %vm823_vm8 }
 0x973   :  { %v818_v17 = vmul.f32 %v5266_v13, %v817_v16  ;;  %v835_v15 = vsel %vm834_vm5, %v5264_v10, %v831_v32 }
 0x974   :  { %v838_v34 = vmul.f32 %v4036_v33, %v835_v15  ;;  %v4956_v33 = vld [vmem:[%s6719_s5 + $0x24] sm:$0xff]  ;;  %v4045_v15 = vld [vmem:[%s6719_s5 + $0x2c] sm:$0xf] }
 0x975   :  { %v819_v19 = vmul.f32 0.5, %v818_v17 }
 0x977   :  { %v820_v21 = vsub.f32 1.5, %v819_v19 }
 0x979   :  { %v821_v26 = vmul.f32 %v5266_v13, %v820_v21 }
 0x97b   :  { %v825_v28 = vsel %vm824_vm13, %v5266_v13, %v821_v26 }
 0x97c   :  { %v837_v30 = vmul.f32 %v4035_v25, %v825_v28 }
 0x97e   :  { %846 = vperm.xlu0 %5166, %v837_v30  }
 0x986   :  { %851 = vperm.xlu0 %5166, %v838_v34   ;;  %v963_v34 = vunpack.c.l.b16 %v4045_v15 }
 0x98e   :  { %863 = vperm.xlu0 %5166, %v4037_v37   ;;  %v965_v37 = vpack.c.b16 %v963_v34, %v963_v34  ;;  %v4065_v34 = vld [vmem:[%s6717_s3 + $0x68] sm:$0xff] }
 0x9c0   :  { %v842_v38 = vpop.permute.xlu2 %841 }
 0x9c1   :  { %v854_v36 = vmul.f32 %v842_v38, %v5675_v42 }
 0x9c8   :  { %v869_v20 = vpop.permute.xlu2 %868 }
 0x9f0   :  { %v847_v27 = vpop.permute.xlu0 %846 }
 0x9f1   :  { %v855_v39 = vmul.f32 %v847_v27, %v5684_v49 }
 0x9f3   :  { %v877_v41 = vadd.f32 %v869_v20, %v855_v39 }
 0x9f5   :  { %v883_v40 = vmin.f32 %v877_v41, 0.0  ;;  %vm880_vm8 = vcmp.gt.f32.partialorder %v877_v41, 0.0 }
 0x9f7   :  { %v887_v44 = vmul.f32 1.442695, %v883_v40 }
 0x9f8   :  { %v852_v43 = vpop.permute.xlu0 %851 }
 0x9f9   :  { %v856_v23 = vmul.f32 %v852_v43, %v5680_v22  ;;  %5267 = vpow2.f32 %v887_v44 }
 0x9fb   :  { %v878_v46 = vadd.f32 %v874_v31, %v856_v23 }
 0x9fd   :  { %v884_v48 = vmin.f32 %v878_v46, 0.0  ;;  %vm881_vm7 = vcmp.gt.f32.partialorder %v878_v46, 0.0 }
 0x9ff   :  { %v889_v51 = vmul.f32 1.442695, %v884_v48  ;;  %v5268_v55 = vpop.eup %5267 }
 0xa00   :  { %v864_v52 = vpop.permute.xlu0 %863  ;;  %v4041_v57 = vadd.f32 -1.0, %v5268_v55 }
 0xa01   :  { %v876_v53 = vadd.f32 %v864_v52, %v854_v36  ;;  %5269 = vpow2.f32 %v889_v51 }
 0xa02   :  { %v895_v61 = vsel %vm880_vm8, %v877_v41, %v4041_v57 }
 0xa03   :  { %v882_v56 = vmin.f32 %v876_v53, 0.0  ;;  %vm879_vm12 = vcmp.gt.f32.partialorder %v876_v53, 0.0 }
 0xa05   :  { %v885_v49 = vmul.f32 1.442695, %v882_v56 }
 0xa07   :  { %v5270_v59 = vpop.eup %5269  ;;  %5271 = vpow2.f32 %v885_v49 }
 0xa08   :  { %v4042_v60 = vadd.f32 -1.0, %v5270_v59 }
 0xa0a   :  { %v896_v22 = vsel %vm881_vm7, %v878_v46, %v4042_v60 }
 0xa0b   :  { %919 = vrot.lane.b32.xlu1 %v896_v22, %s5317_s19  ;;  %v936_v62 = vpack.c.bf16 %v896_v22, %v895_v61 }
 0xa0d   :  { %v5272_v63 = vpop.eup %5271 }
 0xa0e   :  { %v4040_v42 = vadd.f32 -1.0, %v5272_v63 }
 0xa10   :  { %v894_v0 = vsel %vm879_vm12, %v876_v53, %v4040_v42 }
 0xa11   :  { %v5204_v1 = vpack.i.bf16 %v894_v0, %v896_v22  ;;  %v5199_v2 = vpack.i.bf16 %v895_v61, %v894_v0 }
 0xa13   :  { %5205 = vrot.lane.b32.xlu2 %v5204_v1, %s5318_s20  ;;  %902 = vrot.lane.b32.xlu1 %v895_v61, %s5318_s20  ;;  %v4069_v1 = vld [vmem:[%s6716_s4 + $0x70] sm:$0xff] }
 0xa14   :  { %5200 = vrot.lane.b32.xlu0 %v5199_v2, %s5317_s19  ;;  %v4067_v2 = vld [vmem:[%s6716_s4 + $0x60] sm:$0xff] }
 0xa1b   :  { %945 = vperm.xlu2 %5168, %v4046_v3   ;;  %950 = vperm.xlu1 %5167, %v4047_v4  }
 0xa1c   :  { %955 = vperm.xlu0 %5166, %v4048_v5  }
 0xa6d   :  { %v5206_v14 = vpop.permute.xlu2 %5205 }
 0xa6e   :  { %v5207_v19 = vunpack.i.l.bf16 %v5206_v14  ;;  %v5208_v25 = vunpack.i.h.bf16 %v5206_v14 }
 0xa70   :  { %v911_v21 = vsel %vm232_vm6, 0.0, %v5207_v19  ;;  %v909_v30 = vsel %vm232_vm6, 0.0, %v5208_v25 }
 0xa71   :  { %v4057_v26 = vpack.c.bf16 %v894_v0, %v911_v21  ;;  %v4064_v21 = vld [vmem:[%s6717_s3 + $0x60] sm:$0xff] }
 0xa75   :  { %v946_v38 = vpop.permute.xlu2 %945 }
 0xa7d   :  { %v920_v6 = vpop.permute.xlu1 %919 }
 0xa7e   :  { %v926_v7 = vsel %vm248_vm15, %v920_v6, 0.0 }
 0xa7f   :  { %v929_v8 = vsel %vm5464_vm0, %v926_v7, 0.0 }
 0xa80   :  { %v938_v9 = vpack.c.bf16 %v929_v8, %v929_v8 }
 0xa82   :  { %v973_v10 = vsel %vm296_vm1, %v938_v9, 0 }
 0xa83   :  { %978 = vmatpush.bf16.msrb.mxu0 %v973_v10 }
 0xa85   :  { %v903_v24 = vpop.permute.xlu1 %902 }
 0xa86   :  { %v5201_v11 = vpop.permute.xlu0 %5200  ;;  %v910_v28 = vsel %vm232_vm6, 0.0, %v903_v24 }
 0xa87   :  { %v5203_v12 = vunpack.i.h.bf16 %v5201_v11  ;;  %v5202_v13 = vunpack.i.l.bf16 %v5201_v11  ;;  %v4060_v32 = vpack.c.bf16 %v910_v28, %v909_v30 }
 0xa89   :  { %v925_v16 = vsel %vm248_vm15, %v5203_v12, 0.0  ;;  %v924_v17 = vsel %vm248_vm15, %v5202_v13, 0.0 }
 0xa8a   :  { %v4054_v18 = vpack.c.bf16 %v925_v16, %v924_v17 }
 0xa8c   :  { %4055 = vmatpush.bf16.msk.msrb.mxu0 %vm5477_vm2, %v4054_v18 }
 0xa8d   :  { %v951_v41 = vpop.permute.xlu1 %950 }
 0xa8e   :  { %v956_v23 = vpop.permute.xlu0 %955 }
 0xa90   :  { %980 = vmatpush.bf16.msrb.mxu0 %v936_v62 }
 0xa94   :  { %4058 = vmatpush.bf16.msk.msrb.mxu0 %vm5486_vm9, %v4057_v26 }
 0xa98   :  { %4061 = vmatpush.bf16.msk.msrb.mxu0 %vm5495_vm10, %v4060_v32 }
 0xa9b   :  { %4062 = vmatmul.msk.bf16.vlgmr.msrb.gmra.mxu0 %vm289_vm11, %v4956_v33 }
 0xaab   :  { %4063 = vmatmul.msk.bf16.gmra.mxu0 %vm289_vm11, %v965_v37 }
 0xb18   :  { %v984_v27 = vpop.f32.mrf.mxu0 }
 0xb19   :  { %v985_v39 = vadd.f32 %v984_v27, %v946_v38 }
 0xb1b   :  { %v993_v20 = vsel %vm111_vm3, %v985_v39, 0.0 }
 0xb1c   :  { %994 = vadd.xlane.f32.xlu2 %v993_v20 }
 0xb20   :  { %v986_v40 = vpop.f32.mrf.mxu0 }
 0xb21   :  { %v987_v43 = vadd.f32 %v986_v40, %v951_v41  ;;  %v4066_v40 = vld [vmem:[%s6717_s3 + $0x70] sm:$0xff] }
 0xb23   :  { %v996_v44 = vsel %vm111_vm3, %v987_v43, 0.0 }
 0xb24   :  { %997 = vadd.xlane.f32.xlu1 %v996_v44 }
 0xb28   :  { %v989_v31 = vpop.f32.mrf.mxu0 }
 0xb29   :  { %v990_v46 = vadd.f32 %v989_v31, %v956_v23  ;;  %v4068_v31 = vld [vmem:[%s6716_s4 + $0x68] sm:$0xff] }
 0xb2b   :  { %v999_v48 = vsel %vm111_vm3, %v990_v46, 0.0 }
 0xb2c   :  { %1000 = vadd.xlane.f32.xlu0 %v999_v48 }
 0xb30   :  { %v991_v36 = vpop.f32.mrf.mxu0 }
 0xb8f   :  { %v995_v51 = vpop.xlane.xlu2 %994 }
 0xb90   :  { %v1002_v52 = vmul.f32 0.008064516, %v995_v51 }
 0xb92   :  { %v5750_v53 = vsub.f32 %v985_v39, %v1002_v52 }
 0xb94   :  { %v1008_v55 = vmul.f32 %v5750_v53, %v5750_v53 }
 0xb96   :  { %v1011_v56 = vsel %vm111_vm3, %v1008_v55, 0.0 }
 0xb97   :  { %v998_v49 = vpop.xlane.xlu1 %997  ;;  %1012 = vadd.xlane.f32.xlu2 %v1011_v56 }
 0xb98   :  { %v1003_v57 = vmul.f32 0.008064516, %v998_v49 }
 0xb9a   :  { %v5755_v59 = vsub.f32 %v987_v43, %v1003_v57 }
 0xb9c   :  { %v1009_v60 = vmul.f32 %v5755_v59, %v5755_v59 }
 0xb9e   :  { %v1014_v22 = vsel %vm111_vm3, %v1009_v60, 0.0 }
 0xb9f   :  { %v1001_v61 = vpop.xlane.xlu0 %1000  ;;  %1015 = vadd.xlane.f32.xlu1 %v1014_v22 }
 0xba0   :  { %v1004_v62 = vmul.f32 0.008064516, %v1001_v61 }
 0xba2   :  { %v5760_v63 = vsub.f32 %v990_v46, %v1004_v62 }
 0xba4   :  { %v1010_v42 = vmul.f32 %v5760_v63, %v5760_v63 }
 0xba6   :  { %v1017_v0 = vsel %vm111_vm3, %v1010_v42, 0.0 }
 0xba7   :  { %1018 = vadd.xlane.f32.xlu0 %v1017_v0 }
 0xbaf   :  { %1097 = vperm.xlu2 %5168, %v4069_v1  }
 0xbb7   :  { %1087 = vperm.xlu2 %5168, %v4067_v2  }
 0xc0a   :  { %v1013_v3 = vpop.xlane.xlu2 %1012 }
 0xc0b   :  { %v1020_v4 = vmul.f32 0.008064516, %v1013_v3 }
 0xc0d   :  { %v1027_v5 = vadd.f32 1e-05, %v1020_v4 }
 0xc0f   :  { %5273 = vrsqrt.f32 %v1027_v5  ;;  %vm1036_vm14 = vweird.f32 %v1027_v5 }
 0xc12   :  { %v1016_v6 = vpop.xlane.xlu1 %1015  ;;  %v1098_v46 = vpop.permute.xlu2 %1097 }
 0xc13   :  { %v1021_v7 = vmul.f32 0.008064516, %v1016_v6 }
 0xc15   :  { %v5274_v8 = vpop.eup %5273  ;;  %v1028_v9 = vadd.f32 1e-05, %v1021_v7 }
 0xc16   :  { %v1031_v10 = vmul.f32 %v5274_v8, %v1027_v5  ;;  %vm1037_vm13 = vweird.f32 %v5274_v8 }
 0xc17   :  { %5275 = vrsqrt.f32 %v1028_v9  ;;  %vm1038_vm4 = vmor %vm1036_vm14, %vm1037_vm13  ;;  %vm1046_vm7 = vweird.f32 %v1028_v9 }
 0xc18   :  { %v1032_v11 = vmul.f32 %v5274_v8, %v1031_v10 }
 0xc1a   :  { %v1033_v12 = vmul.f32 0.5, %v1032_v11  ;;  %v1019_v13 = vpop.xlane.xlu0 %1018  ;;  %v1088_v51 = vpop.permute.xlu2 %1087 }
 0xc1b   :  { %v1022_v14 = vmul.f32 0.008064516, %v1019_v13  ;;  %v4077_v13 = vld [vmem:[%s6718_s6 + $0x68] sm:$0xff] }
 0xc1c   :  { %v1034_v16 = vsub.f32 1.5, %v1033_v12  ;;  %v4076_v12 = vld [vmem:[%s6718_s6 + $0x60] sm:$0xff] }
 0xc1d   :  { %v5276_v17 = vpop.eup %5275  ;;  %v1029_v18 = vadd.f32 1e-05, %v1022_v14  ;;  %v4078_v14 = vld [vmem:[%s6718_s6 + $0x70] sm:$0xff] }
 0xc1e   :  { %v1041_v19 = vmul.f32 %v5276_v17, %v1028_v9  ;;  %v1035_v24 = vmul.f32 %v5274_v8, %v1034_v16  ;;  %vm1047_vm5 = vweird.f32 %v5276_v17 }
 0xc1f   :  { %5277 = vrsqrt.f32 %v1029_v18  ;;  %vm1048_vm8 = vmor %vm1046_vm7, %vm1047_vm5  ;;  %vm1056_vm13 = vweird.f32 %v1029_v18 }
 0xc20   :  { %v1042_v25 = vmul.f32 %v5276_v17, %v1041_v19  ;;  %v1039_v26 = vsel %vm1038_vm4, %v5274_v8, %v1035_v24 }
 0xc21   :  { %v1060_v28 = vmul.f32 %v4064_v21, %v1039_v26 }
 0xc22   :  { %v1043_v30 = vmul.f32 0.5, %v1042_v25 }
 0xc23   :  { %1065 = vperm.xlu1 %5167, %v1060_v28  }
 0xc24   :  { %v1044_v32 = vsub.f32 1.5, %v1043_v30 }
 0xc25   :  { %v5278_v33 = vpop.eup %5277 }
 0xc26   :  { %v1051_v15 = vmul.f32 %v5278_v33, %v1029_v18  ;;  %v1045_v37 = vmul.f32 %v5276_v17, %v1044_v32  ;;  %vm1057_vm12 = vweird.f32 %v5278_v33 }
 0xc27   :  { %vm1058_vm14 = vmor %vm1056_vm13, %vm1057_vm12 }
 0xc28   :  { %v1052_v38 = vmul.f32 %v5278_v33, %v1051_v15  ;;  %v1049_v27 = vsel %vm1048_vm8, %v5276_v17, %v1045_v37 }
 0xc29   :  { %v1061_v39 = vmul.f32 %v4065_v34, %v1049_v27 }
 0xc2a   :  { %v1053_v20 = vmul.f32 0.5, %v1052_v38 }
 0xc2b   :  { %1070 = vperm.xlu0 %5166, %v1061_v39  }
 0xc2c   :  { %v1054_v41 = vsub.f32 1.5, %v1053_v20 }
 0xc2e   :  { %v1055_v43 = vmul.f32 %v5278_v33, %v1054_v41 }
 0xc30   :  { %v1059_v44 = vsel %vm1058_vm14, %v5278_v33, %v1055_v43  ;;  %v4957_v43 = vld [vmem:[%s6719_s5 + $0x30] sm:$0xff] }
 0xc31   :  { %v1062_v23 = vmul.f32 %v4066_v40, %v1059_v44  ;;  %v4075_v44 = vld [vmem:[%s6719_s5 + $0x38] sm:$0xf] }
 0xc33   :  { %1075 = vperm.xlu0 %5166, %v1062_v23   ;;  %v1190_v23 = vunpack.c.l.b16 %v4075_v44  ;;  %v4095_v44 = vld [vmem:[%s6717_s3 + $0x80] sm:$0xff] }
 0xc3b   :  { %1092 = vperm.xlu0 %5166, %v4068_v31   ;;  %v1192_v31 = vpack.c.b16 %v1190_v23, %v1190_v23 }
 0xc95   :  { %v1066_v48 = vpop.permute.xlu1 %1065 }
 0xc96   :  { %v1078_v36 = vmul.f32 %v1066_v48, %v5750_v53 }
 0xc98   :  { %v1100_v52 = vadd.f32 %v1088_v51, %v1078_v36 }
 0xc9a   :  { %v1103_v56 = vadd.f32 %v1100_v52, %v5625_v50 }
 0xc9c   :  { %v1109_v49 = vmin.f32 %v1103_v56, 0.0  ;;  %vm1106_vm4 = vcmp.gt.f32.partialorder %v1103_v56, 0.0 }
 0xc9d   :  { %v1071_v55 = vpop.permute.xlu0 %1070 }
 0xc9e   :  { %v1112_v22 = vmul.f32 1.442695, %v1109_v49  ;;  %v1079_v42 = vmul.f32 %v1071_v55, %v5755_v59 }
 0xca0   :  { %5279 = vpow2.f32 %v1112_v22 }
 0xca5   :  { %v1076_v57 = vpop.permute.xlu0 %1075 }
 0xca6   :  { %v1080_v60 = vmul.f32 %v1076_v57, %v5760_v63  ;;  %v5280_v4 = vpop.eup %5279 }
 0xca7   :  { %v4070_v6 = vadd.f32 -1.0, %v5280_v4 }
 0xca8   :  { %v1102_v61 = vadd.f32 %v1098_v46, %v1080_v60 }
 0xca9   :  { %v5791_v8 = vsel %vm1106_vm4, %v1103_v56, %v4070_v6 }
 0xcaa   :  { %v1105_v62 = vadd.f32 %v1102_v61, %v5620_v45 }
 0xcac   :  { %v1111_v0 = vmin.f32 %v1105_v62, 0.0  ;;  %vm1108_vm5 = vcmp.gt.f32.partialorder %v1105_v62, 0.0 }
 0xcad   :  { %v1093_v1 = vpop.permute.xlu0 %1092 }
 0xcae   :  { %v1116_v2 = vmul.f32 1.442695, %v1111_v0  ;;  %v1101_v53 = vadd.f32 %v1093_v1, %v1079_v42 }
 0xcb0   :  { %v1104_v3 = vadd.f32 %v1101_v53, %v5630_v29  ;;  %5281 = vpow2.f32 %v1116_v2 }
 0xcb2   :  { %v1110_v50 = vmin.f32 %v1104_v3, 0.0  ;;  %vm1107_vm7 = vcmp.gt.f32.partialorder %v1104_v3, 0.0 }
 0xcb4   :  { %v1114_v5 = vmul.f32 1.442695, %v1110_v50 }
 0xcb6   :  { %v5282_v7 = vpop.eup %5281  ;;  %5283 = vpow2.f32 %v1114_v5 }
 0xcb7   :  { %v4072_v63 = vadd.f32 -1.0, %v5282_v7 }
 0xcb9   :  { %v5789_v45 = vsel %vm1108_vm5, %v1105_v62, %v4072_v63 }
 0xcba   :  { %1146 = vrot.lane.b32.xlu1 %v5789_v45, %s5317_s19  ;;  %v5214_v29 = vpack.i.bf16 %v5791_v8, %v5789_v45 }
 0xcbc   :  { %v5284_v59 = vpop.eup %5283  ;;  %5215 = vrot.lane.b32.xlu0 %v5214_v29, %s5318_s20 }
 0xcbd   :  { %v4071_v9 = vadd.f32 -1.0, %v5284_v59 }
 0xcbf   :  { %v5798_v10 = vsel %vm1107_vm7, %v1104_v3, %v4071_v9 }
 0xcc0   :  { %v5209_v11 = vpack.i.bf16 %v5798_v10, %v5791_v8  ;;  %v1163_v34 = vpack.c.bf16 %v5789_v45, %v5798_v10 }
 0xcc2   :  { %1129 = vrot.lane.b32.xlu1 %v5798_v10, %s5318_s20  ;;  %5210 = vrot.lane.b32.xlu2 %v5209_v11, %s5317_s19  ;;  %v4099_v11 = vld [vmem:[%s6716_s4 + $0x88] sm:$0xff] }
 0xcc4   :  { %1172 = vperm.xlu0 %5166, %v4076_v12  }
 0xcca   :  { %1177 = vperm.xlu1 %5167, %v4077_v13   ;;  %1182 = vperm.xlu2 %5168, %v4078_v14  }
 0xd1c   :  { %v5211_v16 = vpop.permute.xlu2 %5210 }
 0xd1d   :  { %v5213_v18 = vunpack.i.h.bf16 %v5211_v16  ;;  %v5212_v19 = vunpack.i.l.bf16 %v5211_v16 }
 0xd1f   :  { %v1152_v26 = vsel %vm248_vm15, %v5213_v18, 0.0  ;;  %v1151_v28 = vsel %vm248_vm15, %v5212_v19, 0.0 }
 0xd20   :  { %v4084_v33 = vpack.c.bf16 %v1152_v26, %v1151_v28 }
 0xd24   :  { %v1183_v57 = vpop.permute.xlu2 %1182 }
 0xd2c   :  { %v1147_v17 = vpop.permute.xlu1 %1146 }
 0xd2d   :  { %v1153_v21 = vsel %vm248_vm15, %v1147_v17, 0.0 }
 0xd2e   :  { %v1156_v24 = vsel %vm5464_vm0, %v1153_v21, 0.0  ;;  %v5216_v32 = vpop.permute.xlu0 %5215 }
 0xd2f   :  { %v1165_v25 = vpack.c.bf16 %v1156_v24, %v1156_v24  ;;  %v5217_v15 = vunpack.i.l.bf16 %v5216_v32  ;;  %v5218_v27 = vunpack.i.h.bf16 %v5216_v32 }
 0xd31   :  { %v1200_v30 = vsel %vm296_vm1, %v1165_v25, 0  ;;  %v1138_v37 = vsel %vm232_vm6, 0.0, %v5217_v15  ;;  %v1136_v41 = vsel %vm232_vm6, 0.0, %v5218_v27 }
 0xd32   :  { %1205 = vmatpush.bf16.msrb.mxu1 %v1200_v30  ;;  %v4087_v39 = vpack.c.bf16 %v5791_v8, %v1138_v37 }
 0xd34   :  { %v1130_v38 = vpop.permute.xlu1 %1129 }
 0xd35   :  { %v1137_v20 = vsel %vm232_vm6, 0.0, %v1130_v38 }
 0xd36   :  { %4085 = vmatpush.bf16.msk.msrb.mxu1 %vm5477_vm2, %v4084_v33  ;;  %v4090_v40 = vpack.c.bf16 %v1137_v20, %v1136_v41  ;;  %v1173_v46 = vpop.permute.xlu0 %1172 }
 0xd3a   :  { %1207 = vmatpush.bf16.msrb.mxu1 %v1163_v34  ;;  %v4094_v34 = vld [vmem:[%s6717_s3 + $0x78] sm:$0xff] }
 0xd3c   :  { %v1178_v52 = vpop.permute.xlu1 %1177 }
 0xd3e   :  { %4088 = vmatpush.bf16.msk.msrb.mxu1 %vm5486_vm9, %v4087_v39 }
 0xd42   :  { %4091 = vmatpush.bf16.msk.msrb.mxu1 %vm5495_vm10, %v4090_v40 }
 0xd45   :  { %4092 = vmatmul.msk.bf16.vlgmr.msrb.gmra.mxu1 %vm289_vm11, %v4957_v43 }
 0xd55   :  { %4093 = vmatmul.msk.bf16.gmra.mxu1 %vm289_vm11, %v1192_v31 }
 0xdc2   :  { %v1211_v48 = vpop.f32.mrf.mxu1 }
 0xdc3   :  { %v1212_v36 = vadd.f32 %v1211_v48, %v1173_v46  ;;  %v4098_v48 = vld [vmem:[%s6716_s4 + $0x80] sm:$0xff] }
 0xdc5   :  { %v1220_v51 = vsel %vm111_vm3, %v1212_v36, 0.0 }
 0xdc6   :  { %1221 = vadd.xlane.f32.xlu0 %v1220_v51 }
 0xdca   :  { %v1213_v55 = vpop.f32.mrf.mxu1 }
 0xdcb   :  { %v1214_v56 = vadd.f32 %v1213_v55, %v1178_v52  ;;  %v4096_v55 = vld [vmem:[%s6717_s3 + $0x88] sm:$0xff] }
 0xdcd   :  { %v1223_v49 = vsel %vm111_vm3, %v1214_v56, 0.0 }
 0xdce   :  { %1224 = vadd.xlane.f32.xlu1 %v1223_v49 }
 0xdd2   :  { %v1216_v60 = vpop.f32.mrf.mxu1 }
 0xdd3   :  { %v1217_v22 = vadd.f32 %v1216_v60, %v1183_v57  ;;  %v4097_v60 = vld [vmem:[%s6716_s4 + $0x78] sm:$0xff] }
 0xdd5   :  { %v1226_v61 = vsel %vm111_vm3, %v1217_v22, 0.0 }
 0xdd6   :  { %1227 = vadd.xlane.f32.xlu2 %v1226_v61 }
 0xdda   :  { %v1218_v62 = vpop.f32.mrf.mxu1 }
 0xe39   :  { %v1222_v42 = vpop.xlane.xlu0 %1221 }
 0xe3a   :  { %v1229_v0 = vmul.f32 0.008064516, %v1222_v42 }
 0xe3c   :  { %v5843_v1 = vsub.f32 %v1212_v36, %v1229_v0 }
 0xe3e   :  { %v1235_v2 = vmul.f32 %v5843_v1, %v5843_v1 }
 0xe40   :  { %v1238_v53 = vsel %vm111_vm3, %v1235_v2, 0.0 }
 0xe41   :  { %v1225_v3 = vpop.xlane.xlu1 %1224  ;;  %1239 = vadd.xlane.f32.xlu0 %v1238_v53 }
 0xe42   :  { %v1230_v4 = vmul.f32 0.008064516, %v1225_v3 }
 0xe44   :  { %v5848_v50 = vsub.f32 %v1214_v56, %v1230_v4 }
 0xe46   :  { %v1236_v5 = vmul.f32 %v5848_v50, %v5848_v50 }
 0xe48   :  { %v1241_v6 = vsel %vm111_vm3, %v1236_v5, 0.0 }
 0xe49   :  { %v1228_v7 = vpop.xlane.xlu2 %1227  ;;  %1242 = vadd.xlane.f32.xlu1 %v1241_v6 }
 0xe4a   :  { %v1231_v63 = vmul.f32 0.008064516, %v1228_v7 }
 0xe4c   :  { %v1234_v29 = vsub.f32 %v1217_v22, %v1231_v63 }
 0xe4e   :  { %v1237_v59 = vmul.f32 %v1234_v29, %v1234_v29 }
 0xe50   :  { %v1244_v9 = vsel %vm111_vm3, %v1237_v59, 0.0 }
 0xe51   :  { %1245 = vadd.xlane.f32.xlu2 %v1244_v9 }
 0xe55   :  { %1324 = vperm.xlu0 %5166, %v4099_v11  }
 0xeb4   :  { %v1240_v12 = vpop.xlane.xlu0 %1239 }
 0xeb5   :  { %v1247_v13 = vmul.f32 0.008064516, %v1240_v12 }
 0xeb7   :  { %v1254_v14 = vadd.f32 1e-05, %v1247_v13 }
 0xeb9   :  { %5285 = vrsqrt.f32 %v1254_v14  ;;  %vm1263_vm12 = vweird.f32 %v1254_v14 }
 0xebc   :  { %v1243_v16 = vpop.xlane.xlu1 %1242 }
 0xebd   :  { %v1248_v17 = vmul.f32 0.008064516, %v1243_v16 }
 0xebf   :  { %v5286_v18 = vpop.eup %5285  ;;  %v1255_v19 = vadd.f32 1e-05, %v1248_v17 }
 0xec0   :  { %v1258_v21 = vmul.f32 %v5286_v18, %v1254_v14  ;;  %vm1264_vm8 = vweird.f32 %v5286_v18 }
 0xec1   :  { %5287 = vrsqrt.f32 %v1255_v19  ;;  %vm1265_vm13 = vmor %vm1263_vm12, %vm1264_vm8  ;;  %vm1273_vm4 = vweird.f32 %v1255_v19 }
 0xec2   :  { %v1259_v24 = vmul.f32 %v5286_v18, %v1258_v21 }
 0xec4   :  { %v1260_v25 = vmul.f32 0.5, %v1259_v24  ;;  %v1246_v26 = vpop.xlane.xlu2 %1245 }
 0xec5   :  { %v1249_v28 = vmul.f32 0.008064516, %v1246_v26 }
 0xec6   :  { %v1261_v30 = vsub.f32 1.5, %v1260_v25 }
 0xec7   :  { %v5288_v32 = vpop.eup %5287  ;;  %v1256_v33 = vadd.f32 1e-05, %v1249_v28  ;;  %v1325_v62 = vpop.permute.xlu0 %1324  ;;  %v4106_v28 = vld [vmem:[%s6718_s6 + $0x78] sm:$0xff] }
 0xec8   :  { %v1268_v15 = vmul.f32 %v5288_v32, %v1255_v19  ;;  %v1262_v37 = vmul.f32 %v5286_v18, %v1261_v30  ;;  %vm1274_vm14 = vweird.f32 %v5288_v32  ;;  %v4107_v30 = vld [vmem:[%s6718_s6 + $0x80] sm:$0xff] }
 0xec9   :  { %5289 = vrsqrt.f32 %v1256_v33  ;;  %vm1275_vm5 = vmor %vm1273_vm4, %vm1274_vm14  ;;  %vm1283_vm8 = vweird.f32 %v1256_v33 }
 0xeca   :  { %v1269_v38 = vmul.f32 %v5288_v32, %v1268_v15  ;;  %v1266_v27 = vsel %vm1265_vm13, %v5286_v18, %v1262_v37 }
 0xecb   :  { %v1287_v39 = vmul.f32 %v4094_v34, %v1266_v27 }
 0xecc   :  { %v1270_v20 = vmul.f32 0.5, %v1269_v38 }
 0xecd   :  { %1292 = vperm.xlu1 %5167, %v1287_v39  }
 0xece   :  { %v1271_v41 = vsub.f32 1.5, %v1270_v20 }
 0xecf   :  { %v5290_v40 = vpop.eup %5289 }
 0xed0   :  { %v1278_v43 = vmul.f32 %v5290_v40, %v1256_v33  ;;  %v1272_v23 = vmul.f32 %v5288_v32, %v1271_v41  ;;  %vm1284_vm7 = vweird.f32 %v5290_v40 }
 0xed1   :  { %vm1285_vm12 = vmor %vm1283_vm8, %vm1284_vm7  ;;  %vm1602_vm7 = vcmask 499712  }
 0xed2   :  { %v1279_v31 = vmul.f32 %v5290_v40, %v1278_v43  ;;  %v1276_v46 = vsel %vm1275_vm5, %v5288_v32, %v1272_v23 }
 0xed3   :  { %v1288_v36 = vmul.f32 %v4095_v44, %v1276_v46 }
 0xed4   :  { %v1280_v51 = vmul.f32 0.5, %v1279_v31 }
 0xed5   :  { %1297 = vperm.xlu0 %5166, %v1288_v36   ;;  %1319 = vperm.xlu1 %5167, %v4098_v48  }
 0xed6   :  { %v1281_v52 = vsub.f32 1.5, %v1280_v51 }
 0xed8   :  { %v1282_v56 = vmul.f32 %v5290_v40, %v1281_v52 }
 0xeda   :  { %v1286_v49 = vsel %vm1285_vm12, %v5290_v40, %v1282_v56 }
 0xedb   :  { %v1289_v57 = vmul.f32 %v4096_v55, %v1286_v49 }
 0xedd   :  { %1302 = vperm.xlu2 %5168, %v1289_v57  }
 0xee5   :  { %1314 = vperm.xlu2 %5168, %v4097_v60  }
 0xf37   :  { %v1303_v22 = vpop.permute.xlu2 %1302 }
 0xf38   :  { %v1307_v61 = vmul.f32 %v1303_v22, %v1234_v29 }
 0xf3a   :  { %v1329_v42 = vadd.f32 %v1325_v62, %v1307_v61  ;;  %v4105_v62 = vld [vmem:[%s6719_s5 + $0x44] sm:$0xf] }
 0xf3b   :  { %v1414_v58 = vunpack.c.l.b16 %v4105_v62 }
 0xf3c   :  { %v1335_v0 = vmin.f32 %v1329_v42, 0.0  ;;  %vm1332_vm13 = vcmp.gt.f32.partialorder %v1329_v42, 0.0 }
 0xf3e   :  { %v1340_v2 = vmul.f32 1.442695, %v1335_v0 }
 0xf3f   :  { %v1293_v53 = vpop.permute.xlu1 %1292  ;;  %v1315_v4 = vpop.permute.xlu2 %1314 }
 0xf40   :  { %v1305_v3 = vmul.f32 %v1293_v53, %v5843_v1  ;;  %5291 = vpow2.f32 %v1340_v2 }
 0xf42   :  { %v1327_v5 = vadd.f32 %v1315_v4, %v1305_v3 }
 0xf44   :  { %v1333_v6 = vmin.f32 %v1327_v5, 0.0  ;;  %vm1330_vm14 = vcmp.gt.f32.partialorder %v1327_v5, 0.0 }
 0xf46   :  { %v5292_v7 = vpop.eup %5291  ;;  %v1336_v63 = vmul.f32 1.442695, %v1333_v6 }
 0xf47   :  { %v1298_v59 = vpop.permute.xlu0 %1297  ;;  %v4102_v9 = vadd.f32 -1.0, %v5292_v7  ;;  %v1320_v29 = vpop.permute.xlu1 %1319 }
 0xf48   :  { %5293 = vpow2.f32 %v1336_v63  ;;  %v1306_v11 = vmul.f32 %v1298_v59, %v5848_v50 }
 0xf49   :  { %v1347_v12 = vsel %vm1332_vm13, %v1329_v42, %v4102_v9  ;;  %v1416_v42 = vpack.c.b16 %v1414_v58, %v1414_v58  ;;  %v4127_v9 = vld [vmem:[%s6716_s4 + $0x90] sm:$0xff] }
 0xf4a   :  { %v1328_v13 = vadd.f32 %v1320_v29, %v1306_v11  ;;  %1370 = vrot.lane.b32.xlu0 %v1347_v12, %s5317_s19  ;;  %v4108_v11 = vld [vmem:[%s6718_s6 + $0x88] sm:$0xff] }
 0xf4c   :  { %v1334_v14 = vmin.f32 %v1328_v13, 0.0  ;;  %vm1331_vm4 = vcmp.gt.f32.partialorder %v1328_v13, 0.0 }
 0xf4e   :  { %v5294_v16 = vpop.eup %5293  ;;  %v1338_v1 = vmul.f32 1.442695, %v1334_v14 }
 0xf4f   :  { %v4100_v17 = vadd.f32 -1.0, %v5294_v16 }
 0xf50   :  { %5295 = vpow2.f32 %v1338_v1 }
 0xf51   :  { %v1345_v18 = vsel %vm1330_vm14, %v1327_v5, %v4100_v17 }
 0xf52   :  { %v5224_v19 = vpack.i.bf16 %v1345_v18, %v1347_v12 }
 0xf54   :  { %5225 = vrot.lane.b32.xlu1 %v5224_v19, %s5318_s20 }
 0xf56   :  { %v5296_v21 = vpop.eup %5295 }
 0xf57   :  { %v4101_v24 = vadd.f32 -1.0, %v5296_v21 }
 0xf59   :  { %v1346_v50 = vsel %vm1331_vm4, %v1328_v13, %v4101_v24  ;;  %v4124_v24 = vld [vmem:[%s6717_s3 + $0x90] sm:$0xff] }
 0xf5a   :  { %1353 = vrot.lane.b32.xlu0 %v1346_v50, %s5318_s20  ;;  %v5219_v25 = vpack.i.bf16 %v1346_v50, %v1345_v18  ;;  %v1387_v26 = vpack.c.bf16 %v1347_v12, %v1346_v50 }
 0xf5c   :  { %5220 = vrot.lane.b32.xlu2 %v5219_v25, %s5317_s19 }
 0xf64   :  { %1396 = vperm.xlu2 %5168, %v4106_v28  }
 0xf6c   :  { %1401 = vperm.xlu2 %5168, %v4107_v30  }
 0xfb6   :  { %v5221_v32 = vpop.permute.xlu2 %5220 }
 0xfb7   :  { %v5223_v15 = vunpack.i.h.bf16 %v5221_v32  ;;  %v5222_v34 = vunpack.i.l.bf16 %v5221_v32 }
 0xfb9   :  { %v1376_v39 = vsel %vm248_vm15, %v5223_v15, 0.0  ;;  %v1375_v20 = vsel %vm248_vm15, %v5222_v34, 0.0 }
 0xfba   :  { %v4114_v40 = vpack.c.bf16 %v1376_v39, %v1375_v20 }
 0xfbc   :  { %v1371_v33 = vpop.permute.xlu0 %1370 }
 0xfbd   :  { %v1377_v37 = vsel %vm248_vm15, %v1371_v33, 0.0 }
 0xfbe   :  { %v1380_v38 = vsel %vm5464_vm0, %v1377_v37, 0.0  ;;  %v1397_v55 = vpop.permute.xlu2 %1396 }
 0xfbf   :  { %v1389_v27 = vpack.c.bf16 %v1380_v38, %v1380_v38 }
 0xfc1   :  { %v1424_v41 = vsel %vm296_vm1, %v1389_v27, 0 }
 0xfc2   :  { %1429 = vmatpush.bf16.msrb.mxu2 %v1424_v41 }
 0xfc6   :  { %v5226_v43 = vpop.permute.xlu1 %5225  ;;  %4115 = vmatpush.bf16.msk.msrb.mxu2 %vm5477_vm2, %v4114_v40  ;;  %v1402_v54 = vpop.permute.xlu2 %1401 }
 0xfc7   :  { %v5227_v44 = vunpack.i.l.bf16 %v5226_v43  ;;  %v5228_v31 = vunpack.i.h.bf16 %v5226_v43 }
 0xfc9   :  { %v1362_v23 = vsel %vm232_vm6, 0.0, %v5227_v44  ;;  %v1360_v51 = vsel %vm232_vm6, 0.0, %v5228_v31 }
 0xfca   :  { %1431 = vmatpush.bf16.msrb.mxu2 %v1387_v26  ;;  %v4117_v48 = vpack.c.bf16 %v1345_v18, %v1362_v23 }
 0xfcc   :  { %v1354_v46 = vpop.permute.xlu0 %1353 }
 0xfcd   :  { %v1361_v36 = vsel %vm232_vm6, 0.0, %v1354_v46 }
 0xfce   :  { %4118 = vmatpush.bf16.msk.msrb.mxu2 %vm5486_vm9, %v4117_v48  ;;  %v4120_v52 = vpack.c.bf16 %v1361_v36, %v1360_v51 }
 0xfd2   :  { %4121 = vmatpush.bf16.msk.msrb.mxu2 %vm5495_vm10, %v4120_v52 }
 0xfd5   :  { %4122 = vmatmul.msk.bf16.vlgmr.msrb.gmra.mxu2 %vm289_vm11, %v4958_v47 }
 0xfe5   :  { %4123 = vmatmul.msk.bf16.gmra.mxu2 %vm289_vm11, %v1416_v42 }
0x1058   :  { %v1435_v56 = vpop.f32.mrf.mxu2 }
0x1059   :  { %v1436_v49 = vadd.f32 %v1435_v56, %v1397_v55  ;;  %v4128_v56 = vld [vmem:[%s6716_s4 + $0x98] sm:$0xff] }
0x105b   :  { %v1444_v57 = vsel %vm111_vm3, %v1436_v49, 0.0 }
0x105c   :  { %1445 = vadd.xlane.f32.xlu1 %v1444_v57 }
0x1060   :  { %v1437_v60 = vpop.f32.mrf.mxu2 }
0x1061   :  { %v1438_v22 = vadd.f32 %v1437_v60, %v1402_v54 }
0x1063   :  { %v1447_v61 = vsel %vm111_vm3, %v1438_v22, 0.0 }
0x1064   :  { %1448 = vadd.xlane.f32.xlu2 %v1447_v61  ;;  %v5320_v61 = vmov 0.0  }
0x1065   :  { %1596 = vst [vmem:[#allocation2] sm:$0xff] %v5320_v61 }
0x1066   :  { %1597 = vst [vmem:[#allocation2 + $0x8] sm:$0xff] %v5320_v61 }
0x1067   :  { %1598 = vst [vmem:[#allocation2 + $0x10] sm:$0xff] %v5320_v61 }
0x1068   :  { %v1440_v29 = vpop.f32.mrf.mxu2  ;;  %1599 = vst [vmem:[#allocation2 + $0x18] sm:$0xff] %v5320_v61 }
0x1069   :  { %1600 = vst [vmem:[#allocation2 + $0x20] sm:$0xff] %v5320_v61 }
0x106a   :  { %1601 = vst [vmem:[#allocation2 + $0x28] sm:$0xff] %v5320_v61 }
0x1070   :  { %v1442_v12 = vpop.f32.mrf.mxu2 }
0x10cf   :  { %v1446_v0 = vpop.xlane.xlu1 %1445 }
0x10d0   :  { %v1453_v2 = vmul.f32 0.008064516, %v1446_v0 }
0x10d2   :  { %v1456_v53 = vsub.f32 %v1436_v49, %v1453_v2 }
0x10d4   :  { %v1459_v3 = vmul.f32 %v1456_v53, %v1456_v53 }
0x10d6   :  { %v1462_v4 = vsel %vm111_vm3, %v1459_v3, 0.0 }
0x10d7   :  { %v1449_v5 = vpop.xlane.xlu2 %1448  ;;  %1463 = vadd.xlane.f32.xlu0 %v1462_v4 }
0x10d8   :  { %v1454_v6 = vmul.f32 0.008064516, %v1449_v5 }
0x10da   :  { %v5910_v7 = vsub.f32 %v1438_v22, %v1454_v6 }
0x10dc   :  { %v1460_v63 = vmul.f32 %v5910_v7, %v5910_v7 }
0x10de   :  { %v1465_v59 = vsel %vm111_vm3, %v1460_v63, 0.0 }
0x10df   :  { %1466 = vadd.xlane.f32.xlu2 %v1465_v59 }
0x10eb   :  { %1538 = vperm.xlu0 %5166, %v4127_v9  }
0x10f7   :  { %1406 = vperm.xlu2 %5168, %v4108_v11  }
0x114a   :  { %v1464_v13 = vpop.xlane.xlu0 %1463 }
0x114b   :  { %v1471_v14 = vmul.f32 0.008064516, %v1464_v13 }
0x114d   :  { %v1478_v16 = vadd.f32 1e-05, %v1471_v14 }
0x114f   :  { %5297 = vrsqrt.f32 %v1478_v16  ;;  %vm1487_vm2 = vweird.f32 %v1478_v16 }
0x1152   :  { %v1467_v28 = vpop.xlane.xlu2 %1466 }
0x1153   :  { %v1472_v15 = vmul.f32 0.008064516, %v1467_v28  ;;  %v4126_v28 = vld [vmem:[%s6717_s3 + $0xa0] sm:$0xff] }
0x1155   :  { %v5298_v1 = vpop.eup %5297  ;;  %v1479_v34 = vadd.f32 1e-05, %v1472_v15 }
0x1156   :  { %v1482_v17 = vmul.f32 %v5298_v1, %v1478_v16  ;;  %vm1488_vm1 = vweird.f32 %v5298_v1 }
0x1157   :  { %vm1489_vm6 = vmor %vm1487_vm2, %vm1488_vm1  ;;  %5299 = vrsqrt.f32 %v1479_v34  ;;  %vm1497_vm11 = vweird.f32 %v1479_v34  ;;  %vm3947_vm2 = vcmask 1024  }
0x1158   :  { %v1483_v18 = vmul.f32 %v5298_v1, %v1482_v17 }
0x115a   :  { %v1484_v19 = vmul.f32 0.5, %v1483_v18  ;;  %v1407_v30 = vpop.permute.xlu2 %1406 }
0x115b   :  { %v1441_v32 = vadd.f32 %v1440_v29, %v1407_v30 }
0x115c   :  { %v1485_v21 = vsub.f32 1.5, %v1484_v19 }
0x115d   :  { %v1450_v33 = vsel %vm111_vm3, %v1441_v32, 0.0  ;;  %v5300_v38 = vpop.eup %5299  ;;  %v1539_v39 = vpop.permute.xlu0 %1538 }
0x115e   :  { %v1486_v50 = vmul.f32 %v5298_v1, %v1485_v21  ;;  %v1492_v41 = vmul.f32 %v5300_v38, %v1479_v34  ;;  %vm1498_vm10 = vweird.f32 %v5300_v38 }
0x115f   :  { %vm1499_vm5 = vmor %vm1497_vm11, %vm1498_vm10 }
0x1160   :  { %v1490_v25 = vsel %vm1489_vm6, %v5298_v1, %v1486_v50  ;;  %v1493_v44 = vmul.f32 %v5300_v38, %v1492_v41 }
0x1161   :  { %v1511_v26 = vmul.f32 %v4124_v24, %v1490_v25 }
0x1162   :  { %v1494_v31 = vmul.f32 0.5, %v1493_v44 }
0x1163   :  { %1516 = vperm.xlu1 %5167, %v1511_v26  }
0x1164   :  { %v1495_v46 = vsub.f32 1.5, %v1494_v31 }
0x1166   :  { %v1496_v52 = vmul.f32 %v5300_v38, %v1495_v46 }
0x1168   :  { %v1500_v47 = vsel %vm1499_vm5, %v5300_v38, %v1496_v52 }
0x118d   :  { %1451 = vadd.xlane.f32.xlu1 %v1450_v33 }
0x11d5   :  { %v1517_v37 = vpop.permute.xlu1 %1516 }
0x11d6   :  { %v1529_v27 = vmul.f32 %v1517_v37, %v1456_v53  ;;  %v4129_v37 = vld [vmem:[%s6716_s4 + $0xa0] sm:$0xff] }
0x11d8   :  { %v1551_v20 = vadd.f32 %v1539_v39, %v1529_v27 }
0x11da   :  { %v1554_v40 = vadd.f32 %v1551_v20, %v5791_v8  ;;  %v4125_v8 = vld [vmem:[%s6717_s3 + $0x98] sm:$0xff] }
0x11db   :  { %v1512_v55 = vmul.f32 %v4125_v8, %v1500_v47 }
0x11dc   :  { %v1560_v43 = vmin.f32 %v1554_v40, 0.0  ;;  %vm1557_vm9 = vcmp.gt.f32.partialorder %v1554_v40, 0.0 }
0x11de   :  { %v1563_v23 = vmul.f32 1.442695, %v1560_v43 }
0x11e0   :  { %5301 = vpow2.f32 %v1563_v23 }
0x11e6   :  { %v5302_v48 = vpop.eup %5301 }
0x11e7   :  { %v4130_v36 = vadd.f32 -1.0, %v5302_v48 }
0x11e9   :  { %v1572_v51 = vsel %vm1557_vm9, %v1554_v40, %v4130_v36 }
0x11ea   :  { %1578 = vrot.lane.b32.xlu0 %v1572_v51, %s5317_s19 }
0x11f2   :  { %1521 = vperm.xlu0 %5166, %v1512_v55  }
0x11fa   :  { %1543 = vperm.xlu0 %5166, %v4128_v56  }
0x1200   :  { %v1452_v49 = vpop.xlane.xlu1 %1451 }
0x1201   :  { %v1455_v57 = vmul.f32 0.008064516, %v1452_v49 }
0x1203   :  { %v5933_v54 = vsub.f32 %v1441_v32, %v1455_v57 }
0x1205   :  { %v1461_v60 = vmul.f32 %v5933_v54, %v5933_v54 }
0x1207   :  { %v1468_v22 = vsel %vm111_vm3, %v1461_v60, 0.0 }
0x1208   :  { %1469 = vadd.xlane.f32.xlu2 %v1468_v22 }
0x125c   :  { %v1579_v62 = vpop.permute.xlu0 %1578 }
0x125d   :  { %v1587_v58 = vsel %vm248_vm15, %v1579_v62, 0.0 }
0x125e   :  { %v1590_v42 = vsel %vm5464_vm0, %v1587_v58, 0.0 }
0x125f   :  { %v5941_v0 = vmax.f32 %v1572_v51, %v1590_v42 }
0x1261   :  { %1617 = vst.sshfl [vmem:[#allocation1] sm:$0xff pattern:$0x73625140] %v5941_v0  ;;  %v1609_v2 = vrot.slane %v5941_v0, 7 }
0x1262   :  { %1603 = vst.msk [vmem:[#allocation2] sm:$0x1] %vm1602_vm7, %v5941_v0 }
0x1263   :  { %v1610_v53 = vrot.slane %v1609_v2, 2 }
0x1264   :  { %v1522_v3 = vpop.permute.xlu0 %1521 }
0x1265   :  { %1612 = vst.msk [vmem:[#allocation2 + $0x2] sm:$0x1] %vm1602_vm7, %v1610_v53  ;;  %v1530_v5 = vmul.f32 %v1522_v3, %v5910_v7 }
0x1268   :  { %v1619_v4 = vld [vmem:[#allocation1 + $0x1] ss:$4 sm:$0xff] }
0x1269   :  { %1622 = vst.sshfl [vmem:[#allocation1] sm:$0xff pattern:$0x73625140] %v5941_v0 }
0x126a   :  { %1621 = vst.msk [vmem:[#allocation2 + $0x4] sm:$0x1] %vm1602_vm7, %v1619_v4 }
0x126c   :  { %v1544_v6 = vpop.permute.xlu0 %1543 }
0x126d   :  { %v1552_v63 = vadd.f32 %v1544_v6, %v1530_v5 }
0x126f   :  { %v1555_v59 = vadd.f32 %v1552_v63, %v5798_v10 }
0x1270   :  { %v1624_v9 = vld [vmem:[#allocation1 + $0x1] ss:$4 sm:$0xff] }
0x1271   :  { %1629 = vst.sshfl [vmem:[#allocation1] sm:$0xff pattern:$0x73625140] %v5941_v0  ;;  %v1561_v11 = vmin.f32 %v1555_v59, 0.0  ;;  %1625 = vrot.lane.b32.xlu2 %v1624_v9, %s5321_s0  ;;  %vm1558_vm3 = vcmp.gt.f32.partialorder %v1555_v59, 0.0 }
0x1273   :  { %v1565_v29 = vmul.f32 1.442695, %v1561_v11 }
0x1275   :  { %5303 = vpow2.f32 %v1565_v29 }
0x1278   :  { %v1631_v12 = vld [vmem:[#allocation1 + $0x1] ss:$4 sm:$0xff] }
0x1279   :  { %1636 = vst.sshfl [vmem:[#allocation1] sm:$0xff pattern:$0x73625140] %v5941_v0  ;;  %v4133_v13 = vrot.slane %v1631_v12, 9 }
0x127b   :  { %v5304_v14 = vpop.eup %5303  ;;  %v1470_v16 = vpop.xlane.xlu2 %1469  ;;  %1635 = vst.msk [vmem:[#allocation2 + $0x6] sm:$0x1] %vm1602_vm7, %v4133_v13 }
0x127c   :  { %v1473_v7 = vmul.f32 0.008064516, %v1470_v16  ;;  %v4131_v1 = vadd.f32 -1.0, %v5304_v14 }
0x127e   :  { %v1480_v10 = vadd.f32 1e-05, %v1473_v7  ;;  %v1573_v17 = vsel %vm1558_vm3, %v1555_v59, %v4131_v1 }
0x127f   :  { %1580 = vrot.lane.b32.xlu0 %v1573_v17, %s5317_s19 }
0x1280   :  { %v1638_v18 = vld [vmem:[#allocation1 + $0x1] ss:$4 sm:$0xff]  ;;  %5305 = vrsqrt.f32 %v1480_v10  ;;  %vm1507_vm12 = vweird.f32 %v1480_v10 }
0x1281   :  { %1645 = vst.sshfl [vmem:[#allocation1] sm:$0xff pattern:$0x73625140] %v5941_v0  ;;  %v4134_v41 = vrot.slane %v1638_v18, 9 }
0x1286   :  { %v5306_v19 = vpop.eup %5305 }
0x1287   :  { %v1502_v21 = vmul.f32 %v5306_v19, %v1480_v10  ;;  %vm1508_vm8 = vweird.f32 %v5306_v19 }
0x1288   :  { %v1647_v24 = vld [vmem:[#allocation1 + $0x2] ss:$4 sm:$0xff]  ;;  %vm1509_vm13 = vmor %vm1507_vm12, %vm1508_vm8 }
0x1289   :  { %1650 = vst.sshfl [vmem:[#allocation1] sm:$0xff pattern:$0x73625140] %v5941_v0  ;;  %v1503_v50 = vmul.f32 %v5306_v19, %v1502_v21 }
0x128a   :  { %1649 = vst.msk [vmem:[#allocation2 + $0x8] sm:$0x1] %vm1602_vm7, %v1647_v24 }
0x128b   :  { %v1504_v25 = vmul.f32 0.5, %v1503_v50 }
0x128d   :  { %v1505_v26 = vsub.f32 1.5, %v1504_v25 }
0x128f   :  { %v1506_v30 = vmul.f32 %v5306_v19, %v1505_v26 }
0x1290   :  { %v5963_v32 = vld [vmem:[#allocation1 + $0x2] ss:$4 sm:$0xff] }
0x1291   :  { %1657 = vst.sshfl [vmem:[#allocation1] sm:$0xff pattern:$0x73625140] %v5941_v0  ;;  %v1510_v33 = vsel %vm1509_vm13, %v5306_v19, %v1506_v30 }
0x1292   :  { %v1513_v15 = vmul.f32 %v4126_v28, %v1510_v33 }
0x1294   :  { %1526 = vperm.xlu0 %5166, %v1513_v15   ;;  %v4974_v15 = vld [vmem:[%s6720_s7 + $0x78] sm:$0xff] }
0x1295   :  { %3541 = vmatpush.bf16.msra.mxu0 %v4974_v15  ;;  %v5002_v15 = vld [vmem:[%s6720_s7 + $0x158] sm:$0xff] }
0x1298   :  { %v1659_v34 = vld [vmem:[#allocation1 + $0x2] ss:$4 sm:$0xff] }
0x1299   :  { %1664 = vst.sshfl [vmem:[#allocation1] sm:$0xff pattern:$0x73625140] %v5941_v0  ;;  %v4135_v38 = vrot.slane %v1659_v34, 9  ;;  %v4982_v34 = vld [vmem:[%s6720_s7 + $0xb8] sm:$0xff] }
0x129a   :  { %3554 = vmatpush.bf16.msra.mxu1 %v4982_v34  ;;  %v5010_v34 = vld [vmem:[%s6720_s7 + $0x198] sm:$0xff] }
0x129b   :  { %1663 = vst.msk [vmem:[#allocation2 + $0xa] sm:$0x1] %vm1602_vm7, %v4135_v38  ;;  %v4965_v38 = vld [vmem:[%s6720_s7 + $0x30] sm:$0xff] }
0x129c   :  { %1548 = vperm.xlu0 %5166, %v4129_v37   ;;  %v4990_v37 = vld [vmem:[%s6720_s7 + $0xf8] sm:$0xff]  ;;  %3529 = vmatpush.bf16.msrb.mxu3 %v4965_v38 }
0x129d   :  { %3567 = vmatpush.bf16.msra.mxu2 %v4990_v37  ;;  %v5018_v37 = vld [vmem:[%s6720_s7 + $0x1d8] sm:$0xff] }
0x12a0   :  { %v1666_v27 = vld [vmem:[#allocation1 + $0x2] ss:$4 sm:$0xff] }
0x12a1   :  { %1673 = vst.sshfl [vmem:[#allocation1] sm:$0xff pattern:$0x73625140] %v5941_v0  ;;  %v4136_v44 = vrot.slane %v1666_v27, 9  ;;  %v4973_v27 = vld [vmem:[%s6720_s7 + $0x70] sm:$0xff] }
0x12a2   :  { %3542 = vmatpush.bf16.msra.mxu0 %v4973_v27 }
0x12a4   :  { %1605 = vrot.lane.b32.xlu0 %v5941_v0, %s5321_s0 }
0x12a8   :  { %v1675_v39 = vld [vmem:[#allocation1 + $0x3] ss:$4 sm:$0xff] }
0x12a9   :  { %1678 = vst.sshfl [vmem:[#allocation1] sm:$0xff pattern:$0x73625140] %v5941_v0 }
0x12aa   :  { %1677 = vst.msk [vmem:[#allocation2 + $0xc] sm:$0x1] %vm1602_vm7, %v1675_v39  ;;  %v4981_v39 = vld [vmem:[%s6720_s7 + $0xb0] sm:$0xff] }
0x12ab   :  { %3555 = vmatpush.bf16.msra.mxu1 %v4981_v39 }
0x12ac   :  { %1613 = vrot.lane.b32.xlu0 %v1610_v53, %s5321_s0 }
0x12b0   :  { %v5977_v20 = vld [vmem:[#allocation1 + $0x3] ss:$4 sm:$0xff] }
0x12b1   :  { %1685 = vst.sshfl [vmem:[#allocation1] sm:$0xff pattern:$0x73625140] %v5941_v0 }
0x12b4   :  { %1641 = vrot.lane.b32.xlu0 %v4134_v41, %s5321_s0 }
0x12b8   :  { %v1687_v40 = vld [vmem:[#allocation1 + $0x3] ss:$4 sm:$0xff] }
0x12b9   :  { %1692 = vst.sshfl [vmem:[#allocation1] sm:$0xff pattern:$0x73625140] %v5941_v0  ;;  %v4137_v43 = vrot.slane %v1687_v40, 9 }
0x12bb   :  { %1691 = vst.msk [vmem:[#allocation2 + $0xe] sm:$0x1] %vm1602_vm7, %v4137_v43 }
0x12bc   :  { %1669 = vrot.lane.b32.xlu0 %v4136_v44, %s5321_s0 }
0x12c0   :  { %v1694_v23 = vld [vmem:[#allocation1 + $0x3] ss:$4 sm:$0xff] }
0x12c1   :  { %v4138_v31 = vrot.slane %v1694_v23, 9 }
0x12c4   :  { %1697 = vrot.lane.b32.xlu0 %v4138_v31, %s5321_s0  ;;  %v4964_v31 = vld [vmem:[%s6720_s7 + $0x28] sm:$0xff] }
0x12c5   :  { %3530 = vmatpush.bf16.msrb.mxu3 %v4964_v31  ;;  %v5009_v31 = vld [vmem:[%s6720_s7 + $0x190] sm:$0xff] }
0x12cb   :  { %v1626_v46 = vpop.permute.xlu2 %1625 }
0x12cc   :  { %1628 = vst.msk [vmem:[#allocation2 + $0x5] sm:$0x1] %vm1602_vm7, %v1626_v46  ;;  %v4972_v46 = vld [vmem:[%s6720_s7 + $0x68] sm:$0xff] }
0x12cd   :  { %3543 = vmatpush.bf16.msra.mxu0 %v4972_v46  ;;  %v5017_v46 = vld [vmem:[%s6720_s7 + $0x1d0] sm:$0xff] }
0x12f1   :  { %v1581_v48 = vpop.permute.xlu0 %1580 }
0x12f2   :  { %v1588_v36 = vsel %vm248_vm15, %v1581_v48, 0.0  ;;  %v4980_v48 = vld [vmem:[%s6720_s7 + $0xa8] sm:$0xff] }
0x12f3   :  { %v1591_v51 = vsel %vm5464_vm0, %v1588_v36, 0.0  ;;  %3556 = vmatpush.bf16.msra.mxu1 %v4980_v48  ;;  %v4992_v48 = vld [vmem:[%s6720_s7 + $0x108] sm:$0xff] }
0x12f4   :  { %v5989_v52 = vmax.f32 %v1573_v17, %v1591_v51 }
0x12f6   :  { %1715 = vst.sshfl [vmem:[#allocation1] sm:$0xff pattern:$0x73625140] %v5989_v52  ;;  %1703 = vrot.lane.b32.xlu2 %v5989_v52, %s5321_s0  ;;  %v1707_v8 = vrot.slane %v5989_v52, 7 }
0x12f7   :  { %1701 = vst.msk [vmem:[#allocation2 + $0x10] sm:$0x1] %vm1602_vm7, %v5989_v52 }
0x12f8   :  { %v1708_v47 = vrot.slane %v1707_v8, 2  ;;  %v4963_v8 = vld [vmem:[%s6720_s7 + $0x20] sm:$0xff] }
0x12f9   :  { %3531 = vmatpush.bf16.msrb.mxu3 %v4963_v8 }
0x12fa   :  { %1710 = vst.msk [vmem:[#allocation2 + $0x12] sm:$0x1] %vm1602_vm7, %v1708_v47 }
0x12fd   :  { %v1717_v55 = vld [vmem:[#allocation1 + $0x1] ss:$4 sm:$0xff] }
0x12fe   :  { %1720 = vst.sshfl [vmem:[#allocation1] sm:$0xff pattern:$0x73625140] %v5989_v52 }
0x12ff   :  { %1719 = vst.msk [vmem:[#allocation2 + $0x14] sm:$0x1] %vm1602_vm7, %v1717_v55  ;;  %v4979_v55 = vld [vmem:[%s6720_s7 + $0xa0] sm:$0xff] }
0x1300   :  { %3557 = vmatpush.bf16.msra.mxu1 %v4979_v55  ;;  %v4991_v55 = vld [vmem:[%s6720_s7 + $0x100] sm:$0xff] }
0x1305   :  { %v1722_v56 = vld [vmem:[#allocation1 + $0x1] ss:$4 sm:$0xff] }
0x1306   :  { %1727 = vst.sshfl [vmem:[#allocation1] sm:$0xff pattern:$0x73625140] %v5989_v52  ;;  %1723 = vrot.lane.b32.xlu0 %v1722_v56, %s5321_s0  ;;  %v1527_v49 = vpop.permute.xlu0 %1526  ;;  %v4987_v56 = vld [vmem:[%s6720_s7 + $0xe0] sm:$0xff] }
0x1307   :  { %v1531_v60 = vmul.f32 %v1527_v49, %v5933_v54 }
0x130d   :  { %v1729_v57 = vld [vmem:[#allocation1 + $0x1] ss:$4 sm:$0xff] }
0x130e   :  { %1734 = vst.sshfl [vmem:[#allocation1] sm:$0xff pattern:$0x73625140] %v5989_v52  ;;  %v1549_v22 = vpop.permute.xlu0 %1548  ;;  %v4139_v61 = vrot.slane %v1729_v57, 9  ;;  %v4962_v57 = vld [vmem:[%s6720_s7 + $0x18] sm:$0xff] }
0x130f   :  { %v1553_v62 = vadd.f32 %v1549_v22, %v1531_v60  ;;  %v4970_v60 = vld [vmem:[%s6720_s7 + $0x58] sm:$0xff]  ;;  %3532 = vmatpush.bf16.msrb.mxu3 %v4962_v57  ;;  %v5015_v57 = vld [vmem:[%s6720_s7 + $0x1c0] sm:$0xff] }
0x1310   :  { %1733 = vst.msk [vmem:[#allocation2 + $0x16] sm:$0x1] %vm1602_vm7, %v4139_v61  ;;  %v4978_v22 = vld [vmem:[%s6720_s7 + $0x98] sm:$0xff] }
0x1311   :  { %v1556_v58 = vadd.f32 %v1553_v62, %v5789_v45  ;;  %v4986_v62 = vld [vmem:[%s6720_s7 + $0xd8] sm:$0xff]  ;;  %3558 = vmatpush.bf16.msra.mxu1 %v4978_v22 }
0x1313   :  { %v1562_v42 = vmin.f32 %v1556_v58, 0.0  ;;  %vm1559_vm14 = vcmp.gt.f32.partialorder %v1556_v58, 0.0 }
0x1315   :  { %v1567_v0 = vmul.f32 1.442695, %v1562_v42  ;;  %v1736_v2 = vld [vmem:[#allocation1 + $0x1] ss:$4 sm:$0xff] }
0x1316   :  { %v1606_v53 = vpop.permute.xlu0 %1605  ;;  %v4140_v3 = vrot.slane %v1736_v2, 9  ;;  %1743 = vst.sshfl [vmem:[#allocation1] sm:$0xff pattern:$0x73625140] %v5989_v52  ;;  %v4961_v42 = vld [vmem:[%s6720_s7 + $0x10] sm:$0xff] }
0x1317   :  { %1608 = vst.msk [vmem:[#allocation2 + $0x1] sm:$0x1] %vm1602_vm7, %v1606_v53  ;;  %5307 = vpow2.f32 %v1567_v0  ;;  %v4969_v0 = vld [vmem:[%s6720_s7 + $0x50] sm:$0xff]  ;;  %3533 = vmatpush.bf16.msrb.mxu3 %v4961_v42 }
0x1318   :  { %1739 = vrot.lane.b32.xlu2 %v4140_v3, %s5321_s0  ;;  %v4977_v2 = vld [vmem:[%s6720_s7 + $0x90] sm:$0xff]  ;;  %v4960_v3 = vld [vmem:[%s6720_s7 + $0x8] sm:$0xff] }
0x1319   :  { %v4985_v53 = vld [vmem:[%s6720_s7 + $0xd0] sm:$0xff]  ;;  %3559 = vmatpush.bf16.msra.mxu1 %v4977_v2 }
0x131b   :  { %3534 = vmatpush.bf16.msrb.mxu3 %v4960_v3 }
0x131d   :  { %v5308_v54 = vpop.eup %5307  ;;  %v1745_v4 = vld [vmem:[#allocation1 + $0x2] ss:$4 sm:$0xff] }
0x131e   :  { %1748 = vst.sshfl [vmem:[#allocation1] sm:$0xff pattern:$0x73625140] %v5989_v52  ;;  %v1614_v5 = vpop.permute.xlu0 %1613  ;;  %v4132_v6 = vadd.f32 -1.0, %v5308_v54 }
0x131f   :  { %1747 = vst.msk [vmem:[#allocation2 + $0x18] sm:$0x1] %vm1602_vm7, %v1745_v4  ;;  %v4968_v4 = vld [vmem:[%s6720_s7 + $0x48] sm:$0xff] }
0x1320   :  { %1616 = vst.msk [vmem:[#allocation2 + $0x3] sm:$0x1] %vm1602_vm7, %v1614_v5  ;;  %v1574_v45 = vsel %vm1559_vm14, %v1556_v58, %v4132_v6  ;;  %v4976_v5 = vld [vmem:[%s6720_s7 + $0x88] sm:$0xff] }
0x1321   :  { %1582 = vrot.lane.b32.xlu1 %v1574_v45, %s5317_s19  ;;  %3560 = vmatpush.bf16.msra.mxu1 %v4976_v5 }
0x1325   :  { %v1750_v63 = vld [vmem:[#allocation1 + $0x2] ss:$4 sm:$0xff] }
0x1326   :  { %v1642_v59 = vpop.permute.xlu0 %1641  ;;  %1755 = vst.sshfl [vmem:[#allocation1] sm:$0xff pattern:$0x73625140] %v5989_v52 }
0x1327   :  { %1644 = vst.msk [vmem:[#allocation2 + $0x7] sm:$0x1] %vm1602_vm7, %v1642_v59  ;;  %v4967_v59 = vld [vmem:[%s6720_s7 + $0x40] sm:$0xff] }
0x1329   :  { %1653 = vrot.lane.b32.xlu1 %v5963_v32, %s5321_s0 }
0x132d   :  { %v1757_v9 = vld [vmem:[#allocation1 + $0x2] ss:$4 sm:$0xff] }
0x132e   :  { %v1670_v11 = vpop.permute.xlu0 %1669  ;;  %1762 = vst.sshfl [vmem:[#allocation1] sm:$0xff pattern:$0x73625140] %v5989_v52  ;;  %v4141_v29 = vrot.slane %v1757_v9, 9  ;;  %v4975_v9 = vld [vmem:[%s6720_s7 + $0x80] sm:$0xff] }
0x132f   :  { %1672 = vst.msk [vmem:[#allocation2 + $0xb] sm:$0x1] %vm1602_vm7, %v1670_v11  ;;  %v4983_v11 = vld [vmem:[%s6720_s7 + $0xc0] sm:$0xff]  ;;  %3561 = vmatpush.bf16.msra.mxu1 %v4975_v9  ;;  %v5046_v9 = vld [vmem:[%s6720_s7 + $0x2b8] sm:$0xff] }
0x1330   :  { %1761 = vst.msk [vmem:[#allocation2 + $0x1a] sm:$0x1] %vm1602_vm7, %v4141_v29  ;;  %v4998_v29 = vld [vmem:[%s6720_s7 + $0x138] sm:$0xff] }
0x1331   :  { %1681 = vrot.lane.b32.xlu1 %v5977_v20, %s5321_s0  ;;  %v4989_v20 = vld [vmem:[%s6720_s7 + $0xf0] sm:$0xff] }
0x1332   :  { %3568 = vmatpush.bf16.msra.mxu2 %v4989_v20 }
0x1335   :  { %v1764_v12 = vld [vmem:[#allocation1 + $0x2] ss:$4 sm:$0xff] }
0x1336   :  { %v1698_v13 = vpop.permute.xlu0 %1697  ;;  %v4142_v14 = vrot.slane %v1764_v12, 9  ;;  %1771 = vst.sshfl [vmem:[#allocation1] sm:$0xff pattern:$0x73625140] %v5989_v52  ;;  %v5006_v12 = vld [vmem:[%s6720_s7 + $0x178] sm:$0xff] }
0x1337   :  { %1700 = vst.msk [vmem:[#allocation2 + $0xf] sm:$0x1] %vm1602_vm7, %v1698_v13  ;;  %v5014_v13 = vld [vmem:[%s6720_s7 + $0x1b8] sm:$0xff] }
0x1338   :  { %1767 = vrot.lane.b32.xlu0 %v4142_v14, %s5321_s0  ;;  %v5022_v14 = vld [vmem:[%s6720_s7 + $0x1f8] sm:$0xff]  ;;  %3606 = vmatpush.bf16.msrb.mxu1 %v5014_v13  ;;  %v5037_v13 = vld [vmem:[%s6720_s7 + $0x270] sm:$0xff] }
0x1339   :  { %1711 = vrot.lane.b32.xlu1 %v1708_v47, %s5321_s0  ;;  %v4971_v47 = vld [vmem:[%s6720_s7 + $0x60] sm:$0xff] }
0x133a   :  { %3544 = vmatpush.bf16.msra.mxu0 %v4971_v47 }
0x133d   :  { %v1773_v16 = vld [vmem:[#allocation1 + $0x3] ss:$4 sm:$0xff] }
0x133e   :  { %1776 = vst.sshfl [vmem:[#allocation1] sm:$0xff pattern:$0x73625140] %v5989_v52  ;;  %3545 = vmatpush.bf16.msra.mxu0 %v4970_v60 }
0x133f   :  { %1775 = vst.msk [vmem:[#allocation2 + $0x1c] sm:$0x1] %vm1602_vm7, %v1773_v16 }
0x1341   :  { %1751 = vrot.lane.b32.xlu1 %v1750_v63, %s5321_s0  ;;  %v4959_v63 = vld [vmem:[%s6720_s7] sm:$0xff] }
0x1342   :  { %3546 = vmatpush.bf16.msra.mxu0 %v4969_v0  ;;  %3535 = vmatpush.bf16.msrb.mxu3 %v4959_v63 }
0x1345   :  { %v1778_v7 = vld [vmem:[#allocation1 + $0x3] ss:$4 sm:$0xff] }
0x1346   :  { %1783 = vst.sshfl [vmem:[#allocation1] sm:$0xff pattern:$0x73625140] %v5989_v52  ;;  %1779 = vrot.lane.b32.xlu2 %v1778_v7, %s5321_s0  ;;  %3547 = vmatpush.bf16.msra.mxu0 %v4968_v4  ;;  %v4997_v7 = vld [vmem:[%s6720_s7 + $0x130] sm:$0xff] }
0x1347   :  { %3580 = vmatpush.bf16.msra.mxu3 %v4998_v29  ;;  %v5054_v29 = vld [vmem:[%s6720_s7 + $0x2f8] sm:$0xff] }
0x134a   :  { %3548 = vmatpush.bf16.msra.mxu0 %v4967_v59  ;;  %v5038_v59 = vld [vmem:[%s6720_s7 + $0x278] sm:$0xff] }
0x134b   :  { %3581 = vmatpush.bf16.msra.mxu3 %v4997_v7  ;;  %v5028_v7 = vld [vmem:[%s6720_s7 + $0x228] sm:$0xff] }
0x134d   :  { %v1785_v1 = vld [vmem:[#allocation1 + $0x3] ss:$4 sm:$0xff] }
0x134e   :  { %1790 = vst.sshfl [vmem:[#allocation1] sm:$0xff pattern:$0x73625140] %v5989_v52  ;;  %v4143_v10 = vrot.slane %v1785_v1, 9  ;;  %v4988_v52 = vld [vmem:[%s6720_s7 + $0xe8] sm:$0xff]  ;;  %3593 = vmatpush.bf16.msrb.mxu0 %v5006_v12  ;;  %v5005_v1 = vld [vmem:[%s6720_s7 + $0x170] sm:$0xff] }
0x134f   :  { %3569 = vmatpush.bf16.msra.mxu2 %v4988_v52  ;;  %v5016_v52 = vld [vmem:[%s6720_s7 + $0x1c8] sm:$0xff]  ;;  %v5029_v12 = vld [vmem:[%s6720_s7 + $0x230] sm:$0xff] }
0x1350   :  { %v1704_v17 = vpop.permute.xlu2 %1703  ;;  %1789 = vst.msk [vmem:[#allocation2 + $0x1e] sm:$0x1] %vm1602_vm7, %v4143_v10  ;;  %v5013_v10 = vld [vmem:[%s6720_s7 + $0x1b0] sm:$0xff] }
0x1351   :  { %1706 = vst.msk [vmem:[#allocation2 + $0x11] sm:$0x1] %vm1602_vm7, %v1704_v17  ;;  %v5021_v17 = vld [vmem:[%s6720_s7 + $0x1f0] sm:$0xff]  ;;  %3607 = vmatpush.bf16.msrb.mxu1 %v5013_v10  ;;  %v5044_v10 = vld [vmem:[%s6720_s7 + $0x2a8] sm:$0xff] }
0x1352   :  { %3594 = vmatpush.bf16.msrb.mxu0 %v5005_v1  ;;  %v5036_v1 = vld [vmem:[%s6720_s7 + $0x268] sm:$0xff] }
0x1353   :  { %3570 = vmatpush.bf16.msra.mxu2 %v4987_v56  ;;  %v4999_v56 = vld [vmem:[%s6720_s7 + $0x140] sm:$0xff] }
0x1355   :  { %v1792_v18 = vld [vmem:[#allocation1 + $0x3] ss:$4 sm:$0xff] }
0x1356   :  { %v4144_v19 = vrot.slane %v1792_v18, 9  ;;  %v4996_v18 = vld [vmem:[%s6720_s7 + $0x128] sm:$0xff] }
0x1357   :  { %3571 = vmatpush.bf16.msra.mxu2 %v4986_v62  ;;  %3582 = vmatpush.bf16.msra.mxu3 %v4996_v18  ;;  %v1897_v62 = vld [vmem:[#allocation2] sm:$0xff]  ;;  %v5027_v18 = vld [vmem:[%s6720_s7 + $0x220] sm:$0xff] }
0x1358   :  { %1795 = vrot.lane.b32.xlu1 %v4144_v19, %s5321_s0  ;;  %v5004_v19 = vld [vmem:[%s6720_s7 + $0x168] sm:$0xff] }
0x1359   :  { %3595 = vmatpush.bf16.msrb.mxu0 %v5004_v19  ;;  %v5035_v19 = vld [vmem:[%s6720_s7 + $0x260] sm:$0xff] }
0x135b   :  { %3572 = vmatpush.bf16.msra.mxu2 %v4985_v53 }
0x1372   :  { %v1740_v21 = vpop.permute.xlu2 %1739 }
0x1373   :  { %1742 = vst.msk [vmem:[#allocation2 + $0x17] sm:$0x1] %vm1602_vm7, %v1740_v21  ;;  %v5012_v21 = vld [vmem:[%s6720_s7 + $0x1a8] sm:$0xff] }
0x1374   :  { %3608 = vmatpush.bf16.msrb.mxu1 %v5012_v21  ;;  %v5043_v21 = vld [vmem:[%s6720_s7 + $0x2a0] sm:$0xff] }
0x1378   :  { %v1724_v24 = vpop.permute.xlu0 %1723 }
0x1379   :  { %1726 = vst.msk [vmem:[#allocation2 + $0x15] sm:$0x1] %vm1602_vm7, %v1724_v24  ;;  %v5020_v24 = vld [vmem:[%s6720_s7 + $0x1e8] sm:$0xff] }
0x1393   :  { %v1583_v50 = vpop.permute.xlu1 %1582 }
0x1394   :  { %v1589_v25 = vsel %vm248_vm15, %v1583_v50, 0.0 }
0x1395   :  { %v1592_v26 = vsel %vm5464_vm0, %v1589_v25, 0.0 }
0x1396   :  { %v6040_v28 = vmax.f32 %v1574_v45, %v1592_v26  ;;  %v4984_v45 = vld [vmem:[%s6720_s7 + $0xc8] sm:$0xff]  ;;  %v4995_v26 = vld [vmem:[%s6720_s7 + $0x120] sm:$0xff] }
0x1397   :  { %3573 = vmatpush.bf16.msra.mxu2 %v4984_v45  ;;  %3583 = vmatpush.bf16.msra.mxu3 %v4995_v26  ;;  %v5026_v26 = vld [vmem:[%s6720_s7 + $0x218] sm:$0xff] }
0x1398   :  { %1799 = vst.msk [vmem:[#allocation2 + $0x20] sm:$0x1] %vm1602_vm7, %v6040_v28  ;;  %1801 = vrot.lane.b32.xlu0 %v6040_v28, %s5321_s0  ;;  %v1805_v30 = vrot.slane %v6040_v28, 7 }
0x1399   :  { %1813 = vst.sshfl [vmem:[#allocation1] sm:$0xff pattern:$0x73625140] %v6040_v28 }
0x139a   :  { %v1806_v32 = vrot.slane %v1805_v30, 2  ;;  %v5003_v30 = vld [vmem:[%s6720_s7 + $0x160] sm:$0xff] }
0x139b   :  { %v1654_v33 = vpop.permute.xlu1 %1653  ;;  %3574 = vmatpush.bf16.msra.mxu2 %v4983_v11  ;;  %3596 = vmatpush.bf16.msrb.mxu0 %v5003_v30 }
0x139c   :  { %1656 = vst.msk [vmem:[#allocation2 + $0x9] sm:$0x1] %vm1602_vm7, %v1654_v33  ;;  %1809 = vrot.lane.b32.xlu2 %v1806_v32, %s5321_s0  ;;  %v5019_v33 = vld [vmem:[%s6720_s7 + $0x1e0] sm:$0xff]  ;;  %3584 = vmatpush.bf16.msra.mxu3 %v4994_v35  ;;  %v5042_v35 = vld [vmem:[%s6720_s7 + $0x298] sm:$0xff] }
0x139d   :  { %1808 = vst.msk [vmem:[#allocation2 + $0x22] sm:$0x1] %vm1602_vm7, %v1806_v32  ;;  %v5011_v32 = vld [vmem:[%s6720_s7 + $0x1a0] sm:$0xff] }
0x139e   :  { %3609 = vmatpush.bf16.msrb.mxu1 %v5011_v32 }
0x139f   :  { %3619 = vmatpush.bf16.msrb.mxu2 %v5022_v14  ;;  %3597 = vmatpush.bf16.msrb.mxu0 %v5002_v15  ;;  %v5045_v14 = vld [vmem:[%s6720_s7 + $0x2b0] sm:$0xff] }
0x13a0   :  { %v1815_v41 = vld [vmem:[#allocation1 + $0x1] ss:$4 sm:$0xff]  ;;  %v1780_v40 = vpop.permute.xlu2 %1779 }
0x13a1   :  { %1817 = vst.msk [vmem:[#allocation2 + $0x24] sm:$0x1] %vm1602_vm7, %v1815_v41 }
0x13a2   :  { %1818 = vst.sshfl [vmem:[#allocation1] sm:$0xff pattern:$0x73625140] %v6040_v28  ;;  %3610 = vmatpush.bf16.msrb.mxu1 %v5010_v34  ;;  %v5050_v34 = vld [vmem:[%s6720_s7 + $0x2d8] sm:$0xff] }
0x13a3   :  { %1782 = vst.msk [vmem:[#allocation2 + $0x1d] sm:$0x1] %vm1602_vm7, %v1780_v40  ;;  %v1682_v43 = vpop.permute.xlu1 %1681  ;;  %3620 = vmatpush.bf16.msrb.mxu2 %v5021_v17  ;;  %v4993_v40 = vld [vmem:[%s6720_s7 + $0x110] sm:$0xff]  ;;  %v5052_v17 = vld [vmem:[%s6720_s7 + $0x2e8] sm:$0xff] }
0x13a4   :  { %1684 = vst.msk [vmem:[#allocation2 + $0xd] sm:$0x1] %vm1602_vm7, %v1682_v43  ;;  %3585 = vmatpush.bf16.msra.mxu3 %v4993_v40  ;;  %v5040_v40 = vld [vmem:[%s6720_s7 + $0x288] sm:$0xff] }
0x13a6   :  { %3611 = vmatpush.bf16.msrb.mxu1 %v5009_v31  ;;  %v5039_v31 = vld [vmem:[%s6720_s7 + $0x280] sm:$0xff] }
0x13a7   :  { %3621 = vmatpush.bf16.msrb.mxu2 %v5020_v24  ;;  %v5051_v24 = vld [vmem:[%s6720_s7 + $0x2e0] sm:$0xff] }
0x13a8   :  { %3586 = vmatpush.bf16.msra.mxu3 %v4992_v48  ;;  %v5062_v48 = vld [vmem:[%s6720_s7 + $0x338] sm:$0xff] }
0x13a9   :  { %v1820_v44 = vld [vmem:[#allocation1 + $0x1] ss:$4 sm:$0xff] }
0x13aa   :  { %1821 = vrot.lane.b32.xlu1 %v1820_v44, %s5321_s0  ;;  %1825 = vst.sshfl [vmem:[#allocation1] sm:$0xff pattern:$0x73625140] %v6040_v28  ;;  %v1768_v23 = vpop.permute.xlu0 %1767 }
0x13ab   :  { %v1898_v36 = vld [vmem:[#allocation2 + $0x8] sm:$0xff]  ;;  %1770 = vst.msk [vmem:[#allocation2 + $0x1b] sm:$0x1] %vm1602_vm7, %v1768_v23  ;;  %v1712_v51 = vpop.permute.xlu1 %1711  ;;  %3622 = vmatpush.bf16.msrb.mxu2 %v5019_v33  ;;  %v5034_v33 = vld [vmem:[%s6720_s7 + $0x258] sm:$0xff] }
0x13ac   :  { %1911 = vst [vmem:[#allocation1 + $0x20] ss:$4 sm:$0xff] %v1898_v36  ;;  %v5001_v23 = vld [vmem:[%s6720_s7 + $0x150] sm:$0xff]  ;;  %v5000_v36 = vld [vmem:[%s6720_s7 + $0x148] sm:$0xff]  ;;  %3587 = vmatpush.bf16.msra.mxu3 %v4991_v55 }
0x13ad   :  { %1714 = vst.msk [vmem:[#allocation2 + $0x13] sm:$0x1] %vm1602_vm7, %v1712_v51  ;;  %3598 = vmatpush.bf16.msrb.mxu0 %v5001_v23  ;;  %v5008_v51 = vld [vmem:[%s6720_s7 + $0x188] sm:$0xff]  ;;  %v5031_v23 = vld [vmem:[%s6720_s7 + $0x240] sm:$0xff] }
0x13ae   :  { %3612 = vmatpush.bf16.msrb.mxu1 %v5008_v51  ;;  %v5078_v51 = vld [vmem:[%s6720_s7 + $0x3b8] sm:$0xff] }
0x13af   :  { %3623 = vmatpush.bf16.msrb.mxu2 %v5018_v37  ;;  %v5025_v37 = vld [vmem:[%s6720_s7 + $0x210] sm:$0xff] }
0x13b1   :  { %v1827_v49 = vld [vmem:[#allocation1 + $0x1] ss:$4 sm:$0xff]  ;;  %3599 = vmatpush.bf16.msrb.mxu0 %v5000_v36 }
0x13b2   :  { %1832 = vst.sshfl [vmem:[#allocation1] sm:$0xff pattern:$0x73625140] %v6040_v28  ;;  %v4145_v58 = vrot.slane %v1827_v49, 9  ;;  %v5007_v49 = vld [vmem:[%s6720_s7 + $0x180] sm:$0xff]  ;;  %v5070_v36 = vld [vmem:[%s6720_s7 + $0x378] sm:$0xff] }
0x13b3   :  { %v1752_v61 = vpop.permute.xlu1 %1751  ;;  %v6225_v38 = vld.sshfl [vmem:[#allocation1 + $0x20] sm:$0xff pattern:$0x73625140]  ;;  %v6227_v27 = vld.sshfl [vmem:[#allocation1 + $0x28] sm:$0xff pattern:$0x73625140]  ;;  %3624 = vmatpush.bf16.msrb.mxu2 %v5017_v46  ;;  %3613 = vmatpush.bf16.msrb.mxu1 %v5007_v49 }
0x13b4   :  { %1754 = vst.msk [vmem:[#allocation2 + $0x19] sm:$0x1] %vm1602_vm7, %v1752_v61  ;;  %v6229_v39 = vld.sshfl [vmem:[#allocation1 + $0x30] sm:$0xff pattern:$0x73625140]  ;;  %v1899_v3 = vld [vmem:[#allocation2 + $0x10] sm:$0xff]  ;;  %v1969_v30 = vpack.c.bf16 %v6227_v27, %v6227_v27 }
0x13b5   :  { %1831 = vst.msk [vmem:[#allocation2 + $0x26] sm:$0x1] %vm1602_vm7, %v4145_v58  ;;  %v6231_v41 = vld.sshfl [vmem:[#allocation1 + $0x38] sm:$0xff pattern:$0x73625140]  ;;  %3600 = vmatpush.bf16.msrb.mxu0 %v4999_v56  ;;  %v1970_v32 = vpack.c.bf16 %v6229_v39, %v6229_v39  ;;  %v5041_v27 = vld [vmem:[%s6720_s7 + $0x290] sm:$0xff] }
0x13b6   :  { %v1971_v15 = vpack.c.bf16 %v6231_v41, %v6231_v41  ;;  %v5049_v39 = vld [vmem:[%s6720_s7 + $0x2d0] sm:$0xff]  ;;  %v5032_v41 = vld [vmem:[%s6720_s7 + $0x248] sm:$0xff]  ;;  %v5047_v46 = vld [vmem:[%s6720_s7 + $0x2c0] sm:$0xff] }
0x13b7   :  { %3625 = vmatpush.bf16.msrb.mxu2 %v5016_v52  ;;  %v5086_v52 = vld [vmem:[%s6720_s7 + $0x3f8] sm:$0xff] }
0x13b9   :  { %v1834_v54 = vld [vmem:[#allocation1 + $0x1] ss:$4 sm:$0xff] }
0x13ba   :  { %v4146_v6 = vrot.slane %v1834_v54, 9  ;;  %1841 = vst.sshfl [vmem:[#allocation1] sm:$0xff pattern:$0x73625140] %v6040_v28  ;;  %v5030_v54 = vld [vmem:[%s6720_s7 + $0x238] sm:$0xff] }
0x13bb   :  { %3626 = vmatpush.bf16.msrb.mxu2 %v5015_v57 }
0x13bc   :  { %1837 = vrot.lane.b32.xlu0 %v4146_v6, %s5321_s0 }
0x13c1   :  { %v1843_v16 = vld [vmem:[#allocation1 + $0x2] ss:$4 sm:$0xff] }
0x13c2   :  { %1846 = vst.sshfl [vmem:[#allocation1] sm:$0xff pattern:$0x73625140] %v6040_v28 }
0x13c3   :  { %1845 = vst.msk [vmem:[#allocation2 + $0x28] sm:$0x1] %vm1602_vm7, %v1843_v16  ;;  %v5053_v16 = vld [vmem:[%s6720_s7 + $0x2f0] sm:$0xff] }
0x13c9   :  { %v1848_v50 = vld [vmem:[#allocation1 + $0x2] ss:$4 sm:$0xff] }
0x13ca   :  { %1853 = vst.sshfl [vmem:[#allocation1] sm:$0xff pattern:$0x73625140] %v6040_v28  ;;  %1849 = vrot.lane.b32.xlu2 %v1848_v50, %s5321_s0  ;;  %v1796_v25 = vpop.permute.xlu1 %1795 }
0x13cb   :  { %1798 = vst.msk [vmem:[#allocation2 + $0x1f] sm:$0x1] %vm1602_vm7, %v1796_v25  ;;  %v1968_v25 = vpack.c.bf16 %v6225_v38, %v6225_v38  ;;  %v5033_v38 = vld [vmem:[%s6720_s7 + $0x250] sm:$0xff] }
0x13d1   :  { %v1855_v20 = vld [vmem:[#allocation1 + $0x2] ss:$4 sm:$0xff] }
0x13d2   :  { %1860 = vst.sshfl [vmem:[#allocation1] sm:$0xff pattern:$0x73625140] %v6040_v28  ;;  %v1900_v43 = vld [vmem:[#allocation2 + $0x18] sm:$0xff]  ;;  %v4147_v44 = vrot.slane %v1855_v20, 9  ;;  %v5024_v20 = vld [vmem:[%s6720_s7 + $0x208] sm:$0xff] }
0x13d3   :  { %1921 = vst [vmem:[#allocation1 + $0x20] ss:$4 sm:$0xff] %v1900_v43  ;;  %v5048_v43 = vld [vmem:[%s6720_s7 + $0x2c8] sm:$0xff] }
0x13d4   :  { %1859 = vst.msk [vmem:[#allocation2 + $0x2a] sm:$0x1] %vm1602_vm7, %v4147_v44  ;;  %v5023_v44 = vld [vmem:[%s6720_s7 + $0x200] sm:$0xff] }
0x13d9   :  { %v1862_v8 = vld [vmem:[#allocation1 + $0x2] ss:$4 sm:$0xff] }
0x13da   :  { %v4148_v47 = vrot.slane %v1862_v8, 9  ;;  %1869 = vst.sshfl [vmem:[#allocation1] sm:$0xff pattern:$0x73625140] %v6040_v28 }
0x13dc   :  { %1865 = vrot.lane.b32.xlu1 %v4148_v47, %s5321_s0 }
0x13e1   :  { %v1871_v60 = vld [vmem:[#allocation1 + $0x3] ss:$4 sm:$0xff] }
0x13e2   :  { %1873 = vst.msk [vmem:[#allocation2 + $0x2c] sm:$0x1] %vm1602_vm7, %v1871_v60  ;;  %v5061_v60 = vld [vmem:[%s6720_s7 + $0x330] sm:$0xff] }
0x13e3   :  { %1874 = vst.sshfl [vmem:[#allocation1] sm:$0xff pattern:$0x73625140] %v6040_v28 }
0x13ea   :  { %v1876_v22 = vld [vmem:[#allocation1 + $0x3] ss:$4 sm:$0xff] }
0x13eb   :  { %1881 = vst.sshfl [vmem:[#allocation1] sm:$0xff pattern:$0x73625140] %v6040_v28  ;;  %1877 = vrot.lane.b32.xlu0 %v1876_v22, %s5321_s0 }
0x13f2   :  { %v1883_v61 = vld [vmem:[#allocation1 + $0x3] ss:$4 sm:$0xff] }
0x13f3   :  { %1888 = vst.sshfl [vmem:[#allocation1] sm:$0xff pattern:$0x73625140] %v6040_v28  ;;  %v4149_v58 = vrot.slane %v1883_v61, 9 }
0x13f4   :  { %1909 = vst [vmem:[#allocation1] ss:$4 sm:$0xff] %v1897_v62  ;;  %v5069_v62 = vld [vmem:[%s6720_s7 + $0x370] sm:$0xff] }
0x13f5   :  { %1887 = vst.msk [vmem:[#allocation2 + $0x2e] sm:$0x1] %vm1602_vm7, %v4149_v58  ;;  %v5077_v58 = vld [vmem:[%s6720_s7 + $0x3b0] sm:$0xff] }
0x13f6   :  { %v1810_v42 = vpop.permute.xlu2 %1809 }
0x13f7   :  { %1812 = vst.msk [vmem:[#allocation2 + $0x23] sm:$0x1] %vm1602_vm7, %v1810_v42 }
0x13fa   :  { %v1890_v0 = vld [vmem:[#allocation1 + $0x3] ss:$4 sm:$0xff] }
0x13fb   :  { %v4150_v2 = vrot.slane %v1890_v0, 9  ;;  %v1912_v53 = vld.sshfl [vmem:[#allocation1] sm:$0xff pattern:$0x73625140]  ;;  %v5085_v0 = vld [vmem:[%s6720_s7 + $0x3f0] sm:$0xff] }
0x13fc   :  { %v1964_v4 = vpack.c.bf16 %v1912_v53, %v1912_v53  ;;  %v1913_v5 = vld.sshfl [vmem:[#allocation1 + $0x8] sm:$0xff pattern:$0x73625140]  ;;  %v1914_v6 = vld.sshfl [vmem:[#allocation1 + $0x10] sm:$0xff pattern:$0x73625140] }
0x13fd   :  { %1893 = vrot.lane.b32.xlu2 %v4150_v2, %s5321_s0  ;;  %v1965_v28 = vpack.c.bf16 %v1913_v5, %v1913_v5  ;;  %v1966_v45 = vpack.c.bf16 %v1914_v6, %v1914_v6  ;;  %v1915_v63 = vld.sshfl [vmem:[#allocation1 + $0x18] sm:$0xff pattern:$0x73625140]  ;;  %v5060_v2 = vld [vmem:[%s6720_s7 + $0x328] sm:$0xff]  ;;  %v5059_v5 = vld [vmem:[%s6720_s7 + $0x320] sm:$0xff] }
0x13fe   :  { %3536 = vmatmul.bf16.vlgmr.msrb.gmra.mxu3 %v1964_v4  ;;  %1920 = vst [vmem:[#allocation1] ss:$4 sm:$0xff] %v1899_v3  ;;  %v1967_v11 = vpack.c.bf16 %v1915_v63, %v1915_v63  ;;  %v5068_v53 = vld [vmem:[%s6720_s7 + $0x368] sm:$0xff]  ;;  %v5067_v6 = vld [vmem:[%s6720_s7 + $0x360] sm:$0xff]  ;;  %v5058_v63 = vld [vmem:[%s6720_s7 + $0x318] sm:$0xff] }
0x13ff   :  { %3549 = vmatmul.bf16.vlgmr.msra.gmra.mxu0 %v1965_v28  ;;  %3562 = vmatmul.bf16.vlgmr.msra.gmra.mxu1 %v1966_v45  ;;  %v5076_v3 = vld [vmem:[%s6720_s7 + $0x3a8] sm:$0xff]  ;;  %v5075_v28 = vld [vmem:[%s6720_s7 + $0x3a0] sm:$0xff] }
0x1400   :  { %3575 = vmatmul.bf16.vlgmr.msra.gmra.mxu2 %v1967_v11  ;;  %3632 = vmatpush.bf16.msrb.mxu3 %v5030_v54  ;;  %v5084_v54 = vld [vmem:[%s6720_s7 + $0x3e8] sm:$0xff]  ;;  %v5083_v45 = vld [vmem:[%s6720_s7 + $0x3e0] sm:$0xff]  ;;  %v5082_v11 = vld [vmem:[%s6720_s7 + $0x3d8] sm:$0xff] }
0x1401   :  { %3645 = vmatpush.bf16.msra.mxu0 %v5038_v59  ;;  %3658 = vmatpush.bf16.msra.mxu1 %v5046_v9  ;;  %v5066_v59 = vld [vmem:[%s6720_s7 + $0x358] sm:$0xff] }
0x1402   :  { %3671 = vmatpush.bf16.msra.mxu2 %v5054_v29  ;;  %v5074_v9 = vld [vmem:[%s6720_s7 + $0x398] sm:$0xff]  ;;  %v5057_v29 = vld [vmem:[%s6720_s7 + $0x310] sm:$0xff] }
0x1404   :  { %3633 = vmatpush.bf16.msrb.mxu3 %v5029_v12 }
0x1405   :  { %3646 = vmatpush.bf16.msra.mxu0 %v5037_v13  ;;  %3659 = vmatpush.bf16.msra.mxu1 %v5045_v14  ;;  %v1922_v8 = vld.sshfl [vmem:[#allocation1] sm:$0xff pattern:$0x73625140]  ;;  %v1923_v55 = vld.sshfl [vmem:[#allocation1 + $0x8] sm:$0xff pattern:$0x73625140] }
0x1406   :  { %3672 = vmatpush.bf16.msra.mxu2 %v5053_v16  ;;  %v1924_v56 = vld.sshfl [vmem:[#allocation1 + $0x10] sm:$0xff pattern:$0x73625140]  ;;  %v1925_v49 = vld.sshfl [vmem:[#allocation1 + $0x18] sm:$0xff pattern:$0x73625140]  ;;  %v1972_v57 = vpack.c.bf16 %v1922_v8, %v1922_v8  ;;  %v1973_v22 = vpack.c.bf16 %v1923_v55, %v1923_v55 }
0x1407   :  { %v1974_v61 = vpack.c.bf16 %v1924_v56, %v1924_v56  ;;  %v1975_v42 = vpack.c.bf16 %v1925_v49, %v1925_v49  ;;  %v5065_v13 = vld [vmem:[%s6720_s7 + $0x350] sm:$0xff]  ;;  %v5090_v8 = vld [vmem:[%s6720_s7 + $0x418] sm:$0xff] }
0x1408   :  { %3634 = vmatpush.bf16.msrb.mxu3 %v5028_v7  ;;  %v5073_v14 = vld [vmem:[%s6720_s7 + $0x390] sm:$0xff]  ;;  %v5056_v7 = vld [vmem:[%s6720_s7 + $0x308] sm:$0xff]  ;;  %v5106_v55 = vld [vmem:[%s6720_s7 + $0x498] sm:$0xff] }
0x1409   :  { %3647 = vmatpush.bf16.msra.mxu0 %v5036_v1  ;;  %3660 = vmatpush.bf16.msra.mxu1 %v5044_v10  ;;  %v5081_v16 = vld [vmem:[%s6720_s7 + $0x3d0] sm:$0xff]  ;;  %v5064_v1 = vld [vmem:[%s6720_s7 + $0x348] sm:$0xff]  ;;  %v5114_v56 = vld [vmem:[%s6720_s7 + $0x4d8] sm:$0xff] }
0x140a   :  { %3673 = vmatpush.bf16.msra.mxu2 %v5052_v17  ;;  %v1802_v50 = vpop.permute.xlu0 %1801  ;;  %v5072_v10 = vld [vmem:[%s6720_s7 + $0x388] sm:$0xff]  ;;  %v5089_v49 = vld [vmem:[%s6720_s7 + $0x410] sm:$0xff] }
0x140b   :  { %1804 = vst.msk [vmem:[#allocation2 + $0x21] sm:$0x1] %vm1602_vm7, %v1802_v50  ;;  %v5080_v17 = vld [vmem:[%s6720_s7 + $0x3c8] sm:$0xff]  ;;  %v5079_v50 = vld [vmem:[%s6720_s7 + $0x3c0] sm:$0xff] }
0x140c   :  { %3635 = vmatpush.bf16.msrb.mxu3 %v5027_v18 }
0x140d   :  { %3648 = vmatpush.bf16.msra.mxu0 %v5035_v19  ;;  %3661 = vmatpush.bf16.msra.mxu1 %v5043_v21  ;;  %v5055_v19 = vld [vmem:[%s6720_s7 + $0x300] sm:$0xff] }
0x140e   :  { %3674 = vmatpush.bf16.msra.mxu2 %v5051_v24  ;;  %3588 = vmatmul.bf16.vlgmr.msra.gmra.mxu3 %v1968_v25  ;;  %v5063_v21 = vld [vmem:[%s6720_s7 + $0x340] sm:$0xff]  ;;  %v5094_v25 = vld [vmem:[%s6720_s7 + $0x438] sm:$0xff] }
0x140f   :  { %3601 = vmatmul.bf16.vlgmr.msrb.gmra.mxu0 %v1969_v30  ;;  %3614 = vmatmul.bf16.vlgmr.msrb.gmra.mxu1 %v1970_v32  ;;  %v5071_v24 = vld [vmem:[%s6720_s7 + $0x380] sm:$0xff]  ;;  %v5102_v30 = vld [vmem:[%s6720_s7 + $0x478] sm:$0xff] }
0x1410   :  { %3627 = vmatmul.bf16.vlgmr.msrb.gmra.mxu2 %v1971_v15  ;;  %3636 = vmatpush.bf16.msrb.mxu3 %v5026_v26  ;;  %v1926_v26 = vld.sshfl [vmem:[#allocation1 + $0x20] sm:$0xff pattern:$0x73625140]  ;;  %v5110_v32 = vld [vmem:[%s6720_s7 + $0x4b8] sm:$0xff] }
0x1411   :  { %3649 = vmatpush.bf16.msra.mxu0 %v5034_v33  ;;  %3662 = vmatpush.bf16.msra.mxu1 %v5042_v35  ;;  %v1927_v33 = vld.sshfl [vmem:[#allocation1 + $0x28] sm:$0xff pattern:$0x73625140]  ;;  %v5118_v35 = vld [vmem:[%s6720_s7 + $0x4f8] sm:$0xff] }
0x1412   :  { %3675 = vmatpush.bf16.msra.mxu2 %v5050_v34  ;;  %v1928_v15 = vld.sshfl [vmem:[#allocation1 + $0x30] sm:$0xff pattern:$0x73625140]  ;;  %v1929_v34 = vld.sshfl [vmem:[#allocation1 + $0x38] sm:$0xff pattern:$0x73625140] }
0x1414   :  { %3637 = vmatpush.bf16.msrb.mxu3 %v5025_v37  ;;  %v1976_v37 = vpack.c.bf16 %v1926_v26, %v1926_v26  ;;  %v5139_v26 = vld [vmem:[%s6720_s7 + $0x5a0] sm:$0xff] }
0x1415   :  { %3650 = vmatpush.bf16.msra.mxu0 %v5033_v38  ;;  %3663 = vmatpush.bf16.msra.mxu1 %v5041_v27  ;;  %v5093_v38 = vld [vmem:[%s6720_s7 + $0x430] sm:$0xff]  ;;  %v1977_v27 = vpack.c.bf16 %v1927_v33, %v1927_v33  ;;  %v5122_v33 = vld [vmem:[%s6720_s7 + $0x518] sm:$0xff] }
0x1416   :  { %3676 = vmatpush.bf16.msra.mxu2 %v5049_v39  ;;  %v1978_v39 = vpack.c.bf16 %v1928_v15, %v1928_v15  ;;  %v5138_v15 = vld [vmem:[%s6720_s7 + $0x598] sm:$0xff] }
0x1418   :  { %3638 = vmatpush.bf16.msrb.mxu3 %v5024_v20  ;;  %v5101_v20 = vld [vmem:[%s6720_s7 + $0x470] sm:$0xff] }
0x1419   :  { %3651 = vmatpush.bf16.msra.mxu0 %v5032_v41  ;;  %3664 = vmatpush.bf16.msra.mxu1 %v5040_v40  ;;  %v5109_v41 = vld [vmem:[%s6720_s7 + $0x4b0] sm:$0xff]  ;;  %v1979_v40 = vpack.c.bf16 %v1929_v34, %v1929_v34  ;;  %v5146_v34 = vld [vmem:[%s6720_s7 + $0x5d8] sm:$0xff] }
0x141a   :  { %3677 = vmatpush.bf16.msra.mxu2 %v5048_v43  ;;  %v5117_v43 = vld [vmem:[%s6720_s7 + $0x4f0] sm:$0xff] }
0x141c   :  { %3639 = vmatpush.bf16.msrb.mxu3 %v5023_v44  ;;  %v1822_v47 = vpop.permute.xlu1 %1821  ;;  %v5092_v44 = vld [vmem:[%s6720_s7 + $0x428] sm:$0xff] }
0x141d   :  { %3652 = vmatpush.bf16.msra.mxu0 %v5031_v23  ;;  %3665 = vmatpush.bf16.msra.mxu1 %v5039_v31  ;;  %1824 = vst.msk [vmem:[#allocation2 + $0x25] sm:$0x1] %vm1602_vm7, %v1822_v47  ;;  %v5100_v23 = vld [vmem:[%s6720_s7 + $0x468] sm:$0xff]  ;;  %v5098_v47 = vld [vmem:[%s6720_s7 + $0x458] sm:$0xff] }
0x141e   :  { %3678 = vmatpush.bf16.msra.mxu2 %v5047_v46  ;;  %v5108_v31 = vld [vmem:[%s6720_s7 + $0x4a8] sm:$0xff] }
0x141f   :  { %3640 = vmatmul.bf16.vlgmr.msrb.gmra.mxu3 %v1972_v57  ;;  %v5116_v46 = vld [vmem:[%s6720_s7 + $0x4e8] sm:$0xff]  ;;  %v5097_v57 = vld [vmem:[%s6720_s7 + $0x450] sm:$0xff] }
0x1420   :  { %3684 = vmatpush.bf16.msra.mxu3 %v5062_v48  ;;  %3653 = vmatmul.bf16.vlgmr.msra.gmra.mxu0 %v1973_v22  ;;  %v5091_v48 = vld [vmem:[%s6720_s7 + $0x420] sm:$0xff]  ;;  %v5113_v22 = vld [vmem:[%s6720_s7 + $0x4d0] sm:$0xff] }
0x1421   :  { %3697 = vmatpush.bf16.msrb.mxu0 %v5070_v36  ;;  %3710 = vmatpush.bf16.msrb.mxu1 %v5078_v51  ;;  %v5099_v36 = vld [vmem:[%s6720_s7 + $0x460] sm:$0xff] }
0x1422   :  { %3723 = vmatpush.bf16.msrb.mxu2 %v5086_v52  ;;  %3666 = vmatmul.bf16.vlgmr.msra.gmra.mxu1 %v1974_v61  ;;  %v5107_v51 = vld [vmem:[%s6720_s7 + $0x4a0] sm:$0xff] }
0x1423   :  { %3679 = vmatmul.bf16.vlgmr.msra.gmra.mxu2 %v1975_v42  ;;  %v5115_v52 = vld [vmem:[%s6720_s7 + $0x4e0] sm:$0xff]  ;;  %v5104_v42 = vld [vmem:[%s6720_s7 + $0x488] sm:$0xff] }
0x1424   :  { %3685 = vmatpush.bf16.msra.mxu3 %v5061_v60  ;;  %v1850_v4 = vpop.permute.xlu2 %1849  ;;  %v5105_v60 = vld [vmem:[%s6720_s7 + $0x490] sm:$0xff] }
0x1425   :  { %3698 = vmatpush.bf16.msrb.mxu0 %v5069_v62  ;;  %3711 = vmatpush.bf16.msrb.mxu1 %v5077_v58  ;;  %1852 = vst.msk [vmem:[#allocation2 + $0x29] sm:$0x1] %vm1602_vm7, %v1850_v4  ;;  %v5088_v62 = vld [vmem:[%s6720_s7 + $0x408] sm:$0xff]  ;;  %v5126_v4 = vld [vmem:[%s6720_s7 + $0x538] sm:$0xff] }
0x1426   :  { %3724 = vmatpush.bf16.msrb.mxu2 %v5085_v0  ;;  %v5096_v58 = vld [vmem:[%s6720_s7 + $0x448] sm:$0xff] }
0x1427   :  { %v5112_v0 = vld [vmem:[%s6720_s7 + $0x4c8] sm:$0xff] }
0x1428   :  { %3686 = vmatpush.bf16.msra.mxu3 %v5060_v2  ;;  %v5087_v2 = vld [vmem:[%s6720_s7 + $0x400] sm:$0xff] }
0x1429   :  { %3699 = vmatpush.bf16.msrb.mxu0 %v5068_v53  ;;  %3712 = vmatpush.bf16.msrb.mxu1 %v5076_v3  ;;  %v5095_v53 = vld [vmem:[%s6720_s7 + $0x440] sm:$0xff] }
0x142a   :  { %3725 = vmatpush.bf16.msrb.mxu2 %v5084_v54  ;;  %v5103_v3 = vld [vmem:[%s6720_s7 + $0x480] sm:$0xff] }
0x142b   :  { %v5111_v54 = vld [vmem:[%s6720_s7 + $0x4c0] sm:$0xff] }
0x142c   :  { %3687 = vmatpush.bf16.msra.mxu3 %v5059_v5  ;;  %v5134_v5 = vld [vmem:[%s6720_s7 + $0x578] sm:$0xff] }
0x142d   :  { %3700 = vmatpush.bf16.msrb.mxu0 %v5067_v6  ;;  %3713 = vmatpush.bf16.msrb.mxu1 %v5075_v28  ;;  %v5142_v6 = vld [vmem:[%s6720_s7 + $0x5b8] sm:$0xff] }
0x142e   :  { %3726 = vmatpush.bf16.msrb.mxu2 %v5083_v45  ;;  %v1838_v12 = vpop.permute.xlu0 %1837 }
0x142f   :  { %1840 = vst.msk [vmem:[#allocation2 + $0x27] sm:$0x1] %vm1602_vm7, %v1838_v12  ;;  %v5125_v12 = vld [vmem:[%s6720_s7 + $0x530] sm:$0xff] }
0x1430   :  { %3688 = vmatpush.bf16.msra.mxu3 %v5058_v63 }
0x1431   :  { %3701 = vmatpush.bf16.msrb.mxu0 %v5066_v59  ;;  %3714 = vmatpush.bf16.msrb.mxu1 %v5074_v9  ;;  %v5150_v59 = vld [vmem:[%s6720_s7 + $0x5f8] sm:$0xff] }
0x1432   :  { %3727 = vmatpush.bf16.msrb.mxu2 %v5082_v11 }
0x1434   :  { %3689 = vmatpush.bf16.msra.mxu3 %v5057_v29 }
0x1435   :  { %3702 = vmatpush.bf16.msrb.mxu0 %v5065_v13  ;;  %3715 = vmatpush.bf16.msrb.mxu1 %v5073_v14 }
0x1436   :  { %3728 = vmatpush.bf16.msrb.mxu2 %v5081_v16  ;;  %v1901_v18 = vld [vmem:[#allocation2 + $0x20] sm:$0xff]  ;;  %v5133_v16 = vld [vmem:[%s6720_s7 + $0x570] sm:$0xff] }
0x1437   :  { %1930 = vst [vmem:[#allocation1] ss:$4 sm:$0xff] %v1901_v18  ;;  %v5124_v18 = vld [vmem:[%s6720_s7 + $0x528] sm:$0xff] }
0x1438   :  { %3690 = vmatpush.bf16.msra.mxu3 %v5056_v7  ;;  %v5141_v7 = vld [vmem:[%s6720_s7 + $0x5b0] sm:$0xff] }
0x1439   :  { %3703 = vmatpush.bf16.msrb.mxu0 %v5064_v1  ;;  %3716 = vmatpush.bf16.msrb.mxu1 %v5072_v10  ;;  %v5149_v10 = vld [vmem:[%s6720_s7 + $0x5f0] sm:$0xff] }
0x143a   :  { %3729 = vmatpush.bf16.msrb.mxu2 %v5080_v17 }
0x143c   :  { %3691 = vmatpush.bf16.msra.mxu3 %v5055_v19  ;;  %v5132_v19 = vld [vmem:[%s6720_s7 + $0x568] sm:$0xff] }
0x143d   :  { %3704 = vmatpush.bf16.msrb.mxu0 %v5063_v21  ;;  %3717 = vmatpush.bf16.msrb.mxu1 %v5071_v24  ;;  %v5140_v21 = vld [vmem:[%s6720_s7 + $0x5a8] sm:$0xff] }
0x143e   :  { %3730 = vmatpush.bf16.msrb.mxu2 %v5079_v50  ;;  %v1932_v45 = vld.sshfl [vmem:[#allocation1] sm:$0xff pattern:$0x73625140]  ;;  %v1933_v63 = vld.sshfl [vmem:[#allocation1 + $0x8] sm:$0xff pattern:$0x73625140] }
0x143f   :  { %3692 = vmatmul.bf16.vlgmr.msra.gmra.mxu3 %v1976_v37  ;;  %v1934_v9 = vld.sshfl [vmem:[#allocation1 + $0x10] sm:$0xff pattern:$0x73625140]  ;;  %v1935_v11 = vld.sshfl [vmem:[#allocation1 + $0x18] sm:$0xff pattern:$0x73625140]  ;;  %v1980_v29 = vpack.c.bf16 %v1932_v45, %v1932_v45  ;;  %v1981_v13 = vpack.c.bf16 %v1933_v63, %v1933_v63 }
0x1440   :  { %3736 = vmatpush.bf16.msrb.mxu3 %v5094_v25  ;;  %3705 = vmatmul.bf16.vlgmr.msrb.gmra.mxu0 %v1977_v27  ;;  %v1982_v14 = vpack.c.bf16 %v1934_v9, %v1934_v9  ;;  %v1983_v1 = vpack.c.bf16 %v1935_v11, %v1935_v11  ;;  %v5148_v24 = vld [vmem:[%s6720_s7 + $0x5e8] sm:$0xff]  ;;  %v5123_v50 = vld [vmem:[%s6720_s7 + $0x520] sm:$0xff]  ;;  %v5121_v37 = vld [vmem:[%s6720_s7 + $0x510] sm:$0xff] }
0x1441   :  { %3749 = vmatpush.bf16.msra.mxu0 %v5102_v30  ;;  %3762 = vmatpush.bf16.msra.mxu1 %v5110_v32  ;;  %v5131_v25 = vld [vmem:[%s6720_s7 + $0x560] sm:$0xff]  ;;  %v5137_v27 = vld [vmem:[%s6720_s7 + $0x590] sm:$0xff] }
0x1442   :  { %3775 = vmatpush.bf16.msra.mxu2 %v5118_v35  ;;  %3718 = vmatmul.bf16.vlgmr.msrb.gmra.mxu1 %v1978_v39  ;;  %v5147_v30 = vld [vmem:[%s6720_s7 + $0x5e0] sm:$0xff]  ;;  %v5130_v35 = vld [vmem:[%s6720_s7 + $0x558] sm:$0xff]  ;;  %v5145_v39 = vld [vmem:[%s6720_s7 + $0x5d0] sm:$0xff] }
0x1443   :  { %3731 = vmatmul.bf16.vlgmr.msrb.gmra.mxu2 %v1979_v40  ;;  %v5136_v40 = vld [vmem:[%s6720_s7 + $0x588] sm:$0xff] }
0x1444   :  { %3737 = vmatpush.bf16.msrb.mxu3 %v5093_v38  ;;  %v5129_v38 = vld [vmem:[%s6720_s7 + $0x550] sm:$0xff] }
0x1445   :  { %3750 = vmatpush.bf16.msra.mxu0 %v5101_v20  ;;  %3763 = vmatpush.bf16.msra.mxu1 %v5109_v41  ;;  %v5120_v20 = vld [vmem:[%s6720_s7 + $0x508] sm:$0xff] }
0x1446   :  { %3776 = vmatpush.bf16.msra.mxu2 %v5117_v43  ;;  %v5128_v41 = vld [vmem:[%s6720_s7 + $0x548] sm:$0xff] }
0x1447   :  { %v5144_v43 = vld [vmem:[%s6720_s7 + $0x5c8] sm:$0xff] }
0x1448   :  { %3738 = vmatpush.bf16.msrb.mxu3 %v5092_v44  ;;  %v5119_v44 = vld [vmem:[%s6720_s7 + $0x500] sm:$0xff] }
0x1449   :  { %3751 = vmatpush.bf16.msra.mxu0 %v5100_v23  ;;  %3764 = vmatpush.bf16.msra.mxu1 %v5108_v31  ;;  %v5127_v23 = vld [vmem:[%s6720_s7 + $0x540] sm:$0xff] }
0x144a   :  { %3777 = vmatpush.bf16.msra.mxu2 %v5116_v46  ;;  %v5135_v31 = vld [vmem:[%s6720_s7 + $0x580] sm:$0xff] }
0x144b   :  { %v5143_v46 = vld [vmem:[%s6720_s7 + $0x5c0] sm:$0xff] }
0x144c   :  { %3739 = vmatpush.bf16.msrb.mxu3 %v5091_v48 }
0x144d   :  { %3752 = vmatpush.bf16.msra.mxu0 %v5099_v36  ;;  %3765 = vmatpush.bf16.msra.mxu1 %v5107_v51 }
0x144e   :  { %3778 = vmatpush.bf16.msra.mxu2 %v5115_v52  ;;  %v1866_v61 = vpop.permute.xlu1 %1865 }
0x144f   :  { %1868 = vst.msk [vmem:[#allocation2 + $0x2b] sm:$0x1] %vm1602_vm7, %v1866_v61 }
0x1450   :  { %3740 = vmatpush.bf16.msrb.mxu3 %v5090_v8 }
0x1451   :  { %3753 = vmatpush.bf16.msra.mxu0 %v5098_v47  ;;  %3766 = vmatpush.bf16.msra.mxu1 %v5106_v55 }
0x1452   :  { %3779 = vmatpush.bf16.msra.mxu2 %v5114_v56 }
0x1454   :  { %3741 = vmatpush.bf16.msrb.mxu3 %v5089_v49 }
0x1455   :  { %3754 = vmatpush.bf16.msra.mxu0 %v5097_v57  ;;  %3767 = vmatpush.bf16.msra.mxu1 %v5105_v60  ;;  %v5229_v60 = vld [vmem:[%s6721_s8] ss:$0 sm:$0xff] }
0x1456   :  { %3780 = vmatpush.bf16.msra.mxu2 %v5113_v22 }
0x1457   :  { %v1894_v28 = vpop.permute.xlu2 %1893 }
0x1458   :  { %3742 = vmatpush.bf16.msrb.mxu3 %v5088_v62  ;;  %1896 = vst.msk [vmem:[#allocation2 + $0x2f] sm:$0x1] %vm1602_vm7, %v1894_v28 }
0x1459   :  { %3755 = vmatpush.bf16.msra.mxu0 %v5096_v58  ;;  %3768 = vmatpush.bf16.msra.mxu1 %v5104_v42 }
0x145a   :  { %3781 = vmatpush.bf16.msra.mxu2 %v5112_v0 }
0x145c   :  { %3743 = vmatpush.bf16.msrb.mxu3 %v5087_v2 }
0x145d   :  { %3756 = vmatpush.bf16.msra.mxu0 %v5095_v53  ;;  %3769 = vmatpush.bf16.msra.mxu1 %v5103_v3  ;;  %v1878_v17 = vpop.permute.xlu0 %1877 }
0x145e   :  { %3782 = vmatpush.bf16.msra.mxu2 %v5111_v54  ;;  %1880 = vst.msk [vmem:[#allocation2 + $0x2d] sm:$0x1] %vm1602_vm7, %v1878_v17 }
0x145f   :  { %3744 = vmatmul.bf16.vlgmr.msrb.gmra.mxu3 %v1980_v29 }
0x1460   :  { %3788 = vmatpush.bf16.msra.mxu3 %v5126_v4  ;;  %3757 = vmatmul.bf16.vlgmr.msra.gmra.mxu0 %v1981_v13 }
0x1461   :  { %3801 = vmatpush.bf16.msrb.mxu0 %v5134_v5  ;;  %3814 = vmatpush.bf16.msrb.mxu1 %v5142_v6 }
0x1462   :  { %3827 = vmatpush.bf16.msrb.mxu2 %v5150_v59  ;;  %3770 = vmatmul.bf16.vlgmr.msra.gmra.mxu1 %v1982_v14 }
0x1463   :  { %3783 = vmatmul.bf16.vlgmr.msra.gmra.mxu2 %v1983_v1 }
0x1464   :  { %3789 = vmatpush.bf16.msra.mxu3 %v5125_v12 }
0x1465   :  { %3802 = vmatpush.bf16.msrb.mxu0 %v5133_v16  ;;  %3815 = vmatpush.bf16.msrb.mxu1 %v5141_v7  ;;  %v1902_v32 = vld [vmem:[#allocation2 + $0x28] sm:$0xff] }
0x1466   :  { %3828 = vmatpush.bf16.msrb.mxu2 %v5149_v10  ;;  %1931 = vst [vmem:[#allocation1 + $0x20] ss:$4 sm:$0xff] %v1902_v32 }
0x1468   :  { %3790 = vmatpush.bf16.msra.mxu3 %v5124_v18 }
0x1469   :  { %3803 = vmatpush.bf16.msrb.mxu0 %v5132_v19  ;;  %3816 = vmatpush.bf16.msrb.mxu1 %v5140_v21 }
0x146a   :  { %3829 = vmatpush.bf16.msrb.mxu2 %v5148_v24 }
0x146c   :  { %3791 = vmatpush.bf16.msra.mxu3 %v5123_v50 }
0x146d   :  { %3804 = vmatpush.bf16.msrb.mxu0 %v5131_v25  ;;  %3817 = vmatpush.bf16.msrb.mxu1 %v5139_v26  ;;  %v1936_v48 = vld.sshfl [vmem:[#allocation1 + $0x20] sm:$0xff pattern:$0x73625140]  ;;  %v1937_v36 = vld.sshfl [vmem:[#allocation1 + $0x28] sm:$0xff pattern:$0x73625140] }
0x146e   :  { %3830 = vmatpush.bf16.msrb.mxu2 %v5147_v30  ;;  %v1938_v51 = vld.sshfl [vmem:[#allocation1 + $0x30] sm:$0xff pattern:$0x73625140]  ;;  %v1939_v52 = vld.sshfl [vmem:[#allocation1 + $0x38] sm:$0xff pattern:$0x73625140]  ;;  %v1984_v8 = vpack.c.bf16 %v1936_v48, %v1936_v48  ;;  %v1985_v47 = vpack.c.bf16 %v1937_v36, %v1937_v36 }
0x146f   :  { %v1986_v55 = vpack.c.bf16 %v1938_v51, %v1938_v51  ;;  %v1987_v56 = vpack.c.bf16 %v1939_v52, %v1939_v52  ;;  %v5154_v36 = vld [vmem:[%s6722_s9 + $0x18] sm:$0xff] }
0x1470   :  { %3792 = vmatpush.bf16.msra.mxu3 %v5122_v33 }
0x1471   :  { %3805 = vmatpush.bf16.msrb.mxu0 %v5130_v35  ;;  %3818 = vmatpush.bf16.msrb.mxu1 %v5138_v15 }
0x1472   :  { %3831 = vmatpush.bf16.msrb.mxu2 %v5146_v34 }
0x1474   :  { %3793 = vmatpush.bf16.msra.mxu3 %v5121_v37 }
0x1475   :  { %3806 = vmatpush.bf16.msrb.mxu0 %v5129_v38  ;;  %3819 = vmatpush.bf16.msrb.mxu1 %v5137_v27  ;;  %v5158_v38 = vld [vmem:[%s6722_s9 + $0x38] sm:$0xff]  ;;  %v5157_v27 = vld [vmem:[%s6722_s9 + $0x30] sm:$0xff] }
0x1476   :  { %3832 = vmatpush.bf16.msrb.mxu2 %v5145_v39 }
0x1478   :  { %3794 = vmatpush.bf16.msra.mxu3 %v5120_v20 }
0x1479   :  { %3807 = vmatpush.bf16.msrb.mxu0 %v5128_v41  ;;  %3820 = vmatpush.bf16.msrb.mxu1 %v5136_v40  ;;  %v5156_v41 = vld [vmem:[%s6722_s9 + $0x28] sm:$0xff] }
0x147a   :  { %3833 = vmatpush.bf16.msrb.mxu2 %v5144_v43 }
0x147c   :  { %3795 = vmatpush.bf16.msra.mxu3 %v5119_v44  ;;  %v3550_v49 = vpop.f32.mrf.mxu0  ;;  %v3563_v57 = vpop.f32.mrf.mxu1 }
0x147d   :  { %3808 = vmatpush.bf16.msrb.mxu0 %v5127_v23  ;;  %3821 = vmatpush.bf16.msrb.mxu1 %v5135_v31 }
0x147e   :  { %3834 = vmatpush.bf16.msrb.mxu2 %v5143_v46  ;;  %v5155_v46 = vld [vmem:[%s6722_s9 + $0x20] sm:$0xff] }
0x147f   :  { %3796 = vmatmul.bf16.vlgmr.msra.gmra.mxu3 %v1984_v8 }
0x1480   :  { %3809 = vmatmul.bf16.vlgmr.msrb.gmra.mxu0 %v1985_v47  ;;  %3822 = vmatmul.bf16.vlgmr.msrb.gmra.mxu1 %v1986_v55  ;;  %v5153_v47 = vld [vmem:[%s6722_s9 + $0x10] sm:$0xff] }
0x1481   :  { %3835 = vmatmul.bf16.vlgmr.msrb.gmra.mxu2 %v1987_v56  ;;  %v3537_v22 = vpop.f32.mrf.mxu3  ;;  %3915 = vmatpush.bf16.msrb.mxu3 %v5158_v38  ;;  %v5152_v56 = vld [vmem:[%s6722_s9 + $0x8] sm:$0xff] }
0x1482   :  { %v3538_v61 = vadd.f32 %v5229_v60, %v3537_v22  ;;  %v16_v22 = vstv %s6723_s10 }
0x1483   :  { %v3576_v62 = vpop.f32.mrf.mxu2  ;;  %17 = vst [vmem:[#allocation3] sm:$0x1] %v16_v22 }
0x1484   :  { %v3551_v58 = vadd.f32 %v3550_v49, %v3538_v61  ;;  %v3552_v42 = vpop.f32.mrf.mxu0  ;;  %v3565_v0 = vpop.f32.mrf.mxu1 }
0x1485   :  { %3916 = vmatpush.bf16.msrb.mxu3 %v5157_v27 }
0x1486   :  { %v3564_v2 = vadd.f32 %v3563_v57, %v3551_v58  ;;  %v5151_v57 = vld [vmem:[%s6722_s9] sm:$0xff] }
0x1488   :  { %v3577_v53 = vadd.f32 %v3576_v62, %v3564_v2 }
0x1489   :  { %v3539_v3 = vpop.f32.mrf.mxu3  ;;  %3917 = vmatpush.bf16.msrb.mxu3 %v5156_v41 }
0x148b   :  { %v3578_v54 = vpop.f32.mrf.mxu2 }
0x148c   :  { %v3602_v4 = vpop.f32.mrf.mxu0  ;;  %v3615_v5 = vpop.f32.mrf.mxu1 }
0x148d   :  { %3918 = vmatpush.bf16.msrb.mxu3 %v5155_v46 }
0x1491   :  { %v3589_v6 = vpop.f32.mrf.mxu3  ;;  %3919 = vmatpush.bf16.msrb.mxu3 %v5154_v36 }
0x1492   :  { %v3590_v28 = vadd.f32 %v3589_v6, %v3577_v53 }
0x1493   :  { %v3628_v45 = vpop.f32.mrf.mxu2 }
0x1494   :  { %v3603_v63 = vadd.f32 %v3602_v4, %v3590_v28  ;;  %v3604_v59 = vpop.f32.mrf.mxu0  ;;  %v3617_v9 = vpop.f32.mrf.mxu1 }
0x1495   :  { %3920 = vmatpush.bf16.msrb.mxu3 %v5153_v47 }
0x1496   :  { %v3616_v11 = vadd.f32 %v3615_v5, %v3603_v63 }
0x1498   :  { %v3629_v29 = vadd.f32 %v3628_v45, %v3616_v11 }
0x1499   :  { %v3591_v12 = vpop.f32.mrf.mxu3  ;;  %3921 = vmatpush.bf16.msrb.mxu3 %v5152_v56 }
0x149b   :  { %v3630_v13 = vpop.f32.mrf.mxu2 }
0x149c   :  { %v5230_v13 = vld [vmem:[#allocation3] ss:$0 sm:$0xff] }
0x149d   :  { %v3654_v14 = vpop.f32.mrf.mxu0  ;;  %3922 = vmatpush.bf16.msrb.mxu3 %v5151_v57 }
0x149f   :  { %v3667_v16 = vpop.f32.mrf.mxu1 }
0x14a2   :  { %v3641_v7 = vpop.f32.mrf.mxu3 }
0x14a3   :  { %v3642_v1 = vadd.f32 %v3641_v7, %v3629_v29 }
0x14a5   :  { %v3655_v17 = vadd.f32 %v3654_v14, %v3642_v1  ;;  %v3656_v18 = vpop.f32.mrf.mxu0 }
0x14a6   :  { %v3680_v10 = vpop.f32.mrf.mxu2 }
0x14a7   :  { %v3669_v19 = vpop.f32.mrf.mxu1  ;;  %v3668_v21 = vadd.f32 %v3667_v16, %v3655_v17 }
0x14a9   :  { %v3681_v24 = vadd.f32 %v3680_v10, %v3668_v21 }
0x14aa   :  { %v3643_v50 = vpop.f32.mrf.mxu3 }
0x14ae   :  { %v3682_v25 = vpop.f32.mrf.mxu2 }
0x14bd   :  { %v3706_v26 = vpop.f32.mrf.mxu0 }
0x14bf   :  { %v3719_v30 = vpop.f32.mrf.mxu1 }
0x14c2   :  { %v3693_v32 = vpop.f32.mrf.mxu3 }
0x14c3   :  { %v3694_v43 = vadd.f32 %v3693_v32, %v3681_v24 }
0x14c5   :  { %v3708_v35 = vpop.f32.mrf.mxu0  ;;  %v3707_v48 = vadd.f32 %v3706_v26, %v3694_v43 }
0x14c6   :  { %v3732_v33 = vpop.f32.mrf.mxu2 }
0x14c7   :  { %v3721_v15 = vpop.f32.mrf.mxu1  ;;  %v3720_v52 = vadd.f32 %v3719_v30, %v3707_v48 }
0x14c9   :  { %v3733_v55 = vadd.f32 %v3732_v33, %v3720_v52 }
0x14ca   :  { %v3695_v34 = vpop.f32.mrf.mxu3 }
0x14ce   :  { %v3734_v37 = vpop.f32.mrf.mxu2 }
0x14dd   :  { %v3758_v39 = vpop.f32.mrf.mxu0 }
0x14df   :  { %v3771_v20 = vpop.f32.mrf.mxu1 }
0x14e2   :  { %v3745_v40 = vpop.f32.mrf.mxu3 }
0x14e3   :  { %v3746_v49 = vadd.f32 %v3745_v40, %v3733_v55 }
0x14e5   :  { %v3760_v23 = vpop.f32.mrf.mxu0  ;;  %v3759_v60 = vadd.f32 %v3758_v39, %v3746_v49 }
0x14e6   :  { %v3784_v44 = vpop.f32.mrf.mxu2 }
0x14e7   :  { %v3773_v31 = vpop.f32.mrf.mxu1  ;;  %v3772_v61 = vadd.f32 %v3771_v20, %v3759_v60 }
0x14e9   :  { %v3785_v42 = vadd.f32 %v3784_v44, %v3772_v61 }
0x14ea   :  { %v3747_v51 = vpop.f32.mrf.mxu3 }
0x14ee   :  { %v3786_v8 = vpop.f32.mrf.mxu2 }
0x14fd   :  { %v3810_v62 = vpop.f32.mrf.mxu0  ;;  %v3823_v58 = vpop.f32.mrf.mxu1 }
0x1502   :  { %v3797_v0 = vpop.f32.mrf.mxu3 }
0x1503   :  { %v3798_v2 = vadd.f32 %v3797_v0, %v3785_v42 }
0x1504   :  { %v3836_v53 = vpop.f32.mrf.mxu2 }
0x1505   :  { %v3811_v3 = vadd.f32 %v3810_v62, %v3798_v2  ;;  %v3812_v54 = vpop.f32.mrf.mxu0  ;;  %v3825_v4 = vpop.f32.mrf.mxu1 }
0x1507   :  { %v3824_v5 = vadd.f32 %v3823_v58, %v3811_v3 }
0x1509   :  { %v3837_v6 = vadd.f32 %v3836_v53, %v3824_v5 }
0x150a   :  { %v3799_v28 = vpop.f32.mrf.mxu3 }
0x150b   :  { %v3841_v45 = vmin.f32 %v3837_v6, 0.0  ;;  %vm3840_vm15 = vcmp.gt.f32.partialorder %v3837_v6, 0.0 }
0x150c   :  { %v3838_v63 = vpop.f32.mrf.mxu2 }
0x150d   :  { %v3842_v59 = vmul.f32 1.442695, %v3841_v45 }
0x150f   :  { %5309 = vpow2.f32 %v3842_v59 }
0x1515   :  { %v5310_v9 = vpop.eup %5309 }
0x1516   :  { %v4919_v11 = vadd.f32 -1.0, %v5310_v9 }
0x1518   :  { %v3845_v29 = vsel %vm3840_vm15, %v3837_v6, %v4919_v11 }
0x1519   :  { %v3846_v12 = vpack.c.bf16 %v3845_v29, %v3845_v29 }
0x151b   :  { %3923 = vmatmul.bf16.vlgmr.msrb.gmra.mxu3 %v3846_v12 }
0x159e   :  { %v3924_v14 = vpop.f32.mrf.mxu3 }
0x159f   :  { %v3925_v16 = vadd.f32 %v5230_v13, %v3924_v14 }
0x15a1   :  { %v3928_v7 = vsub.f32 0.0, %v3925_v16 }
0x15a3   :  { %v3929_v1 = vmul.f32 1.442695, %v3928_v7 }
0x15a5   :  { %5311 = vpow2.f32 %v3929_v1 }
0x15a6   :  { %v3926_v10 = vpop.f32.mrf.mxu3 }
0x15ab   :  { %v5312_v17 = vpop.eup %5311 }
0x15ac   :  { %v3931_v18 = vadd.f32 1.0, %v5312_v17 }
0x15ae   :  { %5313 = vrcp.f32 %v3931_v18  ;;  %v3943_v50 = vand.u32 2147483648, %v3931_v18  ;;  %v3941_v26 = vand.u32 2147483647, %v3931_v18  ;;  %vm3937_vm4 = vweird.f32 %v3931_v18 }
0x15b0   :  { %v3944_v32 = vor.u32 1.1754944e-38, %v3943_v50  ;;  %vm3942_vm6 = vcmp.eq.f32.partialorder %v3941_v26, 8.507059e+37 }
0x15b4   :  { %v5314_v19 = vpop.eup %5313 }
0x15b5   :  { %v3933_v21 = vmul.f32 %v5314_v19, %v3931_v18  ;;  %vm3938_vm0 = vweird.f32 %v5314_v19 }
0x15b6   :  { %vm3939_vm1 = vmor %vm3937_vm4, %vm3938_vm0 }
0x15b7   :  { %v3934_v24 = vsub.f32 1.0, %v3933_v21 }
0x15b9   :  { %v3935_v25 = vmul.f32 %v5314_v19, %v3934_v24 }
0x15bb   :  { %v3936_v30 = vadd.f32 %v5314_v19, %v3935_v25 }
0x15bd   :  { %v3940_v33 = vsel %vm3939_vm1, %v5314_v19, %v3936_v30 }
0x15be   :  { %v3945_v35 = vsel %vm3942_vm6, %v3944_v32, %v3940_v33 }
0x15bf   :  { %3948 = vst.msk [vmem:[%s6724_s11] sm:$0x3] %vm3947_vm2, %v3945_v35 }

</bundles_post_ra>
